<compile_context>
chip_gen: v5e
topology: v5e:2x2
jax: 0.10.0
libtpu: 0.0.40
codegen_flags: <defaults>
</compile_context>

<pallas_src>
import numpy as np
import jax
import jax.numpy as jnp
from jax.experimental import pallas as pl
from jax.experimental.pallas import tpu as pltpu


# ----------------------------------------------------------------------------
# Graph (h36m layout, 'directed' strategy, max_hop=1)  -- numpy, matches module
# ----------------------------------------------------------------------------
def build_graph():
    num_node = 17
    self_link = [(i, i) for i in range(num_node)]
    neighbor_link = [(0, 1), (1, 2), (2, 3), (0, 4), (4, 5), (5, 6), (0, 7),
                     (7, 8), (8, 9), (9, 10), (8, 11), (11, 12), (12, 13),
                     (8, 14), (14, 15), (15, 16)]
    edge = self_link + neighbor_link
    source_nodes = [n[0] for n in neighbor_link]
    target_nodes = [n[1] for n in neighbor_link]

    Ad = np.zeros((num_node, num_node))
    for i, j in edge:
        if i < j:
            Ad[i, j] = 1
        else:
            Ad[j, i] = 2
    hop_dis = np.zeros((num_node, num_node)) + np.inf
    transfer_mat = [np.linalg.matrix_power(Ad, d) for d in range(2)]
    arrive_mat = np.stack(transfer_mat) > 0
    for d in range(1, -1, -1):
        hop_dis[arrive_mat[d]] = d

    def normalize_digraph(A):
        Dl = np.sum(A, 0)
        Dn = np.zeros_like(A)
        for i in range(A.shape[0]):
            if Dl[i] > 0:
                Dn[i, i] = Dl[i] ** (-1)
        return A @ Dn

    adjacency = np.zeros((2, num_node, num_node))
    A = np.zeros((3, num_node, num_node))
    adjacency[0][hop_dis == 1] = 1
    A[0] = normalize_digraph(adjacency[0])
    adjacency[1][hop_dis == 0] = 1
    A[1] = normalize_digraph(adjacency[1])
    A[2] = normalize_digraph(adjacency[0].T)
    return A.astype(np.float32), source_nodes, target_nodes


# ----------------------------------------------------------------------------
# Deterministic parameter init (shapes dictated by cond_st_gcn.__init__)
# ----------------------------------------------------------------------------
def init_params(key, C, O, T, Kt, E, V):
    ks = jax.random.split(key, 16)
    p = {}
    p["W1"] = 0.1 * jax.random.normal(ks[0], (3 * C, C), jnp.float32)   # conv1 1x1
    p["b1"] = 0.1 * jax.random.normal(ks[1], (3 * C,), jnp.float32)
    p["W2"] = 0.1 * jax.random.normal(ks[2], (3 * C, C), jnp.float32)   # conv2 1x1
    p["b2"] = 0.1 * jax.random.normal(ks[3], (3 * C,), jnp.float32)
    p["Wr"] = 0.1 * jax.random.normal(ks[4], (E, C), jnp.float32)       # routing fc
    p["br"] = 0.1 * jax.random.normal(ks[5], (E,), jnp.float32)
    p["Wexp"] = 0.1 * jax.random.normal(ks[6], (E, V, V), jnp.float32)  # expert adjacency
    p["Wt1"] = 0.1 * jax.random.normal(ks[7], (O, C, Kt), jnp.float32)  # tcn1 temporal conv
    p["bt1"] = 0.1 * jax.random.normal(ks[8], (O,), jnp.float32)
    p["Wt2"] = 0.1 * jax.random.normal(ks[9], (O, C, Kt), jnp.float32)  # tcn2 temporal conv
    p["bt2"] = 0.1 * jax.random.normal(ks[10], (O,), jnp.float32)

    def bn(k, n):
        k1, k2, k3, k4 = jax.random.split(k, 4)
        return dict(gamma=1.0 + 0.1 * jax.random.normal(k1, (n,), jnp.float32),
                    beta=0.1 * jax.random.normal(k2, (n,), jnp.float32),
                    mean=0.1 * jax.random.normal(k3, (n,), jnp.float32),
                    var=jax.random.uniform(k4, (n,), jnp.float32, 0.5, 1.5))

    p["bn1a"] = bn(ks[11], C)   # tcn1 pre-BN  (in_channels)
    p["bn1b"] = bn(ks[12], O)   # tcn1 post-BN (out_channels)
    p["bn2a"] = bn(ks[13], C)   # tcn2 pre-BN
    p["bn2b"] = bn(ks[14], O)   # tcn2 post-BN
    return p


# ----------------------------------------------------------------------------
# Grid-step sizing: largest divisor NB of N that fits the per-step VMEM budget
# while keeping G = N/NB >= min(4, N) (both v7x TensorCores + DMA/compute
# overlap).  Prime N degrades gracefully to NB=1 (more, smaller steps).
# ----------------------------------------------------------------------------
def choose_nb(N, C, O, T, V, VE, vmem_budget_bytes=4 << 20):
    def step_bytes(nb):
        r, ro = nb * C * T, nb * O * T
        w = (4 * r * r + 2 * ro * r) * 4                 # packed block weights
        act = (r * (V + VE) + ro * (V + VE)) * 4 * 2     # in/out, double-buffered
        scratch = 8 * r * (V + VE) * 4                   # intermediates headroom
        return w + act + scratch

    divisors = [d for d in range(1, N + 1) if N % d == 0]
    ok = [d for d in divisors if step_bytes(d) <= vmem_budget_bytes]
    pref = [d for d in ok if N // d >= min(4, N)]
    return max(pref or ok or [1])


# ----------------------------------------------------------------------------
# Wrapper-time parameter packing.  Every per-(sample,time) linear op becomes a
# small block matrix (kron with I_T / temporal shift matrices), with the
# post-conv BatchNorm folded in; per-channel biases / BN affines are pre-tiled
# to per-row column vectors.  Total: 7 packed constant operands.
# ----------------------------------------------------------------------------
def pack_params(p, A, src, tgt, C, O, Kt, V, VE, NB, T):
    R = NB * C * T            # rows of the (sample, channel, time) slab
    Ro = NB * O * T
    A = np.asarray(A, np.float32)
    A0s, A1, A2s = A[0, 1:, :], A[1], A[2, 1:, :]
    src_oh = np.zeros((V, VE), np.float32)
    tgt_oh = np.zeros((V, VE), np.float32)
    for j, v in enumerate(src):
        src_oh[v, j] = 1.0
    for j, v in enumerate(tgt):
        tgt_oh[v, j] = 1.0
    adj_ev = np.concatenate([A0s, A2s], axis=0)               # (2*VE, V)
    adj_ve = np.concatenate([A1, src_oh, tgt_oh], axis=1)     # (V, V + 2*VE)

    W1 = np.asarray(p["W1"], np.float32)
    b1 = np.asarray(p["b1"], np.float32)
    W2 = np.asarray(p["W2"], np.float32)
    b2 = np.asarray(p["b2"], np.float32)
    I_T = np.eye(T, dtype=np.float32)
    I_NB = np.eye(NB, dtype=np.float32)

    def blockmix(W):   # (Cout, C) -> (NB*Cout*T, NB*C*T), rows/cols ordered (n, ch, t)
        return np.kron(I_NB, np.kron(W, I_T)).astype(np.float32)

    # conv2 (branch-major output rows) + conv1's single consumed branch (k=1)
    kmix = np.concatenate(
        [blockmix(W2[k * C:(k + 1) * C]) for k in range(3)]
        + [blockmix(W1[C:2 * C])], axis=0)                    # (4R, R)

    def bn_ss(bnp, eps=1e-5):
        s = np.asarray(bnp["gamma"], np.float32) / np.sqrt(
            np.asarray(bnp["var"], np.float32) + eps)
        sh = np.asarray(bnp["beta"], np.float32) - np.asarray(bnp["mean"], np.float32) * s
        return s, sh

    s1a, sh1a = bn_ss(p["bn1a"])
    s1b, sh1b = bn_ss(p["bn1b"])
    s2a, sh2a = bn_ss(p["bn2a"])
    s2b, sh2b = bn_ss(p["bn2b"])

    # Temporal conv (Kt,1) with zero padding + post-conv BN folded into one
    # banded block per sample: M = sum_dt kron(Wdt_folded, S_dt).
    pad = (Kt - 1) // 2

    def banded(Wt, s_post):
        Wf = np.asarray(Wt, np.float32) * s_post[:, None, None]   # (O, C, Kt)
        M = np.zeros((O * T, C * T), np.float32)
        for dt in range(Kt):
            S = np.zeros((T, T), np.float32)
            for t in range(T):
                tp = t + dt - pad
                if 0 <= tp < T:
                    S[t, tp] = 1.0
            M += np.kron(Wf[:, :, dt], S)
        return np.kron(I_NB, M).astype(np.float32)                 # (Ro, R)

    ktcn = np.concatenate([banded(p["Wt1"], s1b), banded(p["Wt2"], s2b)], axis=0)  # (2Ro, R)

    bt1f = s1b * np.asarray(p["bt1"], np.float32) + sh1b
    bt2f = s2b * np.asarray(p["bt2"], np.float32) + sh2b

    def rows_c(vec):   # per-channel vector -> per-row (n, ch, t) column
        return np.tile(np.repeat(np.asarray(vec, np.float32), T), NB)

    vecs = np.zeros((3 * R, 8), np.float32)
    vecs[:, 0] = np.concatenate([rows_c(b2[k * C:(k + 1) * C]) for k in range(3)])
    vecs[:R, 1] = rows_c(b1[C:2 * C])
    vecs[:R, 2] = rows_c(s1a)
    vecs[:R, 3] = rows_c(sh1a)
    vecs[:R, 4] = rows_c(s2a)
    vecs[:R, 5] = rows_c(sh2a)
    vecs[:Ro, 6] = rows_c(bt1f)
    vecs[:Ro, 7] = rows_c(bt2f)

    wroute = np.concatenate([np.asarray(p["Wr"], np.float32).T,
                             np.asarray(p["br"], np.float32)[None, :]], axis=0)  # (C+1, E)
    wexp = np.asarray(p["Wexp"], np.float32)                                     # (E, V, V)

    packed = [kmix, ktcn, adj_ev, adj_ve, wroute, wexp, vecs]
    return [jnp.asarray(a, dtype=jnp.float32) for a in packed]


# ----------------------------------------------------------------------------
# Pallas kernel.  One grid step = NB samples; all contractions are single 2-D
# MXU matmuls (plus one NB-batched einsum for the per-sample conditional graph
# conv).  No broadcast weights, no zero-pad materialization, no Python loops.
# ----------------------------------------------------------------------------
def make_kernel(C, O, T, Kt, NB, V, VE, matmul_dtype=jnp.float32):
    R = NB * C * T
    Ro = NB * O * T
    f32 = jnp.float32
    prec = (jax.lax.Precision.HIGHEST if matmul_dtype == jnp.float32
            else jax.lax.Precision.DEFAULT)

    def mm(a, b):
        return jnp.dot(a.astype(matmul_dtype), b.astype(matmul_dtype),
                       precision=prec, preferred_element_type=f32)

    def bmm(a, b):   # leading-batch matmul (proven-safe einsum form)
        return jnp.einsum("bij,bjk->bik", a.astype(matmul_dtype), b.astype(matmul_dtype),
                          precision=prec, preferred_element_type=f32)

    def kernel(x_ref, e_ref, kmix_ref, ktcn_ref, adj_ev_ref, adj_ve_ref,
               wroute_ref, wexp_ref, vecs_ref, ox_ref, oe_ref):
        x = x_ref[...]                       # (R, V)   rows = (sample, channel, time)
        e = e_ref[...]                       # (R, VE)

        # ---- 1x1 channel mixes: single 2-D matmuls with block-diagonal weights ----
        k2 = kmix_ref[0:3 * R, :]            # conv2, branch-major output rows
        k1 = kmix_ref[3 * R:4 * R, :]        # conv1, only the consumed k=1 branch
        b2 = vecs_ref[:, 0:1]                # (3R, 1) per-row biases (pre-tiled)
        b1 = vecs_ref[0:R, 1:2]
        h2 = jnp.maximum(mm(k2, e) + b2, 0.0)     # (3R, VE)
        h1 = jnp.maximum(mm(k1, x) + b1, 0.0)     # (R, V)
        h2_0 = h2[0:R]
        h2_1 = h2[R:2 * R]
        h2_2 = h2[2 * R:3 * R]

        # ---- directed adjacency lifts: plain 2-D dots (shared constants) ----
        a0 = adj_ev_ref[0:VE, :]             # (VE, V)  == A[0, 1:]
        a2 = adj_ev_ref[VE:2 * VE, :]        # (VE, V)  == A[2, 1:]
        a1 = adj_ve_ref[:, 0:V]              # (V, V)   == A[1]
        src_oh = adj_ve_ref[:, V:V + VE]     # (V, VE)
        tgt_oh = adj_ve_ref[:, V + VE:V + 2 * VE]
        m0 = mm(h2_0, a0)                    # (R, V)
        m2 = mm(h2_2, a2)                    # (R, V)
        y1 = mm(h1, a1)                      # (R, V)

        # ---- routing, vectorized over the NB samples in this step ----
        x4 = x.reshape(NB, C, T, V)                          # leading-dim split (8-aligned)
        pooled = x4.mean(axis=3).mean(axis=2)                # (NB, C) adaptive avg pool
        wr = wroute_ref[0:C, :]                              # (C, E)
        br = wroute_ref[C:C + 1, :]                          # (1, E)
        logits = mm(pooled, wr) + br                         # (NB, E)
        r = pl.reciprocal(1.0 + jnp.exp(-logits), approx=True)   # sigmoid (EUP)
        # expert mix: cond[n] = sum_e r[n,e] * Wexp[e]   (broadcast-reduce; avoids a
        # lane-dim reshape of an (NB, V*V) matmul result)
        cond = jnp.sum(r[:, :, None, None] * wexp_ref[...][None], axis=1)   # (NB, V, V)

        # ---- conditional graph conv: NB-batched (C*T, V) @ (V, V) ----
        cpos = jnp.maximum(cond, 0.0)
        cneg = jnp.maximum(-cond, 0.0)
        y0 = bmm(m0.reshape(NB, C * T, V), cpos).reshape(R, V)
        y2 = bmm(m2.reshape(NB, C * T, V), cneg).reshape(R, V)

        x_sum = y0 + y1 + y2                                  # (R, V)
        e_sum = mm(y0, src_oh) + h2_1 + mm(y2, tgt_oh)        # (R, VE)

        # ---- tcn: pre-BN affine + ReLU, then (temporal conv + post-BN) as one
        #      banded block matmul per stream (no zero padding in-kernel) ----
        s1a = vecs_ref[0:R, 2:3]
        sh1a = vecs_ref[0:R, 3:4]
        s2a = vecs_ref[0:R, 4:5]
        sh2a = vecs_ref[0:R, 5:6]
        bt1 = vecs_ref[0:Ro, 6:7]
        bt2 = vecs_ref[0:Ro, 7:8]
        z1 = jnp.maximum(x_sum * s1a + sh1a, 0.0)
        z2 = jnp.maximum(e_sum * s2a + sh2a, 0.0)
        kt1 = ktcn_ref[0:Ro, :]
        kt2 = ktcn_ref[Ro:2 * Ro, :]
        t1 = mm(kt1, z1) + bt1                                # (Ro, V)
        t2 = mm(kt2, z2) + bt2                                # (Ro, VE)

        # residual is the identity (in_channels == out_channels, stride == 1)
        ox_ref[...] = jnp.maximum(t1 + x, 0.0)
        oe_ref[...] = jnp.maximum(t2 + e, 0.0)

    return kernel


def cond_st_gcn_forward(x, e, packed, C, O, T, Kt, V, VE, NB):
    """x: (N, C, T, V), e: (N, C, T, VE) -> (N, O, T, V), (N, O, T, VE)."""
    N = x.shape[0]
    G = N // NB
    R = NB * C * T
    Ro = NB * O * T

    # wrapper-side layout is a pure reshape: rows = (sample, channel, time)
    xs = x.reshape(G, R, V)
    es = e.reshape(G, R, VE)

    kernel = make_kernel(C, O, T, Kt, NB, V, VE)

    def const_spec(p):
        nd = p.ndim
        return pl.BlockSpec(tuple(p.shape), lambda g, _nd=nd: (0,) * _nd)

    in_specs = [
        pl.BlockSpec((None, R, V), lambda g: (g, 0, 0)),
        pl.BlockSpec((None, R, VE), lambda g: (g, 0, 0)),
    ] + [const_spec(p) for p in packed]
    out_specs = [
        pl.BlockSpec((None, Ro, V), lambda g: (g, 0, 0)),
        pl.BlockSpec((None, Ro, VE), lambda g: (g, 0, 0)),
    ]
    out_shape = [
        jax.ShapeDtypeStruct((G, Ro, V), jnp.float32),
        jax.ShapeDtypeStruct((G, Ro, VE), jnp.float32),
    ]
    ox, oe = pl.pallas_call(
        kernel,
        grid=(G,),
        in_specs=in_specs,
        out_specs=out_specs,
        out_shape=out_shape,
        compiler_params=pltpu.CompilerParams(
            dimension_semantics=("parallel",),
            vmem_limit_bytes=32 * 1024 * 1024,   # headroom under v7x's 64 MiB physical
        ),
    )(xs, es, *packed)

    # rows were (sample, channel, time): a pure reshape recovers (N, O, T, V)
    ox = ox.reshape(N, O, T, V)
    oe = oe.reshape(N, O, T, VE)
    return ox, oe


# ----------------------------------------------------------------------------
# Pure-JAX reference (NCHW) used as a correctness check
# ----------------------------------------------------------------------------
def reference_forward(x, e, p, A, src, tgt, stride=1, eps=1e-5):
    HI = jax.lax.Precision.HIGHEST
    N, C, T, V = x.shape
    A = jnp.asarray(A)
    relu = lambda a: jnp.maximum(a, 0.0)

    def bn(z, bnp):
        s = bnp["gamma"] / jnp.sqrt(bnp["var"] + eps)
        sh = bnp["beta"] - bnp["mean"] * s
        return z * s[None, :, None, None] + sh[None, :, None, None]

    def tconv(z, Wt, bt):
        O_, _, Kt = Wt.shape
        pad = (Kt - 1) // 2
        zp = jnp.pad(z, ((0, 0), (0, 0), (pad, pad), (0, 0)))
        T_out = (T + 2 * pad - Kt) // stride + 1
        out = jnp.zeros((N, O_, T_out, z.shape[-1]), jnp.float32)
        for dt in range(Kt):
            sl = zp[:, :, dt:dt + (T_out - 1) * stride + 1:stride, :]
            out = out + jnp.einsum("oc,nctv->notv", Wt[:, :, dt], sl, precision=HI)
        return out + bt[None, :, None, None]

    h1 = relu(jnp.einsum("kc,nctv->nktv", p["W1"], x, precision=HI)
              + p["b1"][None, :, None, None])
    h1 = h1.reshape(N, 3, C, T, V)
    h2 = relu(jnp.einsum("kc,nctv->nktv", p["W2"], e, precision=HI)
              + p["b2"][None, :, None, None])
    h2 = h2.reshape(N, 3, C, T, e.shape[-1])

    m0 = jnp.einsum("nctv,vw->nctw", h2[:, 0], A[0, 1:, :], precision=HI)
    m2 = jnp.einsum("nctv,vw->nctw", h2[:, 2], A[2, 1:, :], precision=HI)

    pooled = x.mean(axis=(2, 3))                                        # (N, C)
    logits = jnp.einsum("nc,ec->ne", pooled, p["Wr"], precision=HI) + p["br"][None, :]
    r = 1.0 / (1.0 + jnp.exp(-logits))
    cond = jnp.einsum("ne,evw->nvw", r, p["Wexp"], precision=HI)        # (N, V, V)

    y0 = jnp.einsum("nctv,nvw->nctw", m0, relu(cond), precision=HI)
    y1 = jnp.einsum("nctv,vw->nctw", h1[:, 1], A[1], precision=HI)
    y2 = jnp.einsum("nctv,nvw->nctw", m2, relu(-cond), precision=HI)

    x_sum = y0 + y1 + y2
    src_i, tgt_i = jnp.asarray(src), jnp.asarray(tgt)
    e_sum = y0[..., src_i] + h2[:, 1] + y2[..., tgt_i]

    tx = bn(tconv(relu(bn(x_sum, p["bn1a"])), p["Wt1"], p["bt1"]), p["bn1b"])
    te = bn(tconv(relu(bn(e_sum, p["bn2a"])), p["Wt2"], p["bt2"]), p["bn2b"])
    return relu(tx + x), relu(te + e)   # residual = identity (C_in == C_out, stride 1)


if __name__ == "__main__":
    N, C_in, C_out, T, Kt, stride, E = 4, 4, 4, 8, 3, 1, 16
    assert C_in == C_out and stride == 1  # identity-residual configuration
    A, src, tgt = build_graph()
    V, VE = A.shape[-1], len(src)          # 17 nodes, 16 edges

    key = jax.random.PRNGKey(0)
    kx, ke, kp = jax.random.split(key, 3)
    x = jax.random.normal(kx, (N, C_in, T, V), jnp.float32)
    e = jax.random.normal(ke, (N, C_in, T, VE), jnp.float32)

    params = init_params(kp, C_in, C_out, T, Kt, E, V)
    NB = choose_nb(N, C_in, C_out, T, V, VE)
    packed = pack_params(params, A, src, tgt, C_in, C_out, Kt, V, VE, NB, T)

    ox, oe = cond_st_gcn_forward(x, e, packed, C_in, C_out, T, Kt, V, VE, NB)
    jax.block_until_ready((ox, oe))

    rx, re = reference_forward(x, e, params, A, src, tgt, stride)
    np.testing.assert_allclose(np.asarray(ox), np.asarray(rx), rtol=2e-3, atol=2e-3)
    np.testing.assert_allclose(np.asarray(oe), np.asarray(re), rtol=2e-3, atol=2e-3)
    print("KERNEL_OK")
</pallas_src>

<mosaic_0001>
module attributes {stable_mosaic.version = 11 : i64} {
  func.func @kernel(%arg0: i32, %arg1: memref<1x32x17xf32, #tpu.memory_space<vmem>>, %arg2: memref<1x32x16xf32, #tpu.memory_space<vmem>>, %arg3: memref<128x32xf32, #tpu.memory_space<vmem>>, %arg4: memref<64x32xf32, #tpu.memory_space<vmem>>, %arg5: memref<32x17xf32, #tpu.memory_space<vmem>>, %arg6: memref<17x49xf32, #tpu.memory_space<vmem>>, %arg7: memref<5x16xf32, #tpu.memory_space<vmem>>, %arg8: memref<16x17x17xf32, #tpu.memory_space<vmem>>, %arg9: memref<96x8xf32, #tpu.memory_space<vmem>>, %arg10: memref<1x32x17xf32, #tpu.memory_space<vmem>>, %arg11: memref<1x32x16xf32, #tpu.memory_space<vmem>>) attributes {dimension_semantics = [#tpu.dimension_semantics<parallel>], iteration_bounds = array<i64: 4>, scalar_prefetch = 0 : i64, scratch_operands = 0 : i64, tpu.core_type = #tpu.core_type<tc>, window_params = [{transform_indices = @transform_0, window_bounds = array<i64: 1, 32, 17>}, {transform_indices = @transform_1, window_bounds = array<i64: 1, 32, 16>}, {pipeline_mode = #tpu.pipeline_mode<synchronous>, transform_indices = @transform_2, window_bounds = array<i64: 128, 32>}, {pipeline_mode = #tpu.pipeline_mode<synchronous>, transform_indices = @transform_3, window_bounds = array<i64: 64, 32>}, {pipeline_mode = #tpu.pipeline_mode<synchronous>, transform_indices = @transform_4, window_bounds = array<i64: 32, 17>}, {pipeline_mode = #tpu.pipeline_mode<synchronous>, transform_indices = @transform_5, window_bounds = array<i64: 17, 49>}, {pipeline_mode = #tpu.pipeline_mode<synchronous>, transform_indices = @transform_6, window_bounds = array<i64: 5, 16>}, {pipeline_mode = #tpu.pipeline_mode<synchronous>, transform_indices = @transform_7, window_bounds = array<i64: 16, 17, 17>}, {pipeline_mode = #tpu.pipeline_mode<synchronous>, transform_indices = @transform_8, window_bounds = array<i64: 96, 8>}, {transform_indices = @transform_9, window_bounds = array<i64: 1, 32, 17>}, {transform_indices = @transform_10, window_bounds = array<i64: 1, 32, 16>}]} {
    %c0 = arith.constant 0 : index
    %c0_0 = arith.constant 0 : index
    %c0_1 = arith.constant 0 : index
    %0 = vector.load %arg1[%c0, %c0_0, %c0_1] : memref<1x32x17xf32, #tpu.memory_space<vmem>>, vector<1x32x17xf32>
    %1 = vector.shape_cast %0 : vector<1x32x17xf32> to vector<32x17xf32>
    %c0_2 = arith.constant 0 : index
    %c0_3 = arith.constant 0 : index
    %c0_4 = arith.constant 0 : index
    %2 = vector.load %arg2[%c0_2, %c0_3, %c0_4] : memref<1x32x16xf32, #tpu.memory_space<vmem>>, vector<1x32x16xf32>
    %3 = vector.shape_cast %2 : vector<1x32x16xf32> to vector<32x16xf32>
    %c0_5 = arith.constant 0 : index
    %c0_6 = arith.constant 0 : index
    %4 = vector.load %arg3[%c0_5, %c0_6] : memref<128x32xf32, #tpu.memory_space<vmem>>, vector<96x32xf32>
    %c96 = arith.constant 96 : index
    %c0_7 = arith.constant 0 : index
    %5 = vector.load %arg3[%c96, %c0_7] : memref<128x32xf32, #tpu.memory_space<vmem>>, vector<32x32xf32>
    %c0_8 = arith.constant 0 : index
    %c0_9 = arith.constant 0 : index
    %6 = vector.load %arg9[%c0_8, %c0_9] : memref<96x8xf32, #tpu.memory_space<vmem>>, vector<96x1xf32>
    %c0_10 = arith.constant 0 : index
    %c1 = arith.constant 1 : index
    %7 = vector.load %arg9[%c0_10, %c1] : memref<96x8xf32, #tpu.memory_space<vmem>>, vector<32x1xf32>
    %cst = arith.constant dense<0.000000e+00> : vector<96x16xf32>
    %8 = tpu.matmul %4, %3, %cst {dimension_numbers = #tpu.dot_dimension_numbers<[1], [0], [0], [1], [0, 0, 1, 1], [], []>, precision = #tpu.contract_precision<fp32>} : vector<96x32xf32>, vector<32x16xf32>, vector<96x16xf32> -> vector<96x16xf32>
    %9 = vector.broadcast %6 : vector<96x1xf32> to vector<96x16xf32>
    %10 = arith.addf %8, %9 : vector<96x16xf32>
    %cst_11 = arith.constant 0.000000e+00 : f32
    %11 = vector.broadcast %cst_11 : f32 to vector<96x16xf32>
    %12 = arith.maximumf %10, %11 : vector<96x16xf32>
    %cst_12 = arith.constant dense<0.000000e+00> : vector<32x17xf32>
    %13 = tpu.matmul %5, %1, %cst_12 {dimension_numbers = #tpu.dot_dimension_numbers<[1], [0], [0], [1], [0, 0, 1, 1], [], []>, precision = #tpu.contract_precision<fp32>} : vector<32x32xf32>, vector<32x17xf32>, vector<32x17xf32> -> vector<32x17xf32>
    %14 = vector.broadcast %7 : vector<32x1xf32> to vector<32x17xf32>
    %15 = arith.addf %13, %14 : vector<32x17xf32>
    %cst_13 = arith.constant 0.000000e+00 : f32
    %16 = vector.broadcast %cst_13 : f32 to vector<32x17xf32>
    %17 = arith.maximumf %15, %16 : vector<32x17xf32>
    %18 = vector.extract_strided_slice %12 {offsets = [0, 0], sizes = [32, 16], strides = [1, 1]} : vector<96x16xf32> to vector<32x16xf32>
    %19 = vector.extract_strided_slice %12 {offsets = [32, 0], sizes = [32, 16], strides = [1, 1]} : vector<96x16xf32> to vector<32x16xf32>
    %20 = vector.extract_strided_slice %12 {offsets = [64, 0], sizes = [32, 16], strides = [1, 1]} : vector<96x16xf32> to vector<32x16xf32>
    %c0_14 = arith.constant 0 : index
    %c0_15 = arith.constant 0 : index
    %21 = vector.load %arg5[%c0_14, %c0_15] : memref<32x17xf32, #tpu.memory_space<vmem>>, vector<16x17xf32>
    %c16 = arith.constant 16 : index
    %c0_16 = arith.constant 0 : index
    %22 = vector.load %arg5[%c16, %c0_16] : memref<32x17xf32, #tpu.memory_space<vmem>>, vector<16x17xf32>
    %c0_17 = arith.constant 0 : index
    %c0_18 = arith.constant 0 : index
    %23 = vector.load %arg6[%c0_17, %c0_18] : memref<17x49xf32, #tpu.memory_space<vmem>>, vector<17x17xf32>
    %c0_19 = arith.constant 0 : index
    %c17 = arith.constant 17 : index
    %24 = vector.load %arg6[%c0_19, %c17] : memref<17x49xf32, #tpu.memory_space<vmem>>, vector<17x16xf32>
    %c0_20 = arith.constant 0 : index
    %c33 = arith.constant 33 : index
    %25 = vector.load %arg6[%c0_20, %c33] : memref<17x49xf32, #tpu.memory_space<vmem>>, vector<17x16xf32>
    %cst_21 = arith.constant dense<0.000000e+00> : vector<32x17xf32>
    %26 = tpu.matmul %18, %21, %cst_21 {dimension_numbers = #tpu.dot_dimension_numbers<[1], [0], [0], [1], [0, 0, 1, 1], [], []>, precision = #tpu.contract_precision<fp32>} : vector<32x16xf32>, vector<16x17xf32>, vector<32x17xf32> -> vector<32x17xf32>
    %cst_22 = arith.constant dense<0.000000e+00> : vector<32x17xf32>
    %27 = tpu.matmul %20, %22, %cst_22 {dimension_numbers = #tpu.dot_dimension_numbers<[1], [0], [0], [1], [0, 0, 1, 1], [], []>, precision = #tpu.contract_precision<fp32>} : vector<32x16xf32>, vector<16x17xf32>, vector<32x17xf32> -> vector<32x17xf32>
    %cst_23 = arith.constant dense<0.000000e+00> : vector<32x17xf32>
    %28 = tpu.matmul %17, %23, %cst_23 {dimension_numbers = #tpu.dot_dimension_numbers<[1], [0], [0], [1], [0, 0, 1, 1], [], []>, precision = #tpu.contract_precision<fp32>} : vector<32x17xf32>, vector<17x17xf32>, vector<32x17xf32> -> vector<32x17xf32>
    %29 = vector.shape_cast %1 : vector<32x17xf32> to vector<1x4x8x17xf32>
    %cst_24 = arith.constant dense<0.000000e+00> : vector<1x4x8xf32>
    %30 = vector.multi_reduction <add>, %29, %cst_24 [3] : vector<1x4x8x17xf32> to vector<1x4x8xf32>
    %cst_25 = arith.constant 1.700000e+01 : f32
    %31 = vector.broadcast %cst_25 : f32 to vector<1x4x8xf32>
    %32 = arith.divf %30, %31 : vector<1x4x8xf32>
    %cst_26 = arith.constant dense<0.000000e+00> : vector<1x4xf32>
    %33 = vector.multi_reduction <add>, %32, %cst_26 [2] : vector<1x4x8xf32> to vector<1x4xf32>
    %cst_27 = arith.constant 8.000000e+00 : f32
    %34 = vector.broadcast %cst_27 : f32 to vector<1x4xf32>
    %35 = arith.divf %33, %34 : vector<1x4xf32>
    %c0_28 = arith.constant 0 : index
    %c0_29 = arith.constant 0 : index
    %36 = vector.load %arg7[%c0_28, %c0_29] : memref<5x16xf32, #tpu.memory_space<vmem>>, vector<4x16xf32>
    %c4 = arith.constant 4 : index
    %c0_30 = arith.constant 0 : index
    %37 = vector.load %arg7[%c4, %c0_30] : memref<5x16xf32, #tpu.memory_space<vmem>>, vector<1x16xf32>
    %cst_31 = arith.constant dense<0.000000e+00> : vector<1x16xf32>
    %38 = tpu.matmul %35, %36, %cst_31 {dimension_numbers = #tpu.dot_dimension_numbers<[1], [0], [0], [1], [0, 0, 1, 1], [], []>, precision = #tpu.contract_precision<fp32>} : vector<1x4xf32>, vector<4x16xf32>, vector<1x16xf32> -> vector<1x16xf32>
    %39 = arith.addf %38, %37 : vector<1x16xf32>
    %cst_32 = arith.constant 0.000000e+00 : f32
    %40 = vector.broadcast %cst_32 : f32 to vector<1x16xf32>
    %41 = arith.subf %40, %39 : vector<1x16xf32>
    %42 = math.exp %41 : vector<1x16xf32>
    %cst_33 = arith.constant 1.000000e+00 : f32
    %43 = vector.broadcast %cst_33 : f32 to vector<1x16xf32>
    %44 = arith.addf %43, %42 : vector<1x16xf32>
    %45 = tpu.reciprocal %44 {approx = true} : vector<1x16xf32> -> vector<1x16xf32>
    %46 = vector.shape_cast %45 : vector<1x16xf32> to vector<1x16x1x1xf32>
    %c0_34 = arith.constant 0 : index
    %c0_35 = arith.constant 0 : index
    %c0_36 = arith.constant 0 : index
    %47 = vector.load %arg8[%c0_34, %c0_35, %c0_36] : memref<16x17x17xf32, #tpu.memory_space<vmem>>, vector<16x17x17xf32>
    %48 = vector.shape_cast %47 : vector<16x17x17xf32> to vector<1x16x17x17xf32>
    %49 = vector.broadcast %46 : vector<1x16x1x1xf32> to vector<1x16x17x17xf32>
    %50 = arith.mulf %49, %48 : vector<1x16x17x17xf32>
    %cst_37 = arith.constant dense<0.000000e+00> : vector<1x17x17xf32>
    %51 = vector.multi_reduction <add>, %50, %cst_37 [1] : vector<1x16x17x17xf32> to vector<1x17x17xf32>
    %cst_38 = arith.constant 0.000000e+00 : f32
    %52 = vector.broadcast %cst_38 : f32 to vector<1x17x17xf32>
    %53 = arith.maximumf %51, %52 : vector<1x17x17xf32>
    %cst_39 = arith.constant 0.000000e+00 : f32
    %54 = vector.broadcast %cst_39 : f32 to vector<1x17x17xf32>
    %55 = arith.subf %54, %51 : vector<1x17x17xf32>
    %cst_40 = arith.constant 0.000000e+00 : f32
    %56 = vector.broadcast %cst_40 : f32 to vector<1x17x17xf32>
    %57 = arith.maximumf %55, %56 : vector<1x17x17xf32>
    %58 = vector.shape_cast %26 : vector<32x17xf32> to vector<1x32x17xf32>
    "tpu.trace_start"() <{level = 10 : i32, message = "bij,bjk->bik"}> : () -> ()
    %cst_41 = arith.constant dense<0.000000e+00> : vector<1x32x17xf32>
    %59 = tpu.matmul %58, %53, %cst_41 {dimension_numbers = #tpu.dot_dimension_numbers<[2], [1], [1], [2], [0, 0, 0, 1, 1, 2], [0], [0]>, precision = #tpu.contract_precision<fp32>} : vector<1x32x17xf32>, vector<1x17x17xf32>, vector<1x32x17xf32> -> vector<1x32x17xf32>
    "tpu.trace_stop"() : () -> ()
    %60 = vector.shape_cast %59 : vector<1x32x17xf32> to vector<32x17xf32>
    %61 = vector.shape_cast %27 : vector<32x17xf32> to vector<1x32x17xf32>
    "tpu.trace_start"() <{level = 10 : i32, message = "bij,bjk->bik"}> : () -> ()
    %cst_42 = arith.constant dense<0.000000e+00> : vector<1x32x17xf32>
    %62 = tpu.matmul %61, %57, %cst_42 {dimension_numbers = #tpu.dot_dimension_numbers<[2], [1], [1], [2], [0, 0, 0, 1, 1, 2], [0], [0]>, precision = #tpu.contract_precision<fp32>} : vector<1x32x17xf32>, vector<1x17x17xf32>, vector<1x32x17xf32> -> vector<1x32x17xf32>
    "tpu.trace_stop"() : () -> ()
    %63 = vector.shape_cast %62 : vector<1x32x17xf32> to vector<32x17xf32>
    %64 = arith.addf %60, %28 : vector<32x17xf32>
    %65 = arith.addf %64, %63 : vector<32x17xf32>
    %cst_43 = arith.constant dense<0.000000e+00> : vector<32x16xf32>
    %66 = tpu.matmul %60, %24, %cst_43 {dimension_numbers = #tpu.dot_dimension_numbers<[1], [0], [0], [1], [0, 0, 1, 1], [], []>, precision = #tpu.contract_precision<fp32>} : vector<32x17xf32>, vector<17x16xf32>, vector<32x16xf32> -> vector<32x16xf32>
    %67 = arith.addf %66, %19 : vector<32x16xf32>
    %cst_44 = arith.constant dense<0.000000e+00> : vector<32x16xf32>
    %68 = tpu.matmul %63, %25, %cst_44 {dimension_numbers = #tpu.dot_dimension_numbers<[1], [0], [0], [1], [0, 0, 1, 1], [], []>, precision = #tpu.contract_precision<fp32>} : vector<32x17xf32>, vector<17x16xf32>, vector<32x16xf32> -> vector<32x16xf32>
    %69 = arith.addf %67, %68 : vector<32x16xf32>
    %c0_45 = arith.constant 0 : index
    %c2 = arith.constant 2 : index
    %70 = vector.load %arg9[%c0_45, %c2] : memref<96x8xf32, #tpu.memory_space<vmem>>, vector<32x1xf32>
    %c0_46 = arith.constant 0 : index
    %c3 = arith.constant 3 : index
    %71 = vector.load %arg9[%c0_46, %c3] : memref<96x8xf32, #tpu.memory_space<vmem>>, vector<32x1xf32>
    %c0_47 = arith.constant 0 : index
    %c4_48 = arith.constant 4 : index
    %72 = vector.load %arg9[%c0_47, %c4_48] : memref<96x8xf32, #tpu.memory_space<vmem>>, vector<32x1xf32>
    %c0_49 = arith.constant 0 : index
    %c5 = arith.constant 5 : index
    %73 = vector.load %arg9[%c0_49, %c5] : memref<96x8xf32, #tpu.memory_space<vmem>>, vector<32x1xf32>
    %c0_50 = arith.constant 0 : index
    %c6 = arith.constant 6 : index
    %74 = vector.load %arg9[%c0_50, %c6] : memref<96x8xf32, #tpu.memory_space<vmem>>, vector<32x1xf32>
    %c0_51 = arith.constant 0 : index
    %c7 = arith.constant 7 : index
    %75 = vector.load %arg9[%c0_51, %c7] : memref<96x8xf32, #tpu.memory_space<vmem>>, vector<32x1xf32>
    %76 = vector.broadcast %70 : vector<32x1xf32> to vector<32x17xf32>
    %77 = arith.mulf %65, %76 : vector<32x17xf32>
    %78 = vector.broadcast %71 : vector<32x1xf32> to vector<32x17xf32>
    %79 = arith.addf %77, %78 : vector<32x17xf32>
    %cst_52 = arith.constant 0.000000e+00 : f32
    %80 = vector.broadcast %cst_52 : f32 to vector<32x17xf32>
    %81 = arith.maximumf %79, %80 : vector<32x17xf32>
    %82 = vector.broadcast %72 : vector<32x1xf32> to vector<32x16xf32>
    %83 = arith.mulf %69, %82 : vector<32x16xf32>
    %84 = vector.broadcast %73 : vector<32x1xf32> to vector<32x16xf32>
    %85 = arith.addf %83, %84 : vector<32x16xf32>
    %cst_53 = arith.constant 0.000000e+00 : f32
    %86 = vector.broadcast %cst_53 : f32 to vector<32x16xf32>
    %87 = arith.maximumf %85, %86 : vector<32x16xf32>
    %c0_54 = arith.constant 0 : index
    %c0_55 = arith.constant 0 : index
    %88 = vector.load %arg4[%c0_54, %c0_55] : memref<64x32xf32, #tpu.memory_space<vmem>>, vector<32x32xf32>
    %c32 = arith.constant 32 : index
    %c0_56 = arith.constant 0 : index
    %89 = vector.load %arg4[%c32, %c0_56] : memref<64x32xf32, #tpu.memory_space<vmem>>, vector<32x32xf32>
    %cst_57 = arith.constant dense<0.000000e+00> : vector<32x17xf32>
    %90 = tpu.matmul %88, %81, %cst_57 {dimension_numbers = #tpu.dot_dimension_numbers<[1], [0], [0], [1], [0, 0, 1, 1], [], []>, precision = #tpu.contract_precision<fp32>} : vector<32x32xf32>, vector<32x17xf32>, vector<32x17xf32> -> vector<32x17xf32>
    %91 = vector.broadcast %74 : vector<32x1xf32> to vector<32x17xf32>
    %92 = arith.addf %90, %91 : vector<32x17xf32>
    %cst_58 = arith.constant dense<0.000000e+00> : vector<32x16xf32>
    %93 = tpu.matmul %89, %87, %cst_58 {dimension_numbers = #tpu.dot_dimension_numbers<[1], [0], [0], [1], [0, 0, 1, 1], [], []>, precision = #tpu.contract_precision<fp32>} : vector<32x32xf32>, vector<32x16xf32>, vector<32x16xf32> -> vector<32x16xf32>
    %94 = vector.broadcast %75 : vector<32x1xf32> to vector<32x16xf32>
    %95 = arith.addf %93, %94 : vector<32x16xf32>
    %96 = arith.addf %92, %1 : vector<32x17xf32>
    %cst_59 = arith.constant 0.000000e+00 : f32
    %97 = vector.broadcast %cst_59 : f32 to vector<32x17xf32>
    %98 = arith.maximumf %96, %97 : vector<32x17xf32>
    %c0_60 = arith.constant 0 : index
    %c0_61 = arith.constant 0 : index
    %c0_62 = arith.constant 0 : index
    %99 = vector.load %arg10[%c0_60, %c0_61, %c0_62] : memref<1x32x17xf32, #tpu.memory_space<vmem>>, vector<1x32x17xf32>
    %100 = vector.shape_cast %99 : vector<1x32x17xf32> to vector<32x17xf32>
    %101 = vector.shape_cast %98 : vector<32x17xf32> to vector<1x32x17xf32>
    tpu.vector_store %arg10[%c0_60, %c0_61, %c0_62], %101 {strides = array<i32>} : memref<1x32x17xf32, #tpu.memory_space<vmem>>, vector<1x32x17xf32>,
    %102 = arith.addf %95, %3 : vector<32x16xf32>
    %cst_63 = arith.constant 0.000000e+00 : f32
    %103 = vector.broadcast %cst_63 : f32 to vector<32x16xf32>
    %104 = arith.maximumf %102, %103 : vector<32x16xf32>
    %c0_64 = arith.constant 0 : index
    %c0_65 = arith.constant 0 : index
    %c0_66 = arith.constant 0 : index
    %105 = vector.load %arg11[%c0_64, %c0_65, %c0_66] : memref<1x32x16xf32, #tpu.memory_space<vmem>>, vector<1x32x16xf32>
    %106 = vector.shape_cast %105 : vector<1x32x16xf32> to vector<32x16xf32>
    %107 = vector.shape_cast %104 : vector<32x16xf32> to vector<1x32x16xf32>
    tpu.vector_store %arg11[%c0_64, %c0_65, %c0_66], %107 {strides = array<i32>} : memref<1x32x16xf32, #tpu.memory_space<vmem>>, vector<1x32x16xf32>,
    return
  }
  func.func @transform_0(%arg0: i32) -> (i32, i32, i32) {
    %c0_i32 = arith.constant 0 : i32
    %c0_i32_0 = arith.constant 0 : i32
    %c0_i32_1 = arith.constant 0 : i32
    return %arg0, %c0_i32, %c0_i32_0 : i32, i32, i32
  }
  func.func @transform_1(%arg0: i32) -> (i32, i32, i32) {
    %c0_i32 = arith.constant 0 : i32
    %c0_i32_0 = arith.constant 0 : i32
    %c0_i32_1 = arith.constant 0 : i32
    return %arg0, %c0_i32, %c0_i32_0 : i32, i32, i32
  }
  func.func @transform_2(%arg0: i32) -> (i32, i32) {
    %c0_i32 = arith.constant 0 : i32
    %c0_i32_0 = arith.constant 0 : i32
    %c0_i32_1 = arith.constant 0 : i32
    return %c0_i32, %c0_i32_0 : i32, i32
  }
  func.func @transform_3(%arg0: i32) -> (i32, i32) {
    %c0_i32 = arith.constant 0 : i32
    %c0_i32_0 = arith.constant 0 : i32
    %c0_i32_1 = arith.constant 0 : i32
    return %c0_i32, %c0_i32_0 : i32, i32
  }
  func.func @transform_4(%arg0: i32) -> (i32, i32) {
    %c0_i32 = arith.constant 0 : i32
    %c0_i32_0 = arith.constant 0 : i32
    %c0_i32_1 = arith.constant 0 : i32
    return %c0_i32, %c0_i32_0 : i32, i32
  }
  func.func @transform_5(%arg0: i32) -> (i32, i32) {
    %c0_i32 = arith.constant 0 : i32
    %c0_i32_0 = arith.constant 0 : i32
    %c0_i32_1 = arith.constant 0 : i32
    return %c0_i32, %c0_i32_0 : i32, i32
  }
  func.func @transform_6(%arg0: i32) -> (i32, i32) {
    %c0_i32 = arith.constant 0 : i32
    %c0_i32_0 = arith.constant 0 : i32
    %c0_i32_1 = arith.constant 0 : i32
    return %c0_i32, %c0_i32_0 : i32, i32
  }
  func.func @transform_7(%arg0: i32) -> (i32, i32, i32) {
    %c0_i32 = arith.constant 0 : i32
    %c0_i32_0 = arith.constant 0 : i32
    %c0_i32_1 = arith.constant 0 : i32
    %c0_i32_2 = arith.constant 0 : i32
    return %c0_i32, %c0_i32_0, %c0_i32_1 : i32, i32, i32
  }
  func.func @transform_8(%arg0: i32) -> (i32, i32) {
    %c0_i32 = arith.constant 0 : i32
    %c0_i32_0 = arith.constant 0 : i32
    %c0_i32_1 = arith.constant 0 : i32
    return %c0_i32, %c0_i32_0 : i32, i32
  }
  func.func @transform_9(%arg0: i32) -> (i32, i32, i32) {
    %c0_i32 = arith.constant 0 : i32
    %c0_i32_0 = arith.constant 0 : i32
    %c0_i32_1 = arith.constant 0 : i32
    return %arg0, %c0_i32, %c0_i32_0 : i32, i32, i32
  }
  func.func @transform_10(%arg0: i32) -> (i32, i32, i32) {
    %c0_i32 = arith.constant 0 : i32
    %c0_i32_0 = arith.constant 0 : i32
    %c0_i32_1 = arith.constant 0 : i32
    return %arg0, %c0_i32, %c0_i32_0 : i32, i32, i32
  }
}

</mosaic_0001>

<bundles_post_ra>
// kernel: tpu_custom_call.1
= control target key start
LH: loop header
LB: loop body
LE: loop exit
PB: predicated region body
PF: predicated region fallthrough
CT: control target
= control target key end

     0   :  { %s4789_s13 = smov 0   ;;  %s6611_s0 = inlined_call_operand.vmem [shape: f32[4,32,17], index: 0, kind: input, shape index: {}]   ;;  %s6612_s1 = inlined_call_operand.vmem [shape: f32[4,32,16], index: 1, kind: input, shape index: {}]   ;;  %s6613_s2 = inlined_call_operand.vmem [shape: f32[128,32], index: 2, kind: input, shape index: {}]   ;;  %s6614_s3 = inlined_call_operand.vmem [shape: f32[64,32], index: 3, kind: input, shape index: {}]   ;;  %s6615_s4 = inlined_call_operand.vmem [shape: f32[32,17], index: 4, kind: input, shape index: {}]   ;;  %s6616_s5 = inlined_call_operand.vmem [shape: f32[17,49], index: 5, kind: input, shape index: {}]   ;;  %s6617_s6 = inlined_call_operand.vmem [shape: f32[5,16], index: 6, kind: input, shape index: {}]   ;;  %s6618_s7 = inlined_call_operand.vmem [shape: f32[16,17,17], index: 7, kind: input, shape index: {}]   ;;  %s6619_s8 = inlined_call_operand.vmem [shape: f32[96,8], index: 8, kind: input, shape index: {}]   ;;  %s6620_s9 = inlined_call_operand.vmem [shape: f32[4,32,17], index: 9, kind: output, shape index: {0}]   ;;  %s6621_s10 = inlined_call_operand.vmem [shape: f32[4,32,16], index: 10, kind: output, shape index: {1}]  }
   0x1 LB: > { %s4622_s14 = sadd.s32 4294967295, %s4720_s13   ;;  %p4626_p0 = scmp.ge.s32.totalorder %s4720_s13, 1  ;;  %s4720_s13 = sphi %s4789_s13, %s21_s13  }
   0x2   : > { %p325_p1 = scmp.lt.s32.totalorder %s4720_s13, 5 }
   0x4   : > { %p326_p2 = pnand %p4626_p0, %p325_p1 }
   0x6   : > { %329 = sbr.rel (%p326_p2) target bundleno = 1378 (0x562), region = 56 }
   0xb   : > { %v4800_v0 = vld [vmem:[%s6619_s8] sm:$0xff]  ;;  %v4805_v1 = vld [vmem:[%s6619_s8 + $0x10] sm:$0xff]  ;;  %p373_p3 = scmp.lt.s32.totalorder %s4622_s14, 3  ;;  %vm489_vm0 = vcmask 261120   ;;  %v6624_v2 = vmov 0   ;;  %v402_v6 = vld [vmem:[%s6613_s2 + $0x8] sm:$0xff] }
   0xc   : > { %4661 = vset.pattern.permute.xlu0 %v6624_v2  ;;  %4662 = vset.pattern.permute.xlu1 %v6624_v2  ;;  %v425_v3 = vld [vmem:[%s6619_s8 + $0x40] sm:$0xff]  ;;  %v494_v8 = vsel %vm489_vm0, %v402_v6, 0  ;;  %v403_v10 = vld [vmem:[%s6613_s2 + $0x10] sm:$0xff]  ;;  %v4847_v16 = vld [vmem:[%s6619_s8 + $0x8] sm:$0xff]  ;;  %vm1910_vm1 = vcmask 138240   ;;  %s4724_s30 = smov 111  }
   0xd   : > { %431 = vperm.xlu0 %4661, %v4800_v0   ;;  %441 = vperm.xlu1 %4662, %v4805_v1   ;;  %s6684_s14 = smov (!%p373_p3, %s4622_s14), 3  ;;  %v401_v4 = vld [vmem:[%s6613_s2] sm:$0xff]  ;;  %v4833_v9 = vand.u32 4294901760, %v494_v8  ;;  %v4852_v17 = vld [vmem:[%s6619_s8 + $0x18] sm:$0xff]  ;;  %v426_v24 = vld [vmem:[%s6619_s8 + $0x48] sm:$0xff]  ;;  %v497_v28 = vsel %vm489_vm0, %v403_v10, 0 }
   0xe   : > { %4663 = vset.pattern.permute.xlu2 %v6624_v2  ;;  %v491_v5 = vsel %vm489_vm0, %v401_v4, 0  ;;  %s4822_s25 = sshll.u32 %s6684_s14, 5  ;;  %v4879_v37 = vand.u32 4294901760, %v497_v28  ;;  %v404_v41 = vld [vmem:[%s6613_s2 + $0x18] sm:$0xff]  ;;  %v427_v43 = vld [vmem:[%s6619_s8 + $0x50] sm:$0xff]  ;;  %v405_v55 = vld [vmem:[%s6613_s2 + $0x20] sm:$0xff] }
   0xf   : > { %471 = vperm.xlu2 %4663, %v425_v3   ;;  %v4824_v7 = vand.u32 4294901760, %v491_v5  ;;  %s4831_s28 = scalar_lea.vmem %s6612_s1, %s4822_s25  ;;  %v4862_v23 = vsub.f32 %v494_v8, %v4833_v9  ;;  %v428_v44 = vld [vmem:[%s6619_s8 + $0x58] sm:$0xff]  ;;  %v500_v50 = vsel %vm489_vm0, %v404_v41, 0  ;;  %v503_v58 = vsel %vm489_vm0, %v405_v55, 0  ;;  %v406_v62 = vld [vmem:[%s6613_s2 + $0x28] sm:$0xff]  ;;  %v407_v10 = vld [vmem:[%s6613_s2 + $0x30] sm:$0xff]  ;;  %s4930_s15 = scalar_lea.vmem %s6611_s0, %s4822_s25 }
  0x10   : > { %v400_v11 = vld [vmem:[%s4831_s28 + $0x18] sm:$0xff]  ;;  %v399_v12 = vld [vmem:[%s4831_s28 + $0x10] sm:$0xff]  ;;  %v398_v13 = vld [vmem:[%s4831_s28 + $0x8] sm:$0xff]  ;;  %v563_v48 = vsub.f32 %v497_v28, %v4879_v37  ;;  %v4897_v54 = vand.u32 4294901760, %v500_v50  ;;  %v4908_v61 = vand.u32 4294901760, %v503_v58  ;;  %v506_v4 = vsel %vm489_vm0, %v406_v62, 0  ;;  %s6595_s26 = scalar_lea.vmem %s6621_s10, %s4822_s25 }
  0x11   : > { %v547_v14 = vsub.f32 %v491_v5, %v4824_v7  ;;  %v4842_v15 = vand.u32 4294901760, %v400_v11  ;;  %v4854_v18 = vand.u32 4294901760, %v399_v12  ;;  %v4856_v19 = vand.u32 4294901760, %v398_v13  ;;  %v397_v20 = vld [vmem:[%s4831_s28] sm:$0xff]  ;;  %s4726_s21 = smov 95  }
  0x12   : > { %v4859_v21 = vand.u32 4294901760, %v397_v20  ;;  %v556_v36 = vand.u32 4294901760, %v4862_v23  ;;  %v564_v53 = vand.u32 4294901760, %v563_v48  ;;  %v571_v57 = vsub.f32 %v500_v50, %v4897_v54  ;;  %v411_v50 = vld [vmem:[%s6613_s2 + $0x50] sm:$0xff] }
  0x13   : > { %v548_v22 = vand.u32 4294901760, %v547_v14  ;;  %539 = vmatpush.msra.mxu0 %v4842_v15  ;;  %v656_v25 = vsub.f32 %v400_v11, %v4842_v15  ;;  %v662_v26 = vsub.f32 %v399_v12, %v4854_v18  ;;  %826 = vmatpush.msra.mxu3 %v4842_v15  ;;  %v668_v27 = vsub.f32 %v398_v13, %v4856_v19 }
  0x14   : > { %v674_v30 = vsub.f32 %v397_v20, %v4859_v21  ;;  %v557_v47 = vsub.f32 %v4862_v23, %v556_v36  ;;  %v565_v56 = vsub.f32 %v563_v48, %v564_v53  ;;  %v572_v60 = vand.u32 4294901760, %v571_v57 }
  0x15   : > { %436 = vperm.xlu0 %4661, %v4847_v16   ;;  %446 = vperm.xlu1 %4662, %v4852_v17   ;;  %v549_v29 = vsub.f32 %v547_v14, %v548_v22  ;;  %v657_v31 = vand.u32 4294901760, %v656_v25  ;;  %v663_v32 = vand.u32 4294901760, %v662_v26  ;;  %v669_v33 = vand.u32 4294901760, %v668_v27 }
  0x16   : > { %541 = vmatpush.msra.mxu0 %v4854_v18  ;;  %742 = vmatpush.msra.mxu2 %v656_v25  ;;  %v675_v35 = vand.u32 4294901760, %v674_v30  ;;  %v558_v52 = vand.u32 4294901760, %v557_v47  ;;  %v566_v59 = vand.u32 4294901760, %v565_v56  ;;  %v573_v63 = vsub.f32 %v571_v57, %v572_v60 }
  0x17   : > { %476 = vperm.xlu2 %4663, %v426_v24   ;;  %v550_v34 = vand.u32 4294901760, %v549_v29  ;;  %828 = vmatpush.msra.mxu3 %v4854_v18  ;;  %v658_v38 = vsub.f32 %v656_v25, %v657_v31  ;;  %v664_v39 = vsub.f32 %v662_v26, %v663_v32  ;;  %v670_v40 = vsub.f32 %v668_v27, %v669_v33  ;;  %v394_v29 = vld [vmem:[%s4930_s15 + $0x8] sm:$0xff] }
  0x18   : > { %543 = vmatpush.msra.mxu0 %v4856_v19  ;;  %745 = vmatpush.msra.mxu2 %v662_v26  ;;  %v676_v46 = vsub.f32 %v674_v30, %v675_v35  ;;  %v579_v3 = vsub.f32 %v503_v58, %v4908_v61  ;;  %v574_v5 = vand.u32 4294901760, %v573_v63  ;;  %v4918_v8 = vand.u32 4294901760, %v506_v4 }
  0x19   : > { %830 = vmatpush.msra.mxu3 %v4856_v19  ;;  %v659_v42 = vand.u32 4294901760, %v658_v38  ;;  %v665_v45 = vand.u32 4294901760, %v664_v39  ;;  %v671_v49 = vand.u32 4294901760, %v670_v40  ;;  %v509_v13 = vsel %vm489_vm0, %v407_v10, 0 }
  0x1a   : > { %545 = vmatpush.msra.mxu0 %v4859_v21  ;;  %748 = vmatpush.msra.mxu2 %v668_v27  ;;  %v677_v51 = vand.u32 4294901760, %v676_v46  ;;  %v580_v6 = vand.u32 4294901760, %v579_v3  ;;  %v587_v12 = vsub.f32 %v506_v4, %v4918_v8  ;;  %v4723_v20 = vmov 1  }
  0x1b   : > { %551 = vmatmul.f32.vlgmr.msra.gmra.mxu0 %v550_v34  ;;  %832 = vmatpush.msra.mxu3 %v4859_v21  ;;  %vm2225_vm3 = vcmask 1041409   ;;  %vm2227_vm4 = vcmask 1042434   ;;  %vm2229_vm5 = vcmask 1043459   ;;  %vm2232_vm6 = vcmask 60416  }
  0x1c   : > { %660 = vmatpush.msra.mxu1 %v659_v42  ;;  %751 = vmatpush.msra.mxu2 %v674_v30  ;;  %v581_v11 = vsub.f32 %v579_v3, %v580_v6  ;;  %v395_v30 = vld [vmem:[%s4930_s15 + $0x10] sm:$0xff]  ;;  %vm1381_vm7 = vcmask 130048   ;;  %vm1923_vm8 = vcmask 1040384   ;;  %vm2251_vm9 = vcmask 1043456  }
  0x1d   : > { %481 = vperm.xlu0 %4661, %v427_v43   ;;  %486 = vperm.xlu1 %4662, %v428_v44   ;;  %v410_v43 = vld [vmem:[%s6613_s2 + $0x48] sm:$0xff]  ;;  %v4989_v62 = vand.u32 4294901760, %v395_v30  ;;  %vm2248_vm11 = vcmask 31744   ;;  %vm2593_vm12 = vcmask 131072  }
  0x1e   : > { %666 = vmatpush.msra.mxu1 %v665_v45  ;;  %754 = vmatmul.f32.vlgmr.msra.gmra.mxu2 %v547_v14  ;;  %v582_v14 = vand.u32 4294901760, %v581_v11  ;;  %v518_v46 = vsel %vm489_vm0, %v410_v43, 0 }
  0x1f   : > { %836 = vmatmul.f32.vlgmr.msra.gmra.mxu3 %v548_v22  ;;  %921 = vmatpush.msrb.mxu0 %v657_v31  ;;  %v409_v31 = vld [vmem:[%s6613_s2 + $0x40] sm:$0xff]  ;;  %v4967_v47 = vand.u32 4294901760, %v518_v46  ;;  %v5001_v10 = vsub.f32 %v395_v30, %v4989_v62 }
  0x20   : > { %672 = vmatpush.msra.mxu1 %v671_v49  ;;  %4664 = vset.pattern.permute.xlu2 %v4723_v20  ;;  %v515_v38 = vsel %vm489_vm0, %v409_v31, 0 }
  0x21   : > { %925 = vmatpush.msrb.mxu0 %v663_v32  ;;  %v396_v32 = vld [vmem:[%s4930_s15 + $0x18] sm:$0xff]  ;;  %v4959_v42 = vand.u32 4294901760, %v515_v38 }
  0x22   : > { %678 = vmatpush.msra.mxu1 %v677_v51  ;;  %v2201_v39 = vsel %vm1910_vm1, %v396_v32, 0.0  ;;  %v4973_v51 = vsub.f32 %v518_v46, %v4967_v47  ;;  %v4980_v58 = vand.u32 4294901760, %v396_v32 }
  0x23   : > { %559 = vmatmul.f32.gmra.mxu0 %v558_v52  ;;  %680 = vmatmul.f32.vlgmr.msra.gmra.mxu1 %v4824_v7  ;;  %v611_v45 = vsub.f32 %v515_v38, %v4959_v42 }
  0x24   : > { %996 = vmatpush.msrb.mxu1 %v4842_v15  ;;  %929 = vmatpush.msrb.mxu0 %v669_v33  ;;  %v588_v15 = vand.u32 4294901760, %v587_v12  ;;  %v620_v55 = vand.u32 4294901760, %v4973_v51 }
  0x25   : > { %4665 = vset.pattern.permute.xlu0 %v4723_v20  ;;  %4666 = vset.pattern.permute.xlu1 %v4723_v20  ;;  %v612_v49 = vand.u32 4294901760, %v611_v45 }
  0x26   : > { %759 = vmatmul.f32.gmra.mxu2 %v4862_v23  ;;  %998 = vmatpush.msrb.mxu1 %v4854_v18  ;;  %v4932_v18 = vand.u32 4294901760, %v509_v13  ;;  %v589_v22 = vsub.f32 %v587_v12, %v588_v15  ;;  %v621_v63 = vsub.f32 %v4973_v51, %v620_v55 }
  0x27   : > { %842 = vmatmul.f32.gmra.mxu3 %v556_v36  ;;  %933 = vmatpush.msrb.mxu0 %v675_v35  ;;  %v2195_v35 = vsel %vm1910_vm1, %v394_v29, 0.0  ;;  %v2198_v36 = vsel %vm1910_vm1, %v395_v30, 0.0  ;;  %v613_v52 = vsub.f32 %v611_v45, %v612_v49 }
  0x28   : > { %1000 = vmatpush.msrb.mxu1 %v4856_v19  ;;  %v408_v19 = vld [vmem:[%s6613_s2 + $0x38] sm:$0xff]  ;;  %v595_v23 = vsub.f32 %v509_v13, %v4932_v18  ;;  %v590_v26 = vand.u32 4294901760, %v589_v22  ;;  %1105 = vmatpush.msrb.mxu2 %v4980_v58 }
  0x29   : > { %v512_v24 = vsel %vm489_vm0, %v408_v19, 0 }
  0x2a   : > { %1002 = vmatpush.msrb.mxu1 %v4859_v21  ;;  %v4938_v21 = vld [vmem:[%s4930_s15] sm:$0xff]  ;;  %v596_v27 = vand.u32 4294901760, %v595_v23  ;;  %v4945_v28 = vand.u32 4294901760, %v512_v24  ;;  %1107 = vmatpush.msrb.mxu2 %v4989_v62 }
  0x2b   : > { %567 = vmatmul.f32.gmra.mxu0 %v566_v59  ;;  %684 = vmatmul.f32.gmra.mxu1 %v4833_v9  ;;  %v2192_v25 = vsel %vm1910_vm1, %v4938_v21, 0.0  ;;  %v412_v59 = vld [vmem:[%s6613_s2 + $0x58] sm:$0xff]  ;;  %v5010_v13 = vand.u32 4294901760, %v4938_v21 }
  0x2c   : > { %v597_v33 = vsub.f32 %v595_v23, %v596_v27  ;;  %v603_v34 = vsub.f32 %v512_v24, %v4945_v28  ;;  %v524_v4 = vsel %vm489_vm0, %v412_v59, 0 }
  0x2d   : > { %v5016_v20 = vand.u32 4294901760, %v524_v4 }
  0x2e   : > { %764 = vmatmul.f32.gmra.mxu2 %v563_v48  ;;  %v598_v40 = vand.u32 4294901760, %v597_v33  ;;  %v604_v41 = vand.u32 4294901760, %v603_v34 }
  0x2f   : > { %848 = vmatmul.f32.gmra.mxu3 %v564_v53  ;;  %v521_v53 = vsel %vm489_vm0, %v411_v50, 0  ;;  %v635_v31 = vsub.f32 %v524_v4, %v5016_v20  ;;  %v416_v4 = vld [vmem:[%s6613_s2 + $0x78] sm:$0xff] }
  0x30   : > { %v605_v44 = vsub.f32 %v603_v34, %v604_v41  ;;  %v4978_v56 = vand.u32 4294901760, %v521_v53 }
  0x31   : > { %v636_v38 = vand.u32 4294901760, %v635_v31 }
  0x32   : > { %v606_v48 = vand.u32 4294901760, %v605_v44  ;;  %v414_v44 = vld [vmem:[%s6613_s2 + $0x68] sm:$0xff] }
  0x33   : > { %575 = vmatmul.f32.gmra.mxu0 %v574_v5  ;;  %688 = vmatmul.f32.gmra.mxu1 %v4879_v37  ;;  %v637_v43 = vsub.f32 %v635_v31, %v636_v38 }
  0x35   : > { %v638_v46 = vand.u32 4294901760, %v637_v43 }
  0x36   : > { %769 = vmatmul.f32.gmra.mxu2 %v571_v57  ;;  %v614_v57 = vand.u32 4294901760, %v613_v52  ;;  %v415_v52 = vld [vmem:[%s6613_s2 + $0x70] sm:$0xff] }
  0x37   : > { %854 = vmatmul.f32.gmra.mxu3 %v572_v60  ;;  %v4987_v60 = vsub.f32 %v396_v32, %v4980_v58 }
  0x39   : > { %v1159_v5 = vand.u32 4294901760, %v4987_v60 }
  0x3b   : > { %583 = vmatmul.f32.gmra.mxu0 %v582_v14  ;;  %692 = vmatmul.f32.gmra.mxu1 %v4897_v54  ;;  %v1160_v11 = vsub.f32 %v4987_v60, %v1159_v5 }
  0x3d   : > { %v1161_v22 = vand.u32 4294901760, %v1160_v11 }
  0x3e   : > { %774 = vmatmul.f32.gmra.mxu2 %v579_v3  ;;  %v4993_v3 = vsub.f32 %v521_v53, %v4978_v56 }
  0x3f   : > { %860 = vmatmul.f32.gmra.mxu3 %v580_v6  ;;  %v4998_v6 = vand.u32 4294901760, %v394_v29 }
  0x40   : > { %2193 = vadd.xlane.f32.xlu2 %v2192_v25  ;;  %v628_v19 = vand.u32 4294901760, %v4993_v3  ;;  %v5025_v25 = vsub.f32 %v4938_v21, %v5010_v13  ;;  %1162 = vmatpush.msrb.mxu3 %v1161_v22 }
  0x41   : > { %v5013_v14 = vsub.f32 %v394_v29, %v4998_v6  ;;  %1109 = vmatpush.msrb.mxu2 %v4998_v6 }
  0x42   : > { %v1177_v30 = vand.u32 4294901760, %v5025_v25  ;;  %v629_v21 = vsub.f32 %v4993_v3, %v628_v19 }
  0x43   : > { %591 = vmatmul.f32.gmra.mxu0 %v590_v26  ;;  %696 = vmatmul.f32.gmra.mxu1 %v4908_v61  ;;  %v1171_v24 = vand.u32 4294901760, %v5013_v14  ;;  %v5031_v26 = vld [vmem:[%s6616_s5 + $0x10] sm:$0x1] }
  0x44   : > { %1111 = vmatpush.msrb.mxu2 %v5010_v13  ;;  %v1178_v33 = vsub.f32 %v5025_v25, %v1177_v30 }
  0x45   : > { %v1172_v29 = vsub.f32 %v5013_v14, %v1171_v24 }
  0x46   : > { %779 = vmatmul.f32.gmra.mxu2 %v587_v12  ;;  %v1165_v12 = vand.u32 4294901760, %v5001_v10 }
  0x47   : > { %2196 = vadd.xlane.f32.xlu0 %v2195_v35  ;;  %2199 = vadd.xlane.f32.xlu1 %v2198_v36  ;;  %v1173_v32 = vand.u32 4294901760, %v1172_v29  ;;  %v1179_v35 = vand.u32 4294901760, %v1178_v33  ;;  %v630_v36 = vand.u32 4294901760, %v629_v21 }
  0x48   : > { %866 = vmatmul.f32.gmra.mxu3 %v588_v15  ;;  %2202 = vadd.xlane.f32.xlu2 %v2201_v39  ;;  %v622_v15 = vand.u32 4294901760, %v621_v63 }
  0x49   : > { %1212 = vmatpush.msra.mxu2 %v4987_v60 }
  0x4b   : > { %599 = vmatmul.f32.gmra.mxu0 %v598_v40  ;;  %700 = vmatmul.f32.gmra.mxu1 %v4918_v8  ;;  %v5060_v40 = vld [vmem:[%s6616_s5] sm:$0xff] }
  0x4c   : > { %1215 = vmatpush.msra.mxu2 %v5001_v10 }
  0x4e   : > { %784 = vmatmul.f32.gmra.mxu2 %v595_v23  ;;  %v1166_v23 = vsub.f32 %v5001_v10, %v1165_v12 }
  0x4f   : > { %1218 = vmatpush.msra.mxu2 %v5013_v14 }
  0x50   : > { %872 = vmatmul.f32.gmra.mxu3 %v596_v27  ;;  %v1167_v27 = vand.u32 4294901760, %v1166_v23 }
  0x51   : > { %1221 = vmatpush.msra.mxu2 %v5025_v25 }
  0x52   : > { %1168 = vmatpush.msrb.mxu3 %v1167_v27  ;;  %v6625_v27 = vmov 3  }
  0x53   : > { %607 = vmatmul.f32.gmra.mxu0 %v606_v48  ;;  %704 = vmatmul.f32.gmra.mxu1 %v4932_v18  ;;  %v1084_v48 = vsel %vm489_vm0, %v414_v44, 0 }
  0x54   : > { %1174 = vmatpush.msrb.mxu3 %v1173_v32 }
  0x56   : > { %789 = vmatmul.f32.gmra.mxu2 %v603_v34  ;;  %v6622_v34 = vmov 2   ;;  %1180 = vmatpush.msrb.mxu3 %v1179_v35 }
  0x58   : > { %878 = vmatmul.f32.gmra.mxu3 %v604_v41 }
  0x59   : > { %1256 = vmatpush.msra.mxu3 %v4980_v58 }
  0x5b   : > { %615 = vmatmul.f32.gmra.mxu0 %v614_v57  ;;  %708 = vmatmul.f32.gmra.mxu1 %v4945_v28  ;;  %v1087_v57 = vsel %vm489_vm0, %v415_v52, 0 }
  0x5c   : > { %1069 = vperm.xlu0 %4665, %v4847_v16   ;;  %1258 = vmatpush.msra.mxu3 %v4989_v62 }
  0x5e   : > { %794 = vmatmul.f32.gmra.mxu2 %v611_v45  ;;  %1260 = vmatpush.msra.mxu3 %v4998_v6 }
  0x60   : > { %884 = vmatmul.f32.gmra.mxu3 %v612_v49  ;;  %1073 = vperm.xlu1 %4666, %v4805_v1   ;;  %v5083_v49 = vld [vmem:[%s6616_s5 + $0x8] sm:$0xff] }
  0x61   : > { %1065 = vperm.xlu2 %4664, %v4800_v0   ;;  %v413_v0 = vld [vmem:[%s6613_s2 + $0x60] sm:$0xff]  ;;  %1262 = vmatpush.msra.mxu3 %v5010_v13 }
  0x62   : > { %v1081_v39 = vsel %vm489_vm0, %v413_v0, 0 }
  0x63   : > { %623 = vmatmul.f32.gmra.mxu0 %v622_v15  ;;  %712 = vmatmul.f32.gmra.mxu1 %v4959_v42  ;;  %v5063_v41 = vand.u32 4294901760, %v1081_v39 }
  0x64   : > { %3208 = vrot.lane.b32.xlu0 %v5031_v26, %s4724_s30 }
  0x65   : > { %4669 = vset.pattern.permute.xlu0 %v6622_v34  ;;  %v5076_v45 = vsub.f32 %v1081_v39, %v5063_v41 }
  0x66   : > { %799 = vmatmul.f32.gmra.mxu2 %v4973_v51  ;;  %v5087_v51 = vand.u32 4294901760, %v1084_v48 }
  0x67   : > { %v1114_v50 = vand.u32 4294901760, %v5076_v45 }
  0x68   : > { %890 = vmatmul.f32.gmra.mxu3 %v620_v55  ;;  %4670 = vset.pattern.permute.xlu1 %v6622_v34  ;;  %v5099_v55 = vsub.f32 %v1084_v48, %v5087_v51 }
  0x69   : > { %1077 = vperm.xlu2 %4664, %v4852_v17   ;;  %v1115_v53 = vsub.f32 %v5076_v45, %v1114_v50 }
  0x6a   : > { %v1122_v63 = vand.u32 4294901760, %v5099_v55 }
  0x6b   : > { %631 = vmatmul.f32.gmra.mxu0 %v630_v36  ;;  %716 = vmatmul.f32.gmra.mxu1 %v4967_v47  ;;  %v1116_v59 = vand.u32 4294901760, %v1115_v53 }
  0x6c   : > { %3204 = vrot.lane.b32.xlu0 %v5060_v40, %s4724_s30  ;;  %v1123_v11 = vsub.f32 %v5099_v55, %v1122_v63 }
  0x6e   : > { %804 = vmatmul.f32.gmra.mxu2 %v4993_v3  ;;  %v5103_v3 = vand.u32 4294901760, %v1087_v57 }
  0x70   : > { %896 = vmatmul.f32.gmra.mxu3 %v628_v19  ;;  %v5115_v15 = vsub.f32 %v1087_v57, %v5103_v3  ;;  %v1090_v19 = vsel %vm489_vm0, %v416_v4, 0 }
  0x71   : > { %v5125_v23 = vand.u32 4294901760, %v1090_v19 }
  0x72   : > { %v1130_v22 = vand.u32 4294901760, %v5115_v15 }
  0x73   : > { %639 = vmatmul.f32.gmra.mxu0 %v638_v46  ;;  %720 = vmatmul.f32.gmra.mxu1 %v4978_v56  ;;  %v5138_v60 = vsub.f32 %v1090_v19, %v5125_v23 }
  0x74   : > { %3493 = vrot.lane.b32.xlu0 %v5083_v49, %s4726_s21 }
  0x76   : > { %809 = vmatmul.f32.gmra.mxu2 %v635_v31 }
  0x78   : > { %902 = vmatmul.f32.gmra.mxu3 %v636_v38 }
  0x7b   : > { %724 = vmatmul.f32.gmra.mxu1 %v5016_v20  ;;  %935 = vmatmul.f32.vlgmr.msrb.gmra.mxu0 %v4824_v7 }
  0x7c   : > { %3803 = vperm.xlu0 %4669, %v4852_v17   ;;  %v1124_v17 = vand.u32 4294901760, %v1123_v11 }
  0x7e   : > { %1117 = vmatmul.f32.vlgmr.msrb.gmra.mxu2 %v1116_v59 }
  0x7f   : > { %1303 = vmatpush.msrb.mxu2 %v1159_v5  ;;  %v424_v5 = vld [vmem:[%s6619_s8 + $0x38] sm:$0xff]  ;;  %v5165_v14 = vpop.permute.xlu0 %431 }
  0x80   : > { %1182 = vmatmul.f32.vlgmr.msrb.gmra.mxu3 %v5063_v41 }
  0x81   : > { %1307 = vmatpush.msrb.mxu2 %v1165_v12  ;;  %1346 = vmatpush.msrb.mxu3 %v4980_v58  ;;  %v1131_v58 = vsub.f32 %v5115_v15, %v1130_v22  ;;  %v5163_v12 = vpop.permute.xlu1 %441 }
  0x83   : > { %939 = vmatmul.f32.gmra.mxu0 %v4833_v9  ;;  %1004 = vmatmul.f32.vlgmr.msrb.gmra.mxu1 %v4824_v7  ;;  %v1132_v7 = vand.u32 4294901760, %v1131_v58 }
  0x84   : > { %4673 = vset.pattern.permute.xlu0 %v6625_v27  ;;  %1311 = vmatpush.msrb.mxu2 %v1171_v24  ;;  %v5168_v24 = vpop.permute.xlu2 %471 }
  0x85   : > { %3819 = vperm.xlu0 %4673, %v4805_v1   ;;  %1348 = vmatpush.msrb.mxu3 %v4989_v62  ;;  %v1138_v62 = vand.u32 4294901760, %v5138_v60 }
  0x86   : > { %1125 = vmatmul.f32.gmra.mxu2 %v1124_v17 }
  0x87   : > { %1315 = vmatpush.msrb.mxu2 %v1177_v30  ;;  %1350 = vmatpush.msrb.mxu3 %v4998_v6  ;;  %v1139_v6 = vsub.f32 %v5138_v60, %v1138_v62  ;;  %v5185_v32 = vpop.permute.xlu0 %436 }
  0x88   : > { %1186 = vmatmul.f32.gmra.mxu3 %v5087_v51 }
  0x89   : > { %1352 = vmatpush.msrb.mxu3 %v5010_v13  ;;  %v1140_v10 = vand.u32 4294901760, %v1139_v6  ;;  %v4728_v13 = vmov 17.0   ;;  %v5182_v31 = vpop.permute.xlu1 %446 }
  0x8a   : > { %4689 = vrcp.f32 %v4728_v13 }
  0x8b   : > { %943 = vmatmul.f32.gmra.mxu0 %v4879_v37  ;;  %1008 = vmatmul.f32.gmra.mxu1 %v4833_v9 }
  0x8c   : > { %v5195_v38 = vpop.permute.xlu2 %476 }
  0x8d   : > { %4676 = vset.pattern.permute.xlu0 %v6624_v2 }
  0x8e   : > { %466 = vperm.xlu0 %4676, %v424_v5   ;;  %1133 = vmatmul.f32.gmra.mxu2 %v1132_v7 }
  0x8f   : > { %v5202_v43 = vpop.permute.xlu0 %481 }
  0x90   : > { %1190 = vmatmul.f32.gmra.mxu3 %v5103_v3  ;;  %v4690_v29 = vpop.eup %4689 }
  0x91   : > { %v2205_v21 = vmul.f32 17.0, %v4690_v29  ;;  %v5204_v44 = vpop.permute.xlu1 %486  ;;  %vm2209_vm2 = vweird.f32 %v4690_v29 }
  0x93   : > { %947 = vmatmul.f32.gmra.mxu0 %v4897_v54  ;;  %1012 = vmatmul.f32.gmra.mxu1 %v4879_v37  ;;  %v2206_v35 = vsub.f32 1.0, %v2205_v21 }
  0x95   : > { %v2207_v39 = vmul.f32 %v4690_v29, %v2206_v35 }
  0x96   : > { %1141 = vmatmul.f32.gmra.mxu2 %v1140_v10 }
  0x97   : > { %v2208_v48 = vadd.f32 %v4690_v29, %v2207_v39 }
  0x98   : > { %v5158_v9 = vpop.f32.mrf.mxu0  ;;  %1194 = vmatmul.f32.gmra.mxu3 %v5125_v23 }
  0x9b   : > { %951 = vmatmul.f32.gmra.mxu0 %v4908_v61  ;;  %1016 = vmatmul.f32.gmra.mxu1 %v4897_v54 }
  0x9e   : > { %1224 = vmatmul.f32.vlgmr.msra.gmra.mxu2 %v5076_v45 }
  0xa0   : > { %v5170_v37 = vpop.f32.mrf.mxu0  ;;  %v5172_v25 = vpop.f32.mrf.mxu1  ;;  %1266 = vmatmul.f32.vlgmr.msra.gmra.mxu3 %v1114_v50 }
  0xa1   : > { %v5176_v30 = vpop.f32.mrf.mxu2 }
  0xa2   : > { %v5178_v54 = vpop.f32.mrf.mxu3 }
  0xa3   : > { %955 = vmatmul.f32.gmra.mxu0 %v4918_v8  ;;  %1020 = vmatmul.f32.gmra.mxu1 %v4908_v61 }
  0xa6   : > { %1229 = vmatmul.f32.gmra.mxu2 %v5099_v55  ;;  %v2210_v55 = vsel %vm2209_vm2, %v4690_v29, %v2208_v48 }
  0xa8   : > { %v5187_v33 = vpop.f32.mrf.mxu0  ;;  %v5189_v0 = vpop.f32.mrf.mxu1  ;;  %1272 = vmatmul.f32.gmra.mxu3 %v1122_v63 }
  0xa9   : > { %v5193_v36 = vpop.f32.mrf.mxu2 }
  0xaa   : > { %v5197_v61 = vpop.f32.mrf.mxu3 }
  0xab   : > { %959 = vmatmul.f32.gmra.mxu0 %v4932_v18  ;;  %1024 = vmatmul.f32.gmra.mxu1 %v4918_v8  ;;  %v6623_v8 = vlaneseq }
  0xad   : > { %v5220_v57 = vand.u32 127, %v6623_v8 }
  0xae   : > { %1234 = vmatmul.f32.gmra.mxu2 %v5115_v15 }
  0xb0   : > { %v5206_v45 = vpop.f32.mrf.mxu0  ;;  %v5208_v46 = vpop.f32.mrf.mxu1  ;;  %1278 = vmatmul.f32.gmra.mxu3 %v1130_v22 }
  0xb1   : > { %v5212_v50 = vpop.f32.mrf.mxu2 }
  0xb2   : > { %v5214_v52 = vpop.f32.mrf.mxu3 }
  0xb3   : > { %963 = vmatmul.f32.gmra.mxu0 %v4945_v28  ;;  %1028 = vmatmul.f32.gmra.mxu1 %v4932_v18  ;;  %v2194_v53 = vpop.xlane.xlu2 %2193 }
  0xb4   : > { %v2211_v59 = vmul.f32 %v2210_v55, %v2194_v53 }
  0xb6   : > { %1239 = vmatmul.f32.gmra.mxu2 %v5138_v60  ;;  %v2221_v19 = vperm.slane %v2211_v59, %v5220_v57 }
  0xb8   : > { %v5222_v63 = vpop.f32.mrf.mxu0  ;;  %v5224_v4 = vpop.f32.mrf.mxu1  ;;  %1284 = vmatmul.f32.gmra.mxu3 %v1138_v62 }
  0xb9   : > { %6627 = vst [vmem:[#allocation2_spill] sm:$0xff] %v5222_v63  ;;  %v5228_v11 = vpop.f32.mrf.mxu2 }
  0xba   : > { %v2197_v15 = vpop.xlane.xlu0 %2196  ;;  %v2200_v18 = vpop.xlane.xlu1 %2199 }
  0xbb   : > { %v2212_v17 = vmul.f32 %v2210_v55, %v2197_v15  ;;  %967 = vmatmul.f32.gmra.mxu0 %v4959_v42  ;;  %1032 = vmatmul.f32.gmra.mxu1 %v4945_v28  ;;  %v2213_v22 = vmul.f32 %v2210_v55, %v2200_v18  ;;  %v5233_v58 = vpop.f32.mrf.mxu3  ;;  %v2203_v7 = vpop.xlane.xlu2 %2202 }
  0xbc   : > { %v2214_v5 = vmul.f32 %v2210_v55, %v2203_v7  ;;  %v1374_v7 = vld [vmem:[%s6615_s4] sm:$0xff] }
  0xbd   : > { %v2222_v60 = vperm.slane %v2212_v17, %v5220_v57  ;;  %v2223_v62 = vperm.slane %v2213_v22, %v5220_v57 }
  0xbe   : > { %v2224_v6 = vperm.slane %v2214_v5, %v5220_v57  ;;  %1317 = vmatmul.f32.vlgmr.msrb.gmra.mxu2 %v5063_v41 }
  0xbf   : > { %v2226_v10 = vsel %vm2225_vm3, %v2222_v60, %v2221_v19  ;;  %v1410_v60 = vand.u32 4294901760, %v1374_v7 }
  0xc0   : > { %v5239_v13 = vpop.f32.mrf.mxu0  ;;  %v5241_v28 = vpop.f32.mrf.mxu1  ;;  %v2228_v29 = vsel %vm2227_vm4, %v2223_v62, %v2226_v10  ;;  %1354 = vmatmul.f32.vlgmr.msrb.gmra.mxu3 %v5063_v41 }
  0xc1   : > { %6628 = vst [vmem:[#allocation3_spill] sm:$0xff] %v5239_v13  ;;  %v5244_v21 = vpop.f32.mrf.mxu2  ;;  %v2230_v35 = vsel %vm2229_vm5, %v2224_v6, %v2228_v29  ;;  %v1466_v6 = vsub.f32 %v1374_v7, %v1410_v60 }
  0xc2   : > { %6629 = vst [vmem:[#allocation4_spill] sm:$0xff] %v5241_v28  ;;  %v2233_v39 = vsel %vm2232_vm6, %v2230_v35, 0.0 }
  0xc3   : > { %6630 = vst [vmem:[#allocation5_spill] sm:$0xff] %v5244_v21  ;;  %971 = vmatmul.f32.gmra.mxu0 %v4967_v47  ;;  %1036 = vmatmul.f32.gmra.mxu1 %v4959_v42  ;;  %v5248_v48 = vpop.f32.mrf.mxu3  ;;  %v1467_v29 = vand.u32 4294901760, %v1466_v6 }
  0xc4   : > { %6631 = vst [vmem:[#allocation6_spill] sm:$0xff] %v5248_v48  ;;  %2234 = vadd.xlane.f32.xlu1 %v2233_v39 }
  0xc6   : > { %1321 = vmatmul.f32.gmra.mxu2 %v5087_v51 }
  0xc8   : > { %v5251_v53 = vpop.f32.mrf.mxu0  ;;  %v5253_v55 = vpop.f32.mrf.mxu1  ;;  %1358 = vmatmul.f32.gmra.mxu3 %v5087_v51 }
  0xc9   : > { %6632 = vst [vmem:[#allocation7_spill] sm:$0xff] %v5251_v53  ;;  %v5256_v41 = vpop.f32.mrf.mxu2  ;;  %v2446_v53 = vld [vmem:[%s6618_s7 + $0x58] sm:$0x1] }
  0xca   : > { %6633 = vst [vmem:[#allocation8_spill] sm:$0xff] %v5253_v55  ;;  %v2451_v55 = vld [vmem:[%s6618_s7 + $0x80] sm:$0xff] }
  0xcb   : > { %6634 = vst [vmem:[#allocation9_spill] sm:$0xff] %v5256_v41  ;;  %975 = vmatmul.f32.gmra.mxu0 %v4978_v56  ;;  %1040 = vmatmul.f32.gmra.mxu1 %v4967_v47  ;;  %v5260_v59 = vpop.f32.mrf.mxu3 }
  0xcc   : > { %6635 = vst [vmem:[#allocation10_spill] sm:$0xff] %v5260_v59 }
  0xce   : > { %1325 = vmatmul.f32.gmra.mxu2 %v5103_v3 }
  0xd0   : > { %v5263_v42 = vpop.f32.mrf.mxu0  ;;  %v5265_v15 = vpop.f32.mrf.mxu1  ;;  %1362 = vmatmul.f32.gmra.mxu3 %v5103_v3 }
  0xd1   : > { %6636 = vst [vmem:[#allocation11_spill] sm:$0xff] %v5263_v42  ;;  %v5268_v18 = vpop.f32.mrf.mxu2 }
  0xd2   : > { %6637 = vst [vmem:[#allocation12_spill] sm:$0xff] %v5265_v15  ;;  %v2448_v15 = vld [vmem:[%s6618_s7 + $0x68] sm:$0xff] }
  0xd3   : > { %6638 = vst [vmem:[#allocation13_spill] sm:$0xff] %v5268_v18  ;;  %979 = vmatmul.f32.gmra.mxu0 %v5016_v20  ;;  %1044 = vmatmul.f32.gmra.mxu1 %v4978_v56  ;;  %v5272_v51 = vpop.f32.mrf.mxu3  ;;  %v1375_v56 = vld [vmem:[%s6615_s4 + $0x8] sm:$0xff] }
  0xd4   : > { %6639 = vst [vmem:[#allocation14_spill] sm:$0xff] %v5272_v51  ;;  %v1408_v22 = vand.u32 4294901760, %v1375_v56 }
  0xd6   : > { %1329 = vmatmul.f32.gmra.mxu2 %v5125_v23  ;;  %v1460_v5 = vsub.f32 %v1375_v56, %v1408_v22  ;;  %1544 = vmatpush.msra.mxu3 %v1408_v22  ;;  %v1468_v56 = vsub.f32 %v1466_v6, %v1467_v29 }
  0xd7   : > { %1409 = vmatpush.msra.mxu0 %v1408_v22 }
  0xd8   : > { %v5275_v47 = vpop.f32.mrf.mxu0  ;;  %v5277_v19 = vpop.f32.mrf.mxu1  ;;  %1366 = vmatmul.f32.gmra.mxu3 %v5125_v23  ;;  %v1461_v62 = vand.u32 4294901760, %v1460_v5  ;;  %1504 = vmatpush.msra.mxu2 %v1460_v5  ;;  %v1469_v7 = vand.u32 4294901760, %v1468_v56 }
  0xd9   : > { %6640 = vst [vmem:[#allocation15_spill] sm:$0xff] %v5277_v19  ;;  %v5280_v17 = vpop.f32.mrf.mxu2  ;;  %1546 = vmatpush.msra.mxu3 %v1410_v60  ;;  %1411 = vmatpush.msra.mxu0 %v1410_v60 }
  0xda   : > { %6641 = vst [vmem:[#allocation16_spill] sm:$0xff] %v5280_v17  ;;  %1507 = vmatpush.msra.mxu2 %v1466_v6  ;;  %v423_v6 = vld [vmem:[%s6619_s8 + $0x30] sm:$0xff] }
  0xdb   : > { %1048 = vmatmul.f32.gmra.mxu1 %v5016_v20  ;;  %v5283_v3 = vpop.f32.mrf.mxu3  ;;  %1589 = vmatpush.msrb.mxu0 %v1461_v62 }
  0xdc   : > { %6642 = vst [vmem:[#allocation17_spill] sm:$0xff] %v5283_v3  ;;  %v561_v3 = vadd.f32 %v5170_v37, %v5185_v32 }
  0xdd   : > { %3798 = vperm.xlu1 %4670, %v4805_v1   ;;  %v1462_v1 = vsub.f32 %v1460_v5, %v1461_v62  ;;  %1593 = vmatpush.msrb.mxu0 %v1467_v29 }
  0xde   : > { %v686_v17 = vadd.f32 %v5189_v0, %v561_v3 }
  0xdf   : > { %v1463_v39 = vand.u32 4294901760, %v1462_v1 }
  0xe0   : > { %v5292_v23 = vpop.f32.mrf.mxu0  ;;  %v5294_v20 = vpop.f32.mrf.mxu1  ;;  %v761_v51 = vadd.f32 %v5193_v36, %v686_v17  ;;  %v577_v36 = vadd.f32 %v5206_v45, %v5182_v31 }
  0xe1   : > { %v5296_v10 = vpop.f32.mrf.mxu2  ;;  %1464 = vmatpush.msra.mxu1 %v1463_v39  ;;  %v553_v39 = vadd.f32 %v5158_v9, %v5165_v14 }
  0xe2   : > { %v844_v32 = vadd.f32 %v5197_v61, %v761_v51 }
  0xe3   : > { %v5298_v35 = vpop.f32.mrf.mxu3  ;;  %1470 = vmatpush.msra.mxu1 %v1469_v7  ;;  %v682_v56 = vadd.f32 %v5172_v25, %v553_v39 }
  0xe5   : > { %4674 = vset.pattern.permute.xlu1 %v6625_v27  ;;  %1626 = vmatpush.msrb.mxu1 %v1408_v22  ;;  %v756_v27 = vadd.f32 %v5176_v30, %v682_v56 }
  0xe6   : > { %3815 = vperm.xlu1 %4674, %v4847_v16  }
  0xe7   : > { %1628 = vmatpush.msrb.mxu1 %v1410_v60  ;;  %v421_v60 = vld [vmem:[%s6619_s8 + $0x20] sm:$0xff]  ;;  %v838_v14 = vadd.f32 %v5178_v54, %v756_v27 }
  0xe8   : > { %v5302_v34 = vpop.f32.mrf.mxu0  ;;  %v5304_v8 = vpop.f32.mrf.mxu1 }
  0xe9   : > { %v5306_v5 = vpop.f32.mrf.mxu2 }
  0xeb   : > { %v5308_v62 = vpop.f32.mrf.mxu3 }
  0xee   : > { %4677 = vset.pattern.permute.xlu1 %v6624_v2 }
  0xef   : > { %461 = vperm.xlu1 %4677, %v423_v6  }
  0xf0   : > { %v5314_v16 = vpop.f32.mrf.mxu0  ;;  %v5316_v1 = vpop.f32.mrf.mxu1 }
  0xf1   : > { %v5318_v29 = vpop.f32.mrf.mxu2 }
  0xf3   : > { %v5322_v22 = vpop.f32.mrf.mxu3 }
  0xf7   : > { %451 = vperm.xlu1 %4677, %v421_v60   ;;  %v569_v60 = vadd.f32 %v5187_v33, %v5163_v12 }
  0xf8   : > { %v5328_v7 = vpop.f32.mrf.mxu1  ;;  %v936_v6 = vpop.f32.mrf.mxu0 }
  0xf9   : > { %v5330_v2 = vpop.f32.mrf.mxu2  ;;  %v937_v19 = vadd.f32 %v936_v6, %v838_v14  ;;  %v690_v27 = vadd.f32 %v5208_v46, %v569_v60  ;;  %v694_v60 = vadd.f32 %v5224_v4, %v577_v36 }
  0xfb   : > { %v5335_v9 = vpop.f32.mrf.mxu3  ;;  %v766_v61 = vadd.f32 %v5212_v50, %v690_v27 }
 0x100   : > { %v940_v42 = vpop.f32.mrf.mxu0  ;;  %v1005_v25 = vpop.f32.mrf.mxu1 }
 0x101   : > { %v5339_v39 = vpop.f32.mrf.mxu2  ;;  %v1006_v30 = vadd.f32 %v1005_v25, %v937_v19  ;;  %v941_v3 = vadd.f32 %v940_v42, %v844_v32  ;;  %v850_v25 = vadd.f32 %v5214_v52, %v766_v61 }
 0x103   : > { %v5344_v56 = vpop.f32.mrf.mxu3  ;;  %v1052_v37 = vmax.f32 %v1006_v30, 0.0 }
 0x105   : > { %v1383_v54 = vsel %vm1381_vm7, %v1052_v37, 0 }
 0x106   : > { %v5349_v0 = vand.u32 4294901760, %v1383_v54 }
 0x108   : > { %v944_v6 = vpop.f32.mrf.mxu0  ;;  %v1413_v14 = vsub.f32 %v1383_v54, %v5349_v0  ;;  %v1009_v12 = vpop.f32.mrf.mxu1  ;;  %1472 = vmatmul.f32.vlgmr.msra.gmra.mxu1 %v5349_v0 }
 0x109   : > { %v5353_v33 = vpop.f32.mrf.mxu2  ;;  %v1010_v51 = vadd.f32 %v1009_v12, %v941_v3  ;;  %v945_v31 = vadd.f32 %v944_v6, %v850_v25  ;;  %v771_v3 = vadd.f32 %v5228_v11, %v694_v60 }
 0x10a   : > { %v1414_v46 = vand.u32 4294901760, %v1413_v14  ;;  %1510 = vmatmul.f32.vlgmr.msra.gmra.mxu2 %v1413_v14 }
 0x10b   : > { %v5358_v19 = vpop.f32.mrf.mxu3  ;;  %v1053_v17 = vmax.f32 %v1010_v51, 0.0  ;;  %v856_v6 = vadd.f32 %v5233_v58, %v771_v3  ;;  %v1376_v3 = vld [vmem:[%s6615_s4 + $0x10] sm:$0xff] }
 0x10c   : > { %v1415_v42 = vsub.f32 %v1413_v14, %v1414_v46  ;;  %1550 = vmatmul.f32.vlgmr.msra.gmra.mxu3 %v1414_v46 }
 0x10d   : > { %v1386_v30 = vsel %vm1381_vm7, %v1053_v17, 0 }
 0x10e   : > { %v1416_v37 = vand.u32 4294901760, %v1415_v42  ;;  %v5363_v32 = vand.u32 4294901760, %v1386_v30 }
 0x110   : > { %v948_v45 = vpop.f32.mrf.mxu0  ;;  %v1013_v50 = vpop.f32.mrf.mxu1  ;;  %1417 = vmatmul.f32.vlgmr.msra.gmra.mxu0 %v1416_v37  ;;  %1476 = vmatmul.f32.gmra.mxu1 %v5363_v32  ;;  %v1421_v27 = vsub.f32 %v1386_v30, %v5363_v32 }
 0x111   : > { %v5367_v54 = vpop.f32.mrf.mxu2  ;;  %v1014_v52 = vadd.f32 %v1013_v50, %v945_v31  ;;  %v949_v17 = vadd.f32 %v948_v45, %v856_v6  ;;  %v1377_v31 = vld [vmem:[%s6615_s4 + $0x18] sm:$0xff] }
 0x112   : > { %1515 = vmatmul.f32.gmra.mxu2 %v1421_v27  ;;  %v1422_v4 = vand.u32 4294901760, %v1421_v27  ;;  %v1672_v50 = vand.u32 4294901760, %v1377_v31 }
 0x113   : > { %v5370_v14 = vpop.f32.mrf.mxu3  ;;  %v1054_v12 = vmax.f32 %v1014_v52, 0.0 }
 0x114   : > { %1556 = vmatmul.f32.gmra.mxu3 %v1422_v4  ;;  %v1423_v36 = vsub.f32 %v1421_v27, %v1422_v4  ;;  %v1724_v4 = vsub.f32 %v1377_v31, %v1672_v50  ;;  %1673 = vmatpush.msrb.mxu2 %v1672_v50 }
 0x115   : > { %v1389_v61 = vsel %vm1381_vm7, %v1054_v12, 0  ;;  %v1674_v12 = vand.u32 4294901760, %v1376_v3  ;;  %1808 = vmatpush.msra.mxu1 %v1672_v50 }
 0x116   : > { %v5374_v51 = vand.u32 4294901760, %v1389_v61  ;;  %v1424_v46 = vand.u32 4294901760, %v1423_v36  ;;  %1768 = vmatpush.msra.mxu0 %v1724_v4 }
 0x117   : > { %1810 = vmatpush.msra.mxu1 %v1674_v12  ;;  %1675 = vmatpush.msrb.mxu2 %v1674_v12 }
 0x118   : > { %v5376_v42 = vpop.f32.mrf.mxu0  ;;  %v1017_v25 = vpop.f32.mrf.mxu1  ;;  %1425 = vmatmul.f32.gmra.mxu0 %v1424_v46  ;;  %1480 = vmatmul.f32.gmra.mxu1 %v5374_v51  ;;  %v1429_v11 = vsub.f32 %v1389_v61, %v5374_v51  ;;  %v1725_v46 = vand.u32 4294901760, %v1724_v4 }
 0x119   : > { %6643 = vst [vmem:[#allocation18_spill] sm:$0xff] %v5376_v42  ;;  %v5380_v60 = vpop.f32.mrf.mxu2  ;;  %v1018_v30 = vadd.f32 %v1017_v25, %v949_v17  ;;  %v1730_v17 = vsub.f32 %v1376_v3, %v1674_v12 }
 0x11a   : > { %1520 = vmatmul.f32.gmra.mxu2 %v1429_v11  ;;  %v1430_v37 = vand.u32 4294901760, %v1429_v11 }
 0x11b   : > { %v5382_v58 = vpop.f32.mrf.mxu3  ;;  %v1055_v45 = vmax.f32 %v1018_v30, 0.0  ;;  %v1731_v31 = vand.u32 4294901760, %v1730_v17  ;;  %1771 = vmatpush.msra.mxu0 %v1730_v17  ;;  %1853 = vmatpush.msra.mxu2 %v1725_v46 }
 0x11c   : > { %1562 = vmatmul.f32.gmra.mxu3 %v1430_v37  ;;  %v1431_v27 = vsub.f32 %v1429_v11, %v1430_v37  ;;  %v1726_v37 = vsub.f32 %v1724_v4, %v1725_v46 }
 0x11d   : > { %v1392_v52 = vsel %vm1381_vm7, %v1055_v45, 0  ;;  %1857 = vmatpush.msra.mxu2 %v1731_v31 }
 0x11e   : > { %v5391_v36 = vand.u32 4294901760, %v1392_v52  ;;  %v1432_v6 = vand.u32 4294901760, %v1431_v27  ;;  %v1727_v3 = vand.u32 4294901760, %v1726_v37 }
 0x120   : > { %v5393_v61 = vpop.f32.mrf.mxu0  ;;  %v5395_v25 = vpop.f32.mrf.mxu1  ;;  %1433 = vmatmul.f32.gmra.mxu0 %v1432_v6  ;;  %1484 = vmatmul.f32.gmra.mxu1 %v5391_v36  ;;  %v1437_v11 = vsub.f32 %v1392_v52, %v5391_v36 }
 0x121   : > { %6644 = vst [vmem:[#allocation19_spill] sm:$0xff] %v5393_v61  ;;  %v5399_v30 = vpop.f32.mrf.mxu2  ;;  %v1732_v61 = vsub.f32 %v1730_v17, %v1731_v31  ;;  %1728 = vmatpush.msrb.mxu3 %v1727_v3 }
 0x122   : > { %6645 = vst [vmem:[#allocation20_spill] sm:$0xff] %v5395_v25  ;;  %1525 = vmatmul.f32.gmra.mxu2 %v1437_v11  ;;  %v1438_v45 = vand.u32 4294901760, %v1437_v11 }
 0x123   : > { %v5401_v27 = vpop.f32.mrf.mxu3  ;;  %v1733_v6 = vand.u32 4294901760, %v1732_v61  ;;  %v1925_v61 = vsel %vm1923_vm8, %v5031_v26, 0  ;;  %v617_v26 = vadd.f32 %v5275_v47, %v5168_v24  ;;  %v625_v24 = vadd.f32 %v5292_v23, %v5195_v38 }
 0x124   : > { %1568 = vmatmul.f32.gmra.mxu3 %v1438_v45  ;;  %v1439_v18 = vsub.f32 %v1437_v11, %v1438_v45  ;;  %v5414_v46 = vand.u32 4294901760, %v1925_v61 }
 0x125   : > { %1734 = vmatpush.msrb.mxu3 %v1733_v6  ;;  %v714_v37 = vadd.f32 %v5294_v20, %v617_v26  ;;  %v1066_v20 = vpop.permute.xlu2 %1065 }
 0x126   : > { %v1440_v25 = vand.u32 4294901760, %v1439_v18  ;;  %v5446_v47 = vsub.f32 %v1925_v61, %v5414_v46 }
 0x127   : > { %1890 = vmatpush.msra.mxu3 %v1672_v50  ;;  %v796_v3 = vadd.f32 %v5296_v10, %v714_v37  ;;  %v633_v37 = vadd.f32 %v5302_v34, %v5202_v43 }
 0x128   : > { %v5403_v52 = vpop.f32.mrf.mxu0  ;;  %v5405_v4 = vpop.f32.mrf.mxu1  ;;  %1441 = vmatmul.f32.gmra.mxu0 %v1440_v25  ;;  %1630 = vmatmul.f32.vlgmr.msrb.gmra.mxu1 %v5349_v0  ;;  %v5423_v25 = vand.u32 4294901760, %v5083_v49  ;;  %v1994_v10 = vand.u32 4294901760, %v5446_v47 }
 0x129   : > { %6646 = vst [vmem:[#allocation21_spill] sm:$0xff] %v5403_v52  ;;  %v5408_v59 = vpop.f32.mrf.mxu2  ;;  %1892 = vmatpush.msra.mxu3 %v1674_v12  ;;  %v5429_v12 = vand.u32 4294901760, %v5060_v40  ;;  %v886_v26 = vadd.f32 %v5298_v35, %v796_v3 }
 0x12a   : > { %6647 = vst [vmem:[#allocation22_spill] sm:$0xff] %v5405_v4  ;;  %v5458_v38 = vsub.f32 %v5083_v49, %v5423_v25  ;;  %v1995_v3 = vsub.f32 %v5446_v47, %v1994_v10 }
 0x12b   : > { %v5410_v17 = vpop.f32.mrf.mxu3 }
 0x12c   : > { %v1996_v34 = vand.u32 4294901760, %v1995_v3 }
 0x12e   : > { %1997 = vmatpush.msrb.mxu1 %v1996_v34  ;;  %v1074_v34 = vpop.permute.xlu1 %1073 }
 0x130   : > { %v5416_v18 = vpop.f32.mrf.mxu0  ;;  %v5418_v11 = vpop.f32.mrf.mxu1  ;;  %1595 = vmatmul.f32.vlgmr.msrb.gmra.mxu0 %v5349_v0  ;;  %1634 = vmatmul.f32.gmra.mxu1 %v5363_v32 }
 0x131   : > { %6648 = vst [vmem:[#allocation23_spill] sm:$0xff] %v5416_v18  ;;  %1941 = vmatpush.msrb.mxu0 %v5414_v46  ;;  %v5426_v50 = vpop.f32.mrf.mxu2  ;;  %v718_v18 = vadd.f32 %v5304_v8, %v625_v24 }
 0x132   : > { %6649 = vst [vmem:[#allocation24_spill] sm:$0xff] %v5418_v11 }
 0x133   : > { %1943 = vmatpush.msrb.mxu0 %v5423_v25  ;;  %v5435_v0 = vpop.f32.mrf.mxu3  ;;  %v801_v35 = vadd.f32 %v5306_v5, %v718_v18  ;;  %v722_v5 = vadd.f32 %v5316_v1, %v633_v37 }
 0x135   : > { %1945 = vmatpush.msrb.mxu0 %v5429_v12  ;;  %v892_v24 = vadd.f32 %v5308_v62, %v801_v35  ;;  %v806_v35 = vadd.f32 %v5318_v29, %v722_v5 }
 0x138   : > { %v968_v31 = vpop.f32.mrf.mxu0  ;;  %v5438_v45 = vpop.f32.mrf.mxu1  ;;  %1599 = vmatmul.f32.gmra.mxu0 %v5363_v32  ;;  %1638 = vmatmul.f32.gmra.mxu1 %v5374_v51  ;;  %v1119_v32 = vadd.f32 %v5339_v39, %v1066_v20  ;;  %v5465_v39 = vsub.f32 %v5060_v40, %v5429_v12 }
 0x139   : > { %6650 = vst [vmem:[#allocation25_spill] sm:$0xff] %v5438_v45  ;;  %v5448_v6 = vpop.f32.mrf.mxu2  ;;  %v969_v45 = vadd.f32 %v968_v31, %v886_v26  ;;  %v1070_v40 = vpop.permute.xlu0 %1069 }
 0x13a   : > { %v1184_v49 = vadd.f32 %v5344_v56, %v1119_v32  ;;  %v1127_v56 = vadd.f32 %v5353_v33, %v1070_v40  ;;  %v2006_v62 = vand.u32 4294901760, %v5465_v39 }
 0x13b   : > { %v5453_v11 = vpop.f32.mrf.mxu3 }
 0x13c   : > { %v1226_v32 = vadd.f32 %v5399_v30, %v1184_v49  ;;  %v2007_v33 = vsub.f32 %v5465_v39, %v2006_v62  ;;  %v641_v30 = vadd.f32 %v5314_v16, %v5204_v44 }
 0x13e   : > { %v1268_v29 = vadd.f32 %v5401_v27, %v1226_v32  ;;  %v726_v40 = vadd.f32 %v5328_v7, %v641_v30 }
 0x140   : > { %v972_v23 = vpop.f32.mrf.mxu0  ;;  %v1037_v61 = vpop.f32.mrf.mxu1  ;;  %1603 = vmatmul.f32.gmra.mxu0 %v5374_v51  ;;  %1642 = vmatmul.f32.gmra.mxu1 %v5391_v36  ;;  %v2000_v51 = vand.u32 4294901760, %v5458_v38 }
 0x141   : > { %v1038_v8 = vadd.f32 %v1037_v61, %v969_v45  ;;  %v1318_v20 = vpop.f32.mrf.mxu2  ;;  %v973_v26 = vadd.f32 %v972_v23, %v892_v24  ;;  %v2008_v24 = vand.u32 4294901760, %v2007_v33 }
 0x142   : > { %v2001_v43 = vsub.f32 %v5458_v38, %v2000_v51 }
 0x143   : > { %v1060_v31 = vmax.f32 %v1038_v8, 0.0  ;;  %v1355_v49 = vpop.f32.mrf.mxu3 }
 0x144   : > { %v2002_v37 = vand.u32 4294901760, %v2001_v43 }
 0x145   : > { %v1647_v18 = vsel %vm1381_vm7, %v1060_v31, 0 }
 0x146   : > { %v5477_v45 = vand.u32 4294901760, %v1647_v18  ;;  %2003 = vmatpush.msrb.mxu1 %v2002_v37 }
 0x148   : > { %v1677_v1 = vsub.f32 %v1647_v18, %v5477_v45  ;;  %v1041_v61 = vpop.f32.mrf.mxu1  ;;  %1607 = vmatmul.f32.gmra.mxu0 %v5391_v36  ;;  %1736 = vmatmul.f32.vlgmr.msrb.gmra.mxu3 %v5477_v45  ;;  %v976_v31 = vpop.f32.mrf.mxu0  ;;  %v1188_v36 = vadd.f32 %v5358_v19, %v1127_v56  ;;  %v898_v18 = vadd.f32 %v5322_v22, %v806_v35 }
 0x149   : > { %v1042_v8 = vadd.f32 %v1041_v61, %v973_v26  ;;  %2084 = vmatpush.msrb.mxu3 %v5414_v46  ;;  %2009 = vmatpush.msrb.mxu1 %v2008_v24  ;;  %v1135_v19 = vadd.f32 %v5367_v54, %v1074_v34  ;;  %v1319_v26 = vadd.f32 %v1318_v20, %v1268_v29  ;;  %v1322_v32 = vpop.f32.mrf.mxu2 }
 0x14a   : > { %v1678_v23 = vand.u32 4294901760, %v1677_v1  ;;  %v1231_v43 = vadd.f32 %v5408_v59, %v1188_v36  ;;  %v977_v56 = vadd.f32 %v976_v31, %v898_v18  ;;  %v811_v61 = vadd.f32 %v5330_v2, %v726_v40 }
 0x14b   : > { %v1061_v3 = vmax.f32 %v1042_v8, 0.0  ;;  %2086 = vmatpush.msrb.mxu3 %v5423_v25  ;;  %v1192_v54 = vadd.f32 %v5370_v14, %v1135_v19  ;;  %v1356_v20 = vadd.f32 %v1355_v49, %v1319_v26  ;;  %v1078_v8 = vpop.permute.xlu2 %1077  ;;  %v1359_v37 = vpop.f32.mrf.mxu3 }
 0x14c   : > { %v1679_v5 = vsub.f32 %v1677_v1, %v1678_v23  ;;  %1814 = vmatmul.f32.vlgmr.msra.gmra.mxu1 %v1678_v23  ;;  %v1274_v59 = vadd.f32 %v5410_v17, %v1231_v43  ;;  %v904_v14 = vadd.f32 %v5335_v9, %v811_v61 }
 0x14d   : > { %v1650_v44 = vsel %vm1381_vm7, %v1061_v3, 0  ;;  %2088 = vmatpush.msrb.mxu3 %v5429_v12  ;;  %2170 = vmatpush.msra.mxu1 %v5414_v46  ;;  %v1236_v17 = vadd.f32 %v5426_v50, %v1192_v54  ;;  %v1370_v30 = vmax.f32 %v1356_v20, 0.0 }
 0x14e   : > { %v1680_v16 = vand.u32 4294901760, %v1679_v5  ;;  %v5503_v27 = vand.u32 4294901760, %v1650_v44 }
 0x14f   : > { %2172 = vmatpush.msra.mxu1 %v5423_v25  ;;  %v1280_v50 = vadd.f32 %v5435_v0, %v1236_v17 }
 0x150   : > { %v1685_v22 = vsub.f32 %v1650_v44, %v5503_v27  ;;  %v1045_v7 = vpop.f32.mrf.mxu1  ;;  %1774 = vmatmul.f32.vlgmr.msra.gmra.mxu0 %v1677_v1  ;;  %1681 = vmatmul.f32.vlgmr.msrb.gmra.mxu2 %v1680_v16  ;;  %v980_v2 = vpop.f32.mrf.mxu0 }
 0x151   : > { %v1046_v35 = vadd.f32 %v1045_v7, %v977_v56  ;;  %1740 = vmatmul.f32.gmra.mxu3 %v5503_v27  ;;  %2042 = vmatpush.msrb.mxu2 %v5446_v47  ;;  %v981_v23 = vadd.f32 %v980_v2, %v904_v14  ;;  %v1326_v49 = vpop.f32.mrf.mxu2 }
 0x152   : > { %v1686_v46 = vand.u32 4294901760, %v1685_v22  ;;  %2130 = vmatpush.msra.mxu0 %v1994_v10  ;;  %2174 = vmatpush.msra.mxu1 %v5429_v12  ;;  %v1327_v16 = vadd.f32 %v1326_v49, %v1280_v50 }
 0x153   : > { %v1062_v1 = vmax.f32 %v1046_v35, 0.0  ;;  %2045 = vmatpush.msrb.mxu2 %v5458_v38  ;;  %v1323_v38 = vadd.f32 %v1322_v32, %v1274_v59  ;;  %v1363_v40 = vpop.f32.mrf.mxu3 }
 0x154   : > { %1820 = vmatmul.f32.gmra.mxu1 %v1686_v46  ;;  %v1687_v33 = vsub.f32 %v1685_v22, %v1686_v46  ;;  %2134 = vmatpush.msra.mxu0 %v2000_v51  ;;  %v1143_v51 = vadd.f32 %v5380_v60, %v1078_v8  ;;  %v1364_v26 = vadd.f32 %v1363_v40, %v1327_v16  ;;  %v2235_v16 = vpop.xlane.xlu1 %2234 }
 0x155   : > { %v1653_v25 = vsel %vm1381_vm7, %v1062_v1, 0  ;;  %2048 = vmatpush.msrb.mxu2 %v5465_v39  ;;  %v1912_v39 = vsel %vm1910_vm1, %v1370_v30, 0 }
 0x156   : > { %v5524_v47 = vand.u32 4294901760, %v1653_v25  ;;  %v1688_v10 = vand.u32 4294901760, %v1687_v33  ;;  %2138 = vmatpush.msra.mxu0 %v2006_v62  ;;  %v1360_v62 = vadd.f32 %v1359_v37, %v1323_v38  ;;  %v1196_v29 = vadd.f32 %v5382_v58, %v1143_v51 }
 0x157   : > { %v5535_v5 = vand.u32 4294901760, %v1912_v39  ;;  %v1372_v54 = vmax.f32 %v1364_v26, 0.0  ;;  %v4729_v51 = vmov 8.0  }
 0x158   : > { %v1693_v9 = vsub.f32 %v1653_v25, %v5524_v47  ;;  %v1049_v31 = vpop.f32.mrf.mxu1  ;;  %1779 = vmatmul.f32.gmra.mxu0 %v1685_v22  ;;  %1689 = vmatmul.f32.gmra.mxu2 %v1688_v10  ;;  %v1371_v44 = vmax.f32 %v1360_v62, 0.0  ;;  %v1241_v0 = vadd.f32 %v5448_v6, %v1196_v29  ;;  %4691 = vrcp.f32 %v4729_v51 }
 0x159   : > { %v1050_v12 = vadd.f32 %v1049_v31, %v981_v23  ;;  %1744 = vmatmul.f32.gmra.mxu3 %v5524_v47  ;;  %v5543_v58 = vsub.f32 %v1912_v39, %v5535_v5  ;;  %v1330_v7 = vpop.f32.mrf.mxu2  ;;  %v2244_v31 = vld [vmem:[%s6617_s6] sm:$0xf] }
 0x15a   : > { %v1694_v36 = vand.u32 4294901760, %v1693_v9  ;;  %v1915_v56 = vsel %vm1910_vm1, %v1371_v44, 0  ;;  %v1286_v22 = vadd.f32 %v5453_v11, %v1241_v0  ;;  %v1918_v11 = vsel %vm1910_vm1, %v1372_v54, 0 }
 0x15b   : > { %v1063_v3 = vmax.f32 %v1050_v12, 0.0  ;;  %v1948_v6 = vand.u32 4294901760, %v5543_v58  ;;  %v5548_v61 = vand.u32 4294901760, %v1915_v56  ;;  %v1367_v59 = vpop.f32.mrf.mxu3  ;;  %v5557_v37 = vand.u32 4294901760, %v1918_v11 }
 0x15c   : > { %1826 = vmatmul.f32.gmra.mxu1 %v1694_v36  ;;  %v1695_v60 = vsub.f32 %v1693_v9, %v1694_v36  ;;  %v1331_v46 = vadd.f32 %v1330_v7, %v1286_v22  ;;  %v2253_v50 = vsel %vm2251_vm9, %v2244_v31, 0 }
 0x15d   : > { %v1656_v24 = vsel %vm1381_vm7, %v1063_v3, 0  ;;  %v1949_v20 = vsub.f32 %v5543_v58, %v1948_v6  ;;  %v5553_v1 = vsub.f32 %v1915_v56, %v5548_v61  ;;  %v1963_v25 = vsub.f32 %v1918_v11, %v5557_v37 }
 0x15e   : > { %v5537_v18 = vand.u32 4294901760, %v1656_v24  ;;  %v1696_v34 = vand.u32 4294901760, %v1695_v60  ;;  %v1368_v8 = vadd.f32 %v1367_v59, %v1331_v46  ;;  %v4692_v12 = vpop.eup %4691  ;;  %v2270_v39 = vand.u32 4294901760, %v2253_v50 }
 0x15f   : > { %v1950_v2 = vand.u32 4294901760, %v1949_v20  ;;  %v1956_v33 = vand.u32 4294901760, %v5553_v1  ;;  %v1964_v38 = vand.u32 4294901760, %v1963_v25  ;;  %v2237_v62 = vmul.f32 8.0, %v4692_v12 }
 0x160   : > { %v1701_v19 = vsub.f32 %v1656_v24, %v5537_v18  ;;  %1784 = vmatmul.f32.gmra.mxu0 %v1693_v9  ;;  %1697 = vmatmul.f32.gmra.mxu2 %v1696_v34  ;;  %v1373_v14 = vmax.f32 %v1368_v8, 0.0  ;;  %vm2241_vm10 = vweird.f32 %v4692_v12 }
 0x161   : > { %1748 = vmatmul.f32.gmra.mxu3 %v5537_v18  ;;  %v1957_v17 = vsub.f32 %v5553_v1, %v1956_v33  ;;  %v1965_v9 = vsub.f32 %v1963_v25, %v1964_v38  ;;  %v2238_v60 = vsub.f32 1.0, %v2237_v62  ;;  %v6652_v62 = vlaneseq }
 0x162   : > { %v1702_v43 = vand.u32 4294901760, %v1701_v19  ;;  %v1921_v10 = vsel %vm1910_vm1, %v1373_v14, 0 }
 0x163   : > { %v5566_v30 = vand.u32 4294901760, %v1921_v10  ;;  %v1958_v23 = vand.u32 4294901760, %v1957_v17  ;;  %v1966_v49 = vand.u32 4294901760, %v1965_v9  ;;  %v2239_v44 = vmul.f32 %v4692_v12, %v2238_v60  ;;  %v2245_v60 = vld [vmem:[%s6617_s6 + $0x4] sm:$0x1] }
 0x164   : > { %1832 = vmatmul.f32.gmra.mxu1 %v1702_v43  ;;  %v1703_v32 = vsub.f32 %v1701_v19, %v1702_v43 }
 0x166   : > { %v1704_v35 = vand.u32 4294901760, %v1703_v32 }
 0x168   : > { %1789 = vmatmul.f32.gmra.mxu0 %v1701_v19  ;;  %1705 = vmatmul.f32.gmra.mxu2 %v1704_v35 }
 0x169   : > { %1894 = vmatmul.f32.vlgmr.msra.gmra.mxu3 %v5477_v45 }
 0x16c   : > { %2011 = vmatmul.f32.vlgmr.msrb.gmra.mxu1 %v5535_v5 }
 0x170   : > { %1859 = vmatmul.f32.vlgmr.msra.gmra.mxu2 %v5477_v45  ;;  %1951 = vmatmul.f32.vlgmr.msrb.gmra.mxu0 %v1950_v2  ;;  %v1971_v45 = vsub.f32 %v1921_v10, %v5566_v30 }
 0x171   : > { %1898 = vmatmul.f32.gmra.mxu3 %v5503_v27  ;;  %2271 = vmatpush.msra.mxu2 %v2270_v39 }
 0x172   : > { %v1972_v36 = vand.u32 4294901760, %v1971_v45 }
 0x174   : > { %2015 = vmatmul.f32.gmra.mxu1 %v5548_v61  ;;  %v1973_v3 = vsub.f32 %v1971_v45, %v1972_v36 }
 0x176   : > { %v1974_v40 = vand.u32 4294901760, %v1973_v3 }
 0x178   : > { %1863 = vmatmul.f32.gmra.mxu2 %v5503_v27  ;;  %1959 = vmatmul.f32.gmra.mxu0 %v1958_v23  ;;  %v2297_v27 = vsub.f32 %v2253_v50, %v2270_v39 }
 0x179   : > { %1902 = vmatmul.f32.gmra.mxu3 %v5524_v47 }
 0x17a   : > { %v2298_v29 = vand.u32 4294901760, %v2297_v27 }
 0x17c   : > { %2019 = vmatmul.f32.gmra.mxu1 %v5557_v37  ;;  %v2299_v24 = vsub.f32 %v2297_v27, %v2298_v29 }
 0x17e   : > { %v2300_v34 = vand.u32 4294901760, %v2299_v24 }
 0x180   : > { %1867 = vmatmul.f32.gmra.mxu2 %v5524_v47  ;;  %1967 = vmatmul.f32.gmra.mxu0 %v1966_v49  ;;  %v2240_v47 = vadd.f32 %v4692_v12, %v2239_v44 }
 0x181   : > { %1906 = vmatmul.f32.gmra.mxu3 %v5537_v18 }
 0x182   : > { %2301 = vmatpush.msra.mxu3 %v2300_v34  ;;  %v2242_v0 = vsel %vm2241_vm10, %v4692_v12, %v2240_v47 }
 0x183   : > { %v2243_v19 = vmul.f32 %v2242_v0, %v2235_v16 }
 0x184   : > { %2023 = vmatmul.f32.gmra.mxu1 %v5566_v30 }
 0x188   : > { %1871 = vmatmul.f32.gmra.mxu2 %v5537_v18  ;;  %1975 = vmatmul.f32.gmra.mxu0 %v1974_v40  ;;  %v2247_v18 = vperm.slane %v2243_v19, %v5220_v57 }
 0x189   : > { %2092 = vmatmul.f32.vlgmr.msrb.gmra.mxu3 %v1948_v6 }
 0x18a   : > { %2347 = vmatpush.msrb.mxu3 %v2270_v39  ;;  %v2249_v43 = vsel %vm2248_vm11, %v2247_v18, 0 }
 0x18c   : > { %2176 = vmatmul.f32.vlgmr.msra.gmra.mxu1 %v5535_v5 }
 0x18d   : > { %v5592_v22 = vpop.f32.mrf.mxu2 }
 0x18f   : > { %v5589_v56 = vpop.f32.mrf.mxu3 }
 0x190   : > { %2051 = vmatmul.f32.vlgmr.msrb.gmra.mxu2 %v5543_v58  ;;  %2140 = vmatmul.f32.vlgmr.msra.gmra.mxu0 %v5535_v5  ;;  %v2272_v58 = vand.u32 4294901760, %v2249_v43 }
 0x191   : > { %2098 = vmatmul.f32.gmra.mxu3 %v1956_v33  ;;  %2324 = vmatpush.msrb.mxu2 %v2297_v27  ;;  %v2408_v27 = vshrl.u32 %v6652_v62, 7 }
 0x192   : > { %v2273_v5 = vsub.f32 %v2249_v43, %v2272_v58 }
 0x193   : > { %4667 = vset.pattern.permute.xlu2 %v2408_v27  ;;  %v2415_v52 = vadd.s32 8, %v2408_v27  ;;  %v1473_v27 = vpop.f32.mrf.mxu1 }
 0x194   : > { %2180 = vmatmul.f32.gmra.mxu1 %v5548_v61  ;;  %v2274_v57 = vand.u32 4294901760, %v2273_v5 }
 0x195   : > { %v5596_v6 = vpop.f32.mrf.mxu2 }
 0x196   : > { %v2275_v26 = vsub.f32 %v2273_v5, %v2274_v57 }
 0x197   : > { %v5594_v32 = vpop.f32.mrf.mxu3 }
 0x198   : > { %2056 = vmatmul.f32.gmra.mxu2 %v5553_v1  ;;  %2144 = vmatmul.f32.gmra.mxu0 %v5548_v61  ;;  %v2276_v7 = vand.u32 4294901760, %v2275_v26 }
 0x199   : > { %2104 = vmatmul.f32.gmra.mxu3 %v1964_v38 }
 0x19c   : > { %2184 = vmatmul.f32.gmra.mxu1 %v5557_v37 }
 0x19d   : > { %v5600_v35 = vpop.f32.mrf.mxu2 }
 0x19f   : > { %v5598_v61 = vpop.f32.mrf.mxu3 }
 0x1a0   : > { %2061 = vmatmul.f32.gmra.mxu2 %v1963_v25  ;;  %2148 = vmatmul.f32.gmra.mxu0 %v5557_v37 }
 0x1a1   : > { %2110 = vmatmul.f32.gmra.mxu3 %v1972_v36 }
 0x1a4   : > { %2188 = vmatmul.f32.gmra.mxu1 %v5566_v30 }
 0x1a5   : > { %v5604_v46 = vpop.f32.mrf.mxu2 }
 0x1a7   : > { %v5602_v54 = vpop.f32.mrf.mxu3 }
 0x1a8   : > { %2066 = vmatmul.f32.gmra.mxu2 %v1971_v45  ;;  %2152 = vmatmul.f32.gmra.mxu0 %v5566_v30 }
 0x1a9   : > { %2303 = vmatmul.f32.vlgmr.msra.gmra.mxu3 %v2272_v58 }
 0x1aa   : > { %2395 = vmatpush.msra.mxu3 %v2270_v39 }
 0x1b0   : > { %2277 = vmatmul.f32.vlgmr.msra.gmra.mxu2 %v2276_v7 }
 0x1b1   : > { %2351 = vmatmul.f32.vlgmr.msrb.gmra.mxu3 %v2274_v57  ;;  %2373 = vmatpush.msra.mxu2 %v2298_v29 }
 0x1b8   : > { %2327 = vmatmul.f32.vlgmr.msrb.gmra.mxu2 %v2273_v5 }
 0x1b9   : > { %2397 = vmatmul.f32.vlgmr.msra.gmra.mxu3 %v2272_v58 }
 0x1c0   : > { %2375 = vmatmul.f32.vlgmr.msra.gmra.mxu2 %v2272_v58 }
 0x1cb   : > { %v5606_v59 = vpop.f32.mrf.mxu3 }
 0x1d3   : > { %v5608_v20 = vpop.f32.mrf.mxu2 }
 0x1d4   : > { %v5610_v1 = vpop.f32.mrf.mxu3 }
 0x1db   : > { %v5612_v11 = vpop.f32.mrf.mxu2 }
 0x1dc   : > { %v5614_v8 = vpop.f32.mrf.mxu3 }
 0x1e3   : > { %v5616_v2 = vpop.f32.mrf.mxu2 }
 0x1e4   : > { %v5618_v37 = vpop.f32.mrf.mxu3 }
 0x1eb   : > { %v5620_v33 = vpop.f32.mrf.mxu2 }
 0x1ec   : > { %v5622_v14 = vpop.f32.mrf.mxu3 }
 0x1f3   : > { %v5624_v25 = vpop.f32.mrf.mxu2 }
 0x1f4   : > { %v5626_v17 = vpop.f32.mrf.mxu3 }
 0x1fb   : > { %v5628_v10 = vpop.f32.mrf.mxu2 }
 0x1fc   : > { %v5630_v30 = vpop.f32.mrf.mxu3 }
 0x203   : > { %v5632_v23 = vpop.f32.mrf.mxu2 }
 0x204   : > { %v5634_v38 = vpop.f32.mrf.mxu3 }
 0x20b   : > { %v5636_v51 = vpop.f32.mrf.mxu2 }
 0x20c   : > { %v5638_v45 = vpop.f32.mrf.mxu3 }
 0x213   : > { %v5640_v9 = vpop.f32.mrf.mxu2 }
 0x214   : > { %v5642_v31 = vpop.f32.mrf.mxu3 }
 0x21b   : > { %v5644_v12 = vpop.f32.mrf.mxu2 }
 0x21c   : > { %v5646_v50 = vpop.f32.mrf.mxu3 }
 0x223   : > { %v5648_v49 = vpop.f32.mrf.mxu2 }
 0x224   : > { %v5650_v36 = vpop.f32.mrf.mxu3 }
 0x225   : > { %6651 = vst [vmem:[#allocation26_spill] sm:$0xff] %v5650_v36 }
 0x22b   : > { %v5652_v39 = vpop.f32.mrf.mxu2 }
 0x22c   : > { %v2304_v3 = vpop.f32.mrf.mxu3 }
 0x233   : > { %v2278_v29 = vpop.f32.mrf.mxu2 }
 0x234   : > { %v2279_v24 = vadd.f32 %v2278_v29, %v2245_v60  ;;  %v2352_v40 = vpop.f32.mrf.mxu3  ;;  %v6653_v29 = vmov 3   ;;  %v4698_v60 = vld [vmem:[%s6616_s5 + $0x10] sm:$0x1] }
 0x236   : > { %v2305_v44 = vadd.f32 %v2304_v3, %v2279_v24  ;;  %v4697_v3 = vld [vmem:[%s6616_s5 + $0x8] sm:$0xff]  ;;  %v1418_v24 = vpop.f32.mrf.mxu0 }
 0x23b   : > { %v2328_v34 = vpop.f32.mrf.mxu2 }
 0x23c   : > { %v2329_v47 = vadd.f32 %v2328_v34, %v2305_v44  ;;  %v2398_v18 = vpop.f32.mrf.mxu3  ;;  %v4700_v34 = vld [vmem:[%s6619_s8 + $0x18] sm:$0xff]  ;;  %v1477_v44 = vpop.f32.mrf.mxu1 }
 0x23e   : > { %v2353_v0 = vadd.f32 %v2352_v40, %v2329_v47  ;;  %v1426_v40 = vpop.f32.mrf.mxu0 }
 0x243   : > { %v2376_v16 = vpop.f32.mrf.mxu2 }
 0x244   : > { %v2377_v19 = vadd.f32 %v2376_v16, %v2353_v0  ;;  %v6654_v0 = vmov 2   ;;  %v4701_v16 = vld [vmem:[%s6619_s8 + $0x8] sm:$0xff] }
 0x246   : > { %v2399_v43 = vadd.f32 %v2398_v18, %v2377_v19  ;;  %v1434_v47 = vpop.f32.mrf.mxu0  ;;  %v1481_v19 = vpop.f32.mrf.mxu1  ;;  %v3782_v18 = vld [vmem:[%s6619_s8] sm:$0xff] }
 0x248   : > { %v2401_v58 = vsub.f32 0.0, %v2399_v43 }
 0x24a   : > { %v2402_v5 = vmul.f32 1.442695, %v2401_v58  ;;  %v1474_v58 = vadd.f32 %v1473_v27, %v1418_v24  ;;  %v1478_v24 = vadd.f32 %v1477_v44, %v1426_v40  ;;  %v2435_v40 = vld [vmem:[%s6618_s7] sm:$0xff] }
 0x24c   : > { %4693 = vpow2.f32 %v2402_v5 }
 0x24e   : > { %v1442_v43 = vpop.f32.mrf.mxu0  ;;  %v1485_v5 = vpop.f32.mrf.mxu1 }
 0x252   : > { %v4694_v57 = vpop.eup %4693 }
 0x253   : > { %v2404_v26 = vadd.f32 1.0, %v4694_v57  ;;  %v1512_v57 = vadd.f32 %v5592_v22, %v1474_v58  ;;  %v1517_v22 = vadd.f32 %v5596_v6, %v1478_v24  ;;  %v2438_v6 = vld [vmem:[%s6618_s7 + $0x18] sm:$0xff]  ;;  %v5724_v24 = vadd.f32 %v1485_v5, %v1442_v43  ;;  %v2445_v5 = vld [vmem:[%s6618_s7 + $0x50] sm:$0xff] }
 0x255   : > { %4695 = vrcp.f32 %v2404_v26 }
 0x256   : > { %v1596_v26 = vpop.f32.mrf.mxu0 }
 0x25b   : > { %v4696_v7 = vpop.eup %4695 }
 0x25c   : > { %v2406_v62 = vperm.slane %v4696_v7, 0  ;;  %v1552_v7 = vadd.f32 %v5589_v56, %v1512_v57  ;;  %v1558_v57 = vadd.f32 %v5594_v32, %v1517_v22  ;;  %v2436_v32 = vld [vmem:[%s6618_s7 + $0x8] sm:$0xff] }
 0x25d   : > { %v2444_v22 = vld [vmem:[%s6618_s7 + $0x48] sm:$0xff] }
 0x25e   : > { %2411 = vperm.xlu2 %4667, %v2406_v62   ;;  %v1600_v56 = vpop.f32.mrf.mxu0 }
 0x266   : > { %4668 = vset.pattern.permute.xlu2 %v2415_v52  ;;  %v4699_v52 = vld [vmem:[%s6616_s5] sm:$0xff] }
 0x26e   : > { %2417 = vperm.xlu2 %4668, %v2406_v62   ;;  %v1597_v62 = vadd.f32 %v1596_v26, %v1552_v7  ;;  %v2441_v7 = vld [vmem:[%s6618_s7 + $0x30] sm:$0xff] }
 0x276   : > { %3206 = vrot.lane.b32.xlu2 %v4697_v3, %s4724_s30  ;;  %v422_v3 = vld [vmem:[%s6619_s8 + $0x28] sm:$0xff]  ;;  %s6577_s30 = scalar_lea.vmem %s6620_s9, %s4822_s25 }
 0x277   : > { %4671 = vset.pattern.permute.xlu2 %v6653_v29 }
 0x27e   : > { %3495 = vrot.lane.b32.xlu2 %v4698_v60, %s4726_s21  ;;  %v1631_v60 = vpop.f32.mrf.mxu1 }
 0x286   : > { %3491 = vrot.lane.b32.xlu2 %v4699_v52, %s4726_s21  ;;  %v1632_v52 = vadd.f32 %v1631_v60, %v1597_v62  ;;  %v2437_v62 = vld [vmem:[%s6618_s7 + $0x10] sm:$0x1] }
 0x288   : > { %v2635_v27 = vsel %vm1910_vm1, %v1632_v52, 0 }
 0x28e   : > { %3823 = vperm.xlu2 %4671, %v4700_v34   ;;  %v6655_v34 = vmov 0  }
 0x296   : > { %4672 = vset.pattern.permute.xlu2 %v6654_v0  ;;  %v5690_v0 = vand.u32 4294901760, %v2635_v27 }
 0x297   : > { %3793 = vperm.xlu2 %4672, %v4701_v16  }
 0x298   : > { %v5705_v44 = vsub.f32 %v2635_v27, %v5690_v0  ;;  %v2442_v27 = vld [vmem:[%s6618_s7 + $0x38] sm:$0xff] }
 0x29f   : > { %3788 = vperm.xlu2 %4672, %v3782_v18  }
 0x2a7   : > { %4675 = vset.pattern.permute.xlu2 %v6653_v29  ;;  %v1482_v29 = vadd.f32 %v1481_v19, %v1434_v47  ;;  %v1601_v19 = vadd.f32 %v1600_v56, %v1558_v57  ;;  %v1635_v56 = vpop.f32.mrf.mxu1  ;;  %v2440_v57 = vld [vmem:[%s6618_s7 + $0x28] sm:$0x1] }
 0x2a8   : > { %3811 = vperm.xlu2 %4675, %v3782_v18  }
 0x2a9   : > { %v1522_v26 = vadd.f32 %v5600_v35, %v1482_v29  ;;  %v2439_v35 = vld [vmem:[%s6618_s7 + $0x20] sm:$0xff]  ;;  %v5736_v43 = vadd.f32 %v1635_v56, %v1601_v19 }
 0x2aa   : > { %v2443_v29 = vld [vmem:[%s6618_s7 + $0x40] sm:$0x1] }
 0x2b0   : > { %4678 = vset.pattern.permute.xlu2 %v6655_v34  ;;  %v5722_v34 = vadd.f32 %v5598_v61, %v1522_v26 }
 0x2b1   : > { %456 = vperm.xlu2 %4678, %v422_v3  }
 0x2b8   : > { %v5692_v16 = vpop.permute.xlu2 %2411 }
 0x2b9   : > { %v2419_v18 = vperm.slane %v5692_v16, 0  ;;  %v2420_v58 = vperm.slane %v5692_v16, 1  ;;  %v2421_v47 = vperm.slane %v5692_v16, 2  ;;  %v2422_v3 = vperm.slane %v5692_v16, 3 }
 0x2bb   : > { %v2483_v60 = vmul.f32 %v2435_v40, %v2419_v18  ;;  %v2486_v52 = vmul.f32 %v2438_v6, %v2420_v58  ;;  %v2484_v40 = vmul.f32 %v2436_v32, %v2419_v18  ;;  %v2487_v61 = vmul.f32 %v2439_v35, %v2420_v58  ;;  %v2447_v32 = vld [vmem:[%s6618_s7 + $0x60] sm:$0xff] }
 0x2bc   : > { %v2489_v26 = vmul.f32 %v2441_v7, %v2421_v47  ;;  %v2423_v6 = vperm.slane %v5692_v16, 4  ;;  %v2485_v4 = vmul.f32 %v2437_v62, %v2419_v18  ;;  %v2490_v35 = vmul.f32 %v2442_v27, %v2421_v47 }
 0x2bd   : > { %v2492_v7 = vmul.f32 %v2444_v22, %v2422_v3  ;;  %v2531_v19 = vsel %vm1910_vm1, %v2483_v60, 0.0  ;;  %v2532_v56 = vsel %vm1910_vm1, %v2486_v52, 0.0  ;;  %v2424_v18 = vperm.slane %v5692_v16, 5 }
 0x2be   : > { %v2425_v62 = vperm.slane %v5692_v16, 6  ;;  %v2488_v42 = vmul.f32 %v2440_v57, %v2420_v58  ;;  %v2533_v41 = vadd.f32 %v2532_v56, %v2531_v19  ;;  %v2493_v27 = vmul.f32 %v2445_v5, %v2422_v3  ;;  %v2449_v57 = vld [vmem:[%s6618_s7 + $0x70] sm:$0x1] }
 0x2bf   : > { %v2534_v22 = vsel %vm1910_vm1, %v2489_v26, 0.0  ;;  %v2562_v60 = vsel %vm1910_vm1, %v2484_v40, 0.0  ;;  %v2563_v52 = vsel %vm1910_vm1, %v2487_v61, 0.0  ;;  %v2491_v48 = vmul.f32 %v2443_v29, %v2421_v47  ;;  %v2450_v26 = vld [vmem:[%s6618_s7 + $0x78] sm:$0xff] }
 0x2c0   : > { %v2495_v13 = vmul.f32 %v2447_v32, %v2423_v6  ;;  %v2535_v21 = vadd.f32 %v2534_v22, %v2533_v41  ;;  %v2564_v58 = vadd.f32 %v2563_v52, %v2562_v60  ;;  %v2496_v5 = vmul.f32 %v2448_v15, %v2423_v6  ;;  %v2452_v41 = vld [vmem:[%s6618_s7 + $0x88] sm:$0x1] }
 0x2c1   : > { %v2536_v40 = vsel %vm1910_vm1, %v2492_v7, 0.0  ;;  %v2565_v61 = vsel %vm1910_vm1, %v2490_v35, 0.0  ;;  %v2594_v19 = vsel %vm2593_vm12, %v2485_v4, 0.0  ;;  %v2494_v47 = vmul.f32 %v2446_v53, %v2422_v3  ;;  %v2453_v35 = vld [vmem:[%s6618_s7 + $0x90] sm:$0xff]  ;;  %v2454_v4 = vld [vmem:[%s6618_s7 + $0x98] sm:$0xff] }
 0x2c2   : > { %v2537_v29 = vadd.f32 %v2536_v40, %v2535_v21  ;;  %v2566_v32 = vadd.f32 %v2565_v61, %v2564_v58  ;;  %v2595_v56 = vsel %vm2593_vm12, %v2488_v42, 0.0  ;;  %v2426_v22 = vperm.slane %v5692_v16, 7  ;;  %v2456_v16 = vld [vmem:[%s6618_s7 + $0xa8] sm:$0xff] }
 0x2c3   : > { %v2499_v60 = vmul.f32 %v2451_v55, %v2424_v18  ;;  %v2567_v15 = vsel %vm1910_vm1, %v2493_v27, 0.0  ;;  %v2596_v52 = vadd.f32 %v2595_v56, %v2594_v19  ;;  %v2497_v7 = vmul.f32 %v2449_v57, %v2423_v6  ;;  %v2455_v55 = vld [vmem:[%s6618_s7 + $0xa0] sm:$0x1]  ;;  %v2458_v57 = vld [vmem:[%s6618_s7 + $0xb8] sm:$0x1] }
 0x2c4   : > { %v2498_v53 = vmul.f32 %v2450_v26, %v2424_v18  ;;  %v2568_v21 = vadd.f32 %v2567_v15, %v2566_v32  ;;  %v2597_v3 = vsel %vm2593_vm12, %v2491_v48, 0.0  ;;  %v2500_v27 = vmul.f32 %v2452_v41, %v2424_v18  ;;  %v2457_v48 = vld [vmem:[%s6618_s7 + $0xb0] sm:$0xff] }
 0x2c5   : > { %v2538_v58 = vsel %vm1910_vm1, %v2495_v13, 0.0  ;;  %v2569_v40 = vsel %vm1910_vm1, %v2496_v5, 0.0  ;;  %v2598_v6 = vadd.f32 %v2597_v3, %v2596_v52  ;;  %v2599_v19 = vsel %vm2593_vm12, %v2494_v47, 0.0  ;;  %v2461_v56 = vld [vmem:[%s6618_s7 + $0xd0] sm:$0x1]  ;;  %v2460_v47 = vld [vmem:[%s6618_s7 + $0xc8] sm:$0xff] }
 0x2c6   : > { %v2539_v26 = vadd.f32 %v2538_v58, %v2537_v29  ;;  %v2570_v61 = vadd.f32 %v2569_v40, %v2568_v21  ;;  %v2501_v18 = vmul.f32 %v2453_v35, %v2425_v62  ;;  %v2502_v41 = vmul.f32 %v2454_v4, %v2425_v62 }
 0x2c7   : > { %v2571_v13 = vsel %vm1910_vm1, %v2499_v60, 0.0  ;;  %v2600_v5 = vadd.f32 %v2599_v19, %v2598_v6  ;;  %v2503_v15 = vmul.f32 %v2455_v55, %v2425_v62  ;;  %v2504_v52 = vmul.f32 %v2456_v16, %v2426_v22  ;;  %v2464_v16 = vld [vmem:[%s6618_s7 + $0xe8] sm:$0x1] }
 0x2c8   : > { %v5786_v42 = vpop.permute.xlu2 %2417  ;;  %v2572_v3 = vadd.f32 %v2571_v13, %v2570_v61  ;;  %v2601_v28 = vsel %vm2593_vm12, %v2497_v7, 0.0  ;;  %v2505_v29 = vmul.f32 %v2457_v48, %v2426_v22  ;;  %v2506_v21 = vmul.f32 %v2458_v57, %v2426_v22 }
 0x2c9   : > { %v2427_v32 = vperm.slane %v5786_v42, 0  ;;  %v2540_v35 = vsel %vm1910_vm1, %v2498_v53, 0.0  ;;  %v2602_v4 = vadd.f32 %v2601_v28, %v2600_v5  ;;  %v2603_v58 = vsel %vm2593_vm12, %v2500_v27, 0.0  ;;  %v2463_v27 = vld [vmem:[%s6618_s7 + $0xe0] sm:$0xff] }
 0x2ca   : > { %v2541_v60 = vadd.f32 %v2540_v35, %v2539_v26  ;;  %v2428_v40 = vperm.slane %v5786_v42, 1  ;;  %v2542_v62 = vsel %vm1910_vm1, %v2501_v18, 0.0  ;;  %v2573_v55 = vsel %vm1910_vm1, %v2502_v41, 0.0  ;;  %v2459_v18 = vld [vmem:[%s6618_s7 + $0xc0] sm:$0xff] }
 0x2cb   : > { %v2509_v6 = vmul.f32 %v2461_v56, %v2427_v32  ;;  %v2604_v7 = vadd.f32 %v2603_v58, %v2602_v4  ;;  %v2508_v48 = vmul.f32 %v2460_v47, %v2427_v32  ;;  %v2544_v22 = vsel %vm1910_vm1, %v2504_v52, 0.0  ;;  %v2467_v41 = vld [vmem:[%s6618_s7 + $0x100] sm:$0x1]  ;;  %v2462_v56 = vld [vmem:[%s6618_s7 + $0xd8] sm:$0xff] }
 0x2cc   : > { %v2574_v53 = vadd.f32 %v2573_v55, %v2572_v3  ;;  %v2605_v28 = vsel %vm2593_vm12, %v2503_v15, 0.0  ;;  %v2429_v57 = vperm.slane %v5786_v42, 2  ;;  %v2575_v26 = vsel %vm1910_vm1, %v2505_v29, 0.0  ;;  %v2466_v15 = vld [vmem:[%s6618_s7 + $0xf8] sm:$0xff] }
 0x2cd   : > { %v2606_v61 = vadd.f32 %v2605_v28, %v2604_v7  ;;  %v2607_v19 = vsel %vm2593_vm12, %v2506_v21, 0.0  ;;  %v2430_v13 = vperm.slane %v5786_v42, 3  ;;  %v2543_v5 = vadd.f32 %v2542_v62, %v2541_v60  ;;  %v2470_v60 = vld [vmem:[%s6618_s7 + $0x118] sm:$0x1]  ;;  %v2465_v62 = vld [vmem:[%s6618_s7 + $0xf0] sm:$0xff] }
 0x2ce   : > { %v5842_v52 = vperm.slane %v5786_v42, 4  ;;  %v2512_v3 = vmul.f32 %v2464_v16, %v2428_v40  ;;  %v2609_v47 = vsel %vm2593_vm12, %v2509_v6, 0.0  ;;  %v5846_v21 = vperm.slane %v5786_v42, 5  ;;  %v2469_v16 = vld [vmem:[%s6618_s7 + $0x110] sm:$0xff] }
 0x2cf   : > { %v2608_v29 = vadd.f32 %v2607_v19, %v2606_v61  ;;  %v2511_v35 = vmul.f32 %v2463_v27, %v2428_v40  ;;  %v2577_v4 = vsel %vm1910_vm1, %v2508_v48, 0.0  ;;  %v2576_v58 = vadd.f32 %v2575_v26, %v2574_v53  ;;  %v2473_v53 = vld [vmem:[%s6618_s7 + $0x130] sm:$0x1] }
 0x2d0   : > { %v5856_v55 = vperm.slane %v5786_v42, 6  ;;  %v2507_v6 = vmul.f32 %v2459_v18, %v2427_v32  ;;  %v2515_v7 = vmul.f32 %v2467_v41, %v2429_v57  ;;  %v5862_v48 = vperm.slane %v5786_v42, 7  ;;  %v2476_v32 = vld [vmem:[%s6618_s7 + $0x148] sm:$0x1] }
 0x2d1   : > { %v2510_v28 = vmul.f32 %v2462_v56, %v2428_v40  ;;  %v2514_v27 = vmul.f32 %v2466_v15, %v2429_v57  ;;  %v2610_v26 = vadd.f32 %v2609_v47, %v2608_v29  ;;  %v2545_v61 = vadd.f32 %v2544_v22, %v2543_v5  ;;  %v2472_v42 = vld [vmem:[%s6618_s7 + $0x128] sm:$0xff]  ;;  %v1604_v40 = vpop.f32.mrf.mxu0  ;;  %v2479_v15 = vld [vmem:[%s6618_s7 + $0x160] sm:$0x1]  ;;  %v2482_v22 = vld [vmem:[%s6618_s7 + $0x178] sm:$0x1] }
 0x2d2   : > { %v2518_v19 = vmul.f32 %v2470_v60, %v2430_v13  ;;  %v2611_v18 = vsel %vm2593_vm12, %v2512_v3, 0.0  ;;  %v2578_v41 = vadd.f32 %v2577_v4, %v2576_v58  ;;  %v2513_v56 = vmul.f32 %v2465_v62, %v2429_v57  ;;  %v2475_v57 = vld [vmem:[%s6618_s7 + $0x140] sm:$0xff] }
 0x2d3   : > { %v2612_v5 = vadd.f32 %v2611_v18, %v2610_v26  ;;  %v2517_v47 = vmul.f32 %v2469_v16, %v2430_v13  ;;  %v2579_v29 = vsel %vm1910_vm1, %v2511_v35, 0.0  ;;  %v2546_v3 = vsel %vm1910_vm1, %v2507_v6, 0.0  ;;  %v2468_v35 = vld [vmem:[%s6618_s7 + $0x108] sm:$0xff]  ;;  %v2478_v26 = vld [vmem:[%s6618_s7 + $0x158] sm:$0xff] }
 0x2d4   : > { %v2521_v60 = vmul.f32 %v2473_v53, %v5842_v52  ;;  %v2613_v4 = vsel %vm2593_vm12, %v2515_v7, 0.0  ;;  %v2580_v58 = vadd.f32 %v2579_v29, %v2578_v41  ;;  %v2524_v62 = vmul.f32 %v2476_v32, %v5846_v21  ;;  %v2471_v41 = vld [vmem:[%s6618_s7 + $0x120] sm:$0xff] }
 0x2d5   : > { %v2614_v63 = vadd.f32 %v2613_v4, %v2612_v5  ;;  %v2520_v36 = vmul.f32 %v2472_v42, %v5842_v52  ;;  %v2581_v16 = vsel %vm1910_vm1, %v2514_v27, 0.0  ;;  %v2527_v6 = vmul.f32 %v2479_v15, %v5856_v55 }
 0x2d6   : > { %v2530_v7 = vmul.f32 %v2482_v22, %v5862_v48  ;;  %v2615_v53 = vsel %vm2593_vm12, %v2518_v19, 0.0  ;;  %v2582_v32 = vadd.f32 %v2581_v16, %v2580_v58  ;;  %v2523_v42 = vmul.f32 %v2475_v57, %v5846_v21  ;;  %v2481_v19 = vld [vmem:[%s6618_s7 + $0x170] sm:$0xff] }
 0x2d7   : > { %v2616_v18 = vadd.f32 %v2615_v53, %v2614_v63  ;;  %v2583_v27 = vsel %vm1910_vm1, %v2517_v47, 0.0  ;;  %v2547_v5 = vadd.f32 %v2546_v3, %v2545_v61  ;;  %v2617_v15 = vsel %vm2593_vm12, %v2521_v60, 0.0  ;;  %v1639_v63 = vpop.f32.mrf.mxu1  ;;  %v2474_v61 = vld [vmem:[%s6618_s7 + $0x138] sm:$0xff] }
 0x2d8   : > { %v2584_v22 = vadd.f32 %v2583_v27, %v2582_v32  ;;  %v2516_v29 = vmul.f32 %v2468_v35, %v2430_v13  ;;  %v2548_v4 = vsel %vm1910_vm1, %v2510_v28, 0.0  ;;  %v2526_v57 = vmul.f32 %v2478_v26, %v5856_v55 }
 0x2d9   : > { %v2618_v58 = vadd.f32 %v2617_v15, %v2616_v18  ;;  %v2585_v47 = vsel %vm1910_vm1, %v2520_v36, 0.0  ;;  %v2549_v3 = vadd.f32 %v2548_v4, %v2547_v5  ;;  %v2619_v60 = vsel %vm2593_vm12, %v2524_v62, 0.0  ;;  %v2477_v36 = vld [vmem:[%s6618_s7 + $0x150] sm:$0xff] }
 0x2da   : > { %v2586_v16 = vadd.f32 %v2585_v47, %v2584_v22  ;;  %v2519_v53 = vmul.f32 %v2471_v41, %v5842_v52  ;;  %v2550_v13 = vsel %vm1910_vm1, %v2513_v56, 0.0  ;;  %v2529_v28 = vmul.f32 %v2481_v19, %v5862_v48  ;;  %v1608_v56 = vpop.f32.mrf.mxu0 }
 0x2db   : > { %v2620_v35 = vadd.f32 %v2619_v60, %v2618_v58  ;;  %v2587_v32 = vsel %vm1910_vm1, %v2523_v42, 0.0  ;;  %v2551_v26 = vadd.f32 %v2550_v13, %v2549_v3  ;;  %v2621_v18 = vsel %vm2593_vm12, %v2527_v6, 0.0  ;;  %v2480_v42 = vld [vmem:[%s6618_s7 + $0x168] sm:$0xff] }
 0x2dc   : > { %v2588_v27 = vadd.f32 %v2587_v32, %v2586_v16  ;;  %v2522_v62 = vmul.f32 %v2474_v61, %v5846_v21  ;;  %v2552_v5 = vsel %vm1910_vm1, %v2516_v29, 0.0  ;;  %v2638_v52 = vsel %vm1910_vm1, %v5736_v43, 0 }
 0x2dd   : > { %v2622_v41 = vadd.f32 %v2621_v18, %v2620_v35  ;;  %v2589_v15 = vsel %vm1910_vm1, %v2526_v57, 0.0  ;;  %v2553_v19 = vadd.f32 %v2552_v5, %v2551_v26  ;;  %v2623_v22 = vsel %vm2593_vm12, %v2530_v7, 0.0 }
 0x2de   : > { %v2590_v6 = vadd.f32 %v2589_v15, %v2588_v27  ;;  %v2525_v4 = vmul.f32 %v2477_v36, %v5856_v55  ;;  %v2554_v21 = vsel %vm1910_vm1, %v2519_v53, 0.0  ;;  %v1605_v29 = vadd.f32 %v1604_v40, %v5722_v34 }
 0x2df   : > { %v2624_v58 = vadd.f32 %v2623_v22, %v2622_v41  ;;  %v2591_v43 = vsel %vm1910_vm1, %v2529_v28, 0.0  ;;  %v2555_v47 = vadd.f32 %v2554_v21, %v2553_v19  ;;  %v1527_v57 = vadd.f32 %v5604_v46, %v5724_v24  ;;  %v1643_v46 = vpop.f32.mrf.mxu1 }
 0x2e0   : > { %v2592_v61 = vadd.f32 %v2591_v43, %v2590_v6  ;;  %v2528_v3 = vmul.f32 %v2480_v42, %v5862_v48  ;;  %v2556_v60 = vsel %vm1910_vm1, %v2522_v62, 0.0  ;;  %v6656_v7 = vand.u32 4294901760, %v5705_v44 }
 0x2e1   : > { %v2627_v16 = vmax.f32 %v2624_v58, 0.0  ;;  %v2557_v53 = vadd.f32 %v2556_v60, %v2555_v47  ;;  %v2630_v13 = vsub.f32 0.0, %v2624_v58  ;;  %v5943_v34 = vand.u32 4294901760, %v2638_v52 }
 0x2e2   : > { %v2671_v55 = vsub.f32 %v5705_v44, %v6656_v7  ;;  %v2626_v40 = vmax.f32 %v2592_v61, 0.0  ;;  %v2558_v35 = vsel %vm1910_vm1, %v2525_v4, 0.0  ;;  %v2629_v28 = vsub.f32 0.0, %v2592_v61  ;;  %v1775_v21 = vpop.f32.mrf.mxu0 }
 0x2e3   : > { %v1640_v32 = vadd.f32 %v1639_v63, %v1605_v29  ;;  %v2647_v24 = vsel %vm1923_vm8, %v2627_v16, 0  ;;  %v2559_v48 = vadd.f32 %v2558_v35, %v2557_v53  ;;  %v2633_v36 = vmax.f32 %v2630_v13, 0.0 }
 0x2e4   : > { %v5947_v26 = vand.u32 4294901760, %v2647_v24  ;;  %v5949_v18 = vand.u32 4294901760, %v2626_v40  ;;  %v2560_v27 = vsel %vm1910_vm1, %v2528_v3, 0.0  ;;  %v2632_v62 = vmax.f32 %v2629_v28, 0.0 }
 0x2e5   : > { %v1570_v5 = vadd.f32 %v5602_v54, %v1527_v57  ;;  %v2672_v41 = vand.u32 4294901760, %v2671_v55  ;;  %v2561_v15 = vadd.f32 %v2560_v27, %v2559_v48  ;;  %v2927_v42 = vsel %vm1923_vm8, %v2633_v36, 0 }
 0x2e6   : > { %2663 = vmatpush.msrb.mxu2 %v5947_v26  ;;  %2806 = vmatpush.msrb.mxu1 %v5947_v26  ;;  %v2715_v63 = vsub.f32 %v2647_v24, %v5947_v26  ;;  %v2721_v19 = vsub.f32 %v2626_v40, %v5949_v18  ;;  %v5958_v22 = vand.u32 4294901760, %v2927_v42  ;;  %v5960_v6 = vand.u32 4294901760, %v2632_v62 }
 0x2e7   : > { %v5963_v4 = vsub.f32 %v2638_v52, %v5943_v34  ;;  %v2641_v54 = vsel %vm1910_vm1, %v1640_v32, 0  ;;  %v2625_v29 = vmax.f32 %v2561_v15, 0.0  ;;  %v2628_v58 = vsub.f32 0.0, %v2561_v15  ;;  %v1815_v40 = vpop.f32.mrf.mxu1 }
 0x2e8   : > { %2665 = vmatpush.msrb.mxu2 %v5949_v18  ;;  %2764 = vmatpush.msrb.mxu0 %v2715_v63  ;;  %v2716_v43 = vand.u32 4294901760, %v2715_v63  ;;  %v2722_v47 = vand.u32 4294901760, %v2721_v19  ;;  %v2995_v57 = vsub.f32 %v2927_v42, %v5958_v22  ;;  %v5969_v61 = vsub.f32 %v2632_v62, %v5960_v6 }
 0x2e9   : > { %v1609_v3 = vadd.f32 %v1608_v56, %v1570_v5  ;;  %v1738_v52 = vadd.f32 %v5606_v59, %v5608_v20  ;;  %2808 = vmatpush.msrb.mxu1 %v5949_v18  ;;  %v5974_v60 = vand.u32 4294901760, %v2625_v29  ;;  %v2631_v7 = vmax.f32 %v2628_v58, 0.0 }
 0x2ea   : > { %2767 = vmatpush.msrb.mxu0 %v2721_v19  ;;  %v2717_v55 = vsub.f32 %v2715_v63, %v2716_v43  ;;  %v2723_v16 = vsub.f32 %v2721_v19, %v2722_v47  ;;  %v2996_v53 = vand.u32 4294901760, %v2995_v57  ;;  %v3002_v13 = vand.u32 4294901760, %v5969_v61 }
 0x2eb   : > { %2667 = vmatpush.msrb.mxu2 %v5974_v60  ;;  %2810 = vmatpush.msrb.mxu1 %v5974_v60  ;;  %v2727_v56 = vsub.f32 %v2625_v29, %v5974_v60  ;;  %v5980_v35 = vand.u32 4294901760, %v2631_v7  ;;  %v2678_v59 = vand.u32 4294901760, %v5963_v4  ;;  %v5983_v20 = vand.u32 4294901760, %v2641_v54 }
 0x2ec   : > { %2673 = vmatmul.f32.vlgmr.msrb.gmra.mxu2 %v2672_v41  ;;  %v6657_v28 = vand.u32 4294901760, %v5705_v44  ;;  %v2718_v32 = vand.u32 4294901760, %v2717_v55  ;;  %v2997_v24 = vsub.f32 %v2995_v57, %v2996_v53  ;;  %v3003_v48 = vsub.f32 %v5969_v61, %v3002_v13 }
 0x2ed   : > { %v1644_v36 = vadd.f32 %v1643_v46, %v1609_v3  ;;  %2852 = vmatpush.msra.mxu2 %v2716_v43  ;;  %2770 = vmatpush.msrb.mxu0 %v2727_v56  ;;  %v2728_v27 = vand.u32 4294901760, %v2727_v56  ;;  %v3007_v62 = vsub.f32 %v2631_v7, %v5980_v35  ;;  %v1776_v5 = vadd.f32 %v1775_v21, %v1738_v52  ;;  %v1780_v21 = vpop.f32.mrf.mxu0 }
 0x2ee   : > { %2814 = vmatmul.f32.vlgmr.msrb.gmra.mxu1 %v6657_v28  ;;  %2773 = vmatmul.f32.vlgmr.msrb.gmra.mxu0 %v5705_v44  ;;  %v2724_v15 = vand.u32 4294901760, %v2723_v16  ;;  %v2998_v42 = vand.u32 4294901760, %v2997_v24  ;;  %v2679_v63 = vsub.f32 %v5963_v4, %v2678_v59  ;;  %v2685_v46 = vsub.f32 %v2641_v54, %v5983_v20 }
 0x2ef   : > { %2719 = vmatpush.msrb.mxu3 %v2718_v32  ;;  %2856 = vmatpush.msra.mxu2 %v2722_v47  ;;  %v2729_v41 = vsub.f32 %v2727_v56, %v2728_v27  ;;  %v3008_v19 = vand.u32 4294901760, %v3007_v62  ;;  %v3004_v29 = vand.u32 4294901760, %v3003_v48  ;;  %v2644_v58 = vsel %vm1910_vm1, %v1644_v36, 0  ;;  %v1821_v16 = vpop.f32.mrf.mxu1 }
 0x2f0   : > { %2943 = vmatpush.msra.mxu0 %v5958_v22  ;;  %2999 = vmatpush.msra.mxu1 %v2998_v42  ;;  %v1742_v47 = vadd.f32 %v5610_v1, %v5612_v11  ;;  %v1816_v3 = vadd.f32 %v1815_v40, %v1776_v5  ;;  %v2680_v54 = vand.u32 4294901760, %v2679_v63  ;;  %v5998_v52 = vand.u32 4294901760, %v2644_v58 }
 0x2f1   : > { %2725 = vmatpush.msrb.mxu3 %v2724_v15  ;;  %2860 = vmatpush.msra.mxu2 %v2728_v27  ;;  %v2730_v44 = vand.u32 4294901760, %v2729_v41  ;;  %v3009_v43 = vsub.f32 %v3007_v62, %v3008_v19  ;;  %v2686_v55 = vand.u32 4294901760, %v2685_v46 }
 0x2f2   : > { %2945 = vmatpush.msra.mxu0 %v5960_v6  ;;  %3005 = vmatpush.msra.mxu1 %v3004_v29  ;;  %v1861_v7 = vadd.f32 %v5624_v25, %v1816_v3  ;;  %v1781_v11 = vadd.f32 %v1780_v21, %v1742_v47  ;;  %v3207_v29 = vpop.permute.xlu2 %3206 }
 0x2f3   : > { %3044 = vmatpush.msrb.mxu2 %v2995_v57  ;;  %2731 = vmatpush.msrb.mxu3 %v2730_v44  ;;  %v3010_v1 = vand.u32 4294901760, %v3009_v43  ;;  %v2693_v57 = vsub.f32 %v2644_v58, %v5998_v52  ;;  %v2687_v25 = vsub.f32 %v2685_v46, %v2686_v55  ;;  %v6050_v58 = vand.u32 4294901760, %v3207_v29 }
 0x2f4   : > { %2947 = vmatpush.msra.mxu0 %v5980_v35  ;;  %2681 = vmatmul.f32.gmra.mxu2 %v2680_v54  ;;  %v1896_v40 = vadd.f32 %v5622_v14, %v1861_v7 }
 0x2f5   : > { %3047 = vmatpush.msrb.mxu2 %v5969_v61  ;;  %2733 = vmatmul.f32.vlgmr.msrb.gmra.mxu3 %v5690_v0  ;;  %v1746_v61 = vadd.f32 %v5614_v8, %v5616_v2  ;;  %v3209_v2 = vpop.permute.xlu0 %3208  ;;  %v6068_v54 = vsub.f32 %v3207_v29, %v6050_v58 }
 0x2f6   : > { %3132 = vmatpush.msrb.mxu0 %v2996_v53  ;;  %2820 = vmatmul.f32.gmra.mxu1 %v2678_v59  ;;  %v1822_v53 = vadd.f32 %v1821_v16, %v1781_v11  ;;  %v2915_v14 = vsel %vm1910_vm1, %v1896_v40, 0 }
 0x2f7   : > { %2892 = vmatpush.msra.mxu3 %v5947_v26  ;;  %3011 = vmatpush.msra.mxu1 %v3010_v1  ;;  %v1785_v26 = vpop.f32.mrf.mxu0  ;;  %v6019_v56 = vand.u32 4294901760, %v2915_v14 }
 0x2f8   : > { %3050 = vmatpush.msrb.mxu2 %v3007_v62  ;;  %3136 = vmatpush.msrb.mxu0 %v3002_v13  ;;  %v2688_v13 = vand.u32 4294901760, %v2687_v25  ;;  %v1786_v8 = vadd.f32 %v1785_v26, %v1746_v61 }
 0x2f9   : > { %2894 = vmatpush.msra.mxu3 %v5949_v18  ;;  %2778 = vmatmul.f32.gmra.mxu0 %v5963_v4  ;;  %v1865_v18 = vadd.f32 %v5628_v10, %v1822_v53  ;;  %v2694_v4 = vand.u32 4294901760, %v2693_v57  ;;  %v6029_v24 = vsub.f32 %v2915_v14, %v6019_v56 }
 0x2fa   : > { %3172 = vmatpush.msrb.mxu1 %v5958_v22  ;;  %3140 = vmatpush.msrb.mxu0 %v3008_v19  ;;  %v3496_v25 = vpop.permute.xlu2 %3495 }
 0x2fb   : > { %2896 = vmatpush.msra.mxu3 %v5974_v60  ;;  %v1827_v60 = vpop.f32.mrf.mxu1  ;;  %v1900_v10 = vadd.f32 %v5626_v17, %v1865_v18  ;;  %v2695_v59 = vsub.f32 %v2693_v57, %v2694_v4  ;;  %v3511_v61 = vsel %vm1923_vm8, %v3496_v25, 0 }
 0x2fc   : > { %3174 = vmatpush.msrb.mxu1 %v5960_v6  ;;  %2689 = vmatmul.f32.gmra.mxu2 %v2688_v13  ;;  %v1828_v28 = vadd.f32 %v1827_v60, %v1786_v8  ;;  %v6097_v14 = vand.u32 4294901760, %v3511_v61 }
 0x2fd   : > { %3086 = vmatpush.msrb.mxu3 %v5958_v22  ;;  %v3224_v22 = vsel %vm1923_vm8, %v3209_v2, 0  ;;  %v2918_v48 = vsel %vm1910_vm1, %v1900_v10, 0 }
 0x2fe   : > { %3176 = vmatpush.msrb.mxu1 %v5980_v35  ;;  %2737 = vmatmul.f32.gmra.mxu3 %v5943_v34  ;;  %v6026_v32 = vand.u32 4294901760, %v3224_v22  ;;  %v1869_v36 = vadd.f32 %v5632_v23, %v1828_v28  ;;  %v6105_v8 = vsub.f32 %v3511_v61, %v6097_v14 }
 0x2ff   : > { %3088 = vmatpush.msrb.mxu3 %v5960_v6  ;;  %2826 = vmatmul.f32.gmra.mxu1 %v2686_v55  ;;  %v1750_v6 = vadd.f32 %v5618_v37, %v5620_v33  ;;  %v1790_v27 = vpop.f32.mrf.mxu0  ;;  %v2950_v37 = vand.u32 4294901760, %v6029_v24  ;;  %v6038_v33 = vand.u32 4294901760, %v2918_v48 }
 0x300   : > { %v6035_v17 = vsub.f32 %v3224_v22, %v6026_v32  ;;  %v1904_v5 = vadd.f32 %v5630_v30, %v1869_v36  ;;  %v3580_v60 = vand.u32 4294901760, %v6105_v8 }
 0x301   : > { %3090 = vmatpush.msrb.mxu3 %v5980_v35  ;;  %2783 = vmatmul.f32.gmra.mxu0 %v2685_v46  ;;  %v2696_v35 = vand.u32 4294901760, %v2695_v59  ;;  %v1791_v62 = vadd.f32 %v1790_v27, %v1750_v6  ;;  %v2951_v41 = vsub.f32 %v6029_v24, %v2950_v37  ;;  %v6046_v63 = vsub.f32 %v2918_v48, %v6038_v33 }
 0x302   : > { %v3293_v23 = vand.u32 4294901760, %v6035_v17  ;;  %v2921_v19 = vsel %vm1910_vm1, %v1904_v5, 0  ;;  %v3581_v59 = vsub.f32 %v6105_v8, %v3580_v60  ;;  %v3299_v48 = vand.u32 4294901760, %v6068_v54  ;;  %v6136_v27 = vpop.permute.xlu2 %3491 }
 0x303   : > { %v1833_v15 = vpop.f32.mrf.mxu1  ;;  %v2952_v21 = vand.u32 4294901760, %v2951_v41  ;;  %v6057_v44 = vand.u32 4294901760, %v2921_v19  ;;  %v2958_v43 = vand.u32 4294901760, %v6046_v63 }
 0x304   : > { %2697 = vmatmul.f32.gmra.mxu2 %v2696_v35  ;;  %v1834_v42 = vadd.f32 %v1833_v15, %v1791_v62  ;;  %v3294_v30 = vsub.f32 %v6035_v17, %v3293_v23  ;;  %v3582_v6 = vand.u32 4294901760, %v3581_v59  ;;  %v6140_v62 = vand.u32 4294901760, %v6136_v27 }
 0x305   : > { %v6073_v55 = vsub.f32 %v2921_v19, %v6057_v44 }
 0x306   : > { %2741 = vmatmul.f32.gmra.mxu3 %v5983_v20  ;;  %v1873_v46 = vadd.f32 %v5636_v51, %v1834_v42  ;;  %v3205_v51 = vpop.permute.xlu0 %3204  ;;  %v3295_v7 = vand.u32 4294901760, %v3294_v30 }
 0x307   : > { %2832 = vmatmul.f32.gmra.mxu1 %v2694_v4  ;;  %v6064_v3 = vand.u32 4294901760, %v3205_v51  ;;  %v2966_v40 = vand.u32 4294901760, %v6073_v55  ;;  %v6099_v18 = vpop.f32.mrf.mxu0 }
 0x308   : > { %v1908_v47 = vadd.f32 %v5634_v38, %v1873_v46  ;;  %v2959_v38 = vsub.f32 %v6046_v63, %v2958_v43 }
 0x309   : > { %2788 = vmatmul.f32.gmra.mxu0 %v2693_v57  ;;  %v6083_v1 = vsub.f32 %v3205_v51, %v6064_v3 }
 0x30a   : > { %v2924_v16 = vsel %vm1910_vm1, %v1908_v47, 0  ;;  %v2960_v57 = vand.u32 4294901760, %v2959_v38 }
 0x30b   : > { %v6087_v11 = vand.u32 4294901760, %v2924_v16  ;;  %v6093_v53 = vpop.f32.mrf.mxu1 }
 0x30c   : > { %2862 = vmatmul.f32.vlgmr.msra.gmra.mxu2 %v5690_v0 }
 0x30d   : > { %3240 = vmatpush.msra.mxu2 %v6026_v32  ;;  %v2973_v26 = vsub.f32 %v2924_v16, %v6087_v11 }
 0x30e   : > { %2745 = vmatmul.f32.gmra.mxu3 %v5998_v52  ;;  %v6127_v36 = vpop.permute.xlu0 %3493 }
 0x30f   : > { %3013 = vmatmul.f32.vlgmr.msra.gmra.mxu1 %v6019_v56  ;;  %3242 = vmatpush.msra.mxu2 %v6050_v58  ;;  %v2974_v4 = vand.u32 4294901760, %v2973_v26  ;;  %v6113_v10 = vpop.f32.mrf.mxu0 }
 0x310   : > { %3383 = vmatpush.msra.mxu1 %v6026_v32 }
 0x311   : > { %2953 = vmatmul.f32.vlgmr.msra.gmra.mxu0 %v2952_v21  ;;  %3244 = vmatpush.msra.mxu2 %v6064_v3  ;;  %v2975_v2 = vsub.f32 %v2973_v26, %v2974_v4  ;;  %v3300_v21 = vsub.f32 %v6068_v54, %v3299_v48 }
 0x312   : > { %3341 = vmatpush.msra.mxu0 %v6035_v17  ;;  %3385 = vmatpush.msra.mxu1 %v6050_v58 }
 0x313   : > { %v6108_v22 = vpop.f32.mrf.mxu1  ;;  %v3301_v47 = vand.u32 4294901760, %v3300_v21 }
 0x314   : > { %3344 = vmatpush.msra.mxu0 %v6068_v54  ;;  %3387 = vmatpush.msra.mxu1 %v6064_v3 }
 0x315   : > { %2866 = vmatmul.f32.gmra.mxu2 %v5943_v34 }
 0x316   : > { %2898 = vmatmul.f32.vlgmr.msra.gmra.mxu3 %v5690_v0  ;;  %3347 = vmatpush.msra.mxu0 %v6083_v1  ;;  %v2967_v0 = vsub.f32 %v6073_v55, %v2966_v40 }
 0x317   : > { %3017 = vmatmul.f32.gmra.mxu1 %v6038_v33  ;;  %3296 = vmatpush.msra.mxu3 %v3295_v7  ;;  %v6133_v35 = vpop.f32.mrf.mxu0 }
 0x318   : > { %v2968_v13 = vand.u32 4294901760, %v2967_v0 }
 0x319   : > { %2961 = vmatmul.f32.gmra.mxu0 %v2960_v57  ;;  %3302 = vmatpush.msra.mxu3 %v3301_v47 }
 0x31b   : > { %v6120_v28 = vpop.f32.mrf.mxu1 }
 0x31d   : > { %2870 = vmatmul.f32.gmra.mxu2 %v5983_v20 }
 0x31e   : > { %2902 = vmatmul.f32.gmra.mxu3 %v5943_v34  ;;  %v2976_v34 = vand.u32 4294901760, %v2975_v2 }
 0x31f   : > { %3021 = vmatmul.f32.gmra.mxu1 %v6057_v44  ;;  %v6150_v17 = vpop.f32.mrf.mxu0 }
 0x321   : > { %2969 = vmatmul.f32.gmra.mxu0 %v2968_v13 }
 0x325   : > { %2874 = vmatmul.f32.gmra.mxu2 %v5998_v52 }
 0x326   : > { %2906 = vmatmul.f32.gmra.mxu3 %v5983_v20  ;;  %v3305_v20 = vand.u32 4294901760, %v6083_v1 }
 0x327   : > { %3025 = vmatmul.f32.gmra.mxu1 %v6087_v11 }
 0x329   : > { %2977 = vmatmul.f32.gmra.mxu0 %v2976_v34 }
 0x32d   : > { %3053 = vmatmul.f32.vlgmr.msrb.gmra.mxu2 %v6029_v24 }
 0x32e   : > { %2910 = vmatmul.f32.gmra.mxu3 %v5998_v52  ;;  %3429 = vmatpush.msrb.mxu2 %v3293_v23  ;;  %v6131_v52 = vand.u32 4294901760, %v6127_v36 }
 0x32f   : > { %3178 = vmatmul.f32.vlgmr.msrb.gmra.mxu1 %v6019_v56 }
 0x330   : > { %3583 = vmatpush.msrb.mxu1 %v3582_v6  ;;  %3433 = vmatpush.msrb.mxu2 %v3299_v48 }
 0x331   : > { %3142 = vmatmul.f32.vlgmr.msrb.gmra.mxu0 %v6019_v56  ;;  %v6147_v56 = vpop.f32.mrf.mxu1 }
 0x332   : > { %3527 = vmatpush.msrb.mxu0 %v6097_v14  ;;  %3437 = vmatpush.msrb.mxu2 %v3305_v20 }
 0x334   : > { %3529 = vmatpush.msrb.mxu0 %v6131_v52 }
 0x335   : > { %3058 = vmatmul.f32.gmra.mxu2 %v6046_v63 }
 0x336   : > { %3094 = vmatmul.f32.vlgmr.msrb.gmra.mxu3 %v2950_v37  ;;  %3531 = vmatpush.msrb.mxu0 %v6140_v62  ;;  %v6159_v37 = vpop.f32.mrf.mxu0 }
 0x337   : > { %3182 = vmatmul.f32.gmra.mxu1 %v6038_v33 }
 0x339   : > { %3146 = vmatmul.f32.gmra.mxu0 %v6038_v33  ;;  %v6157_v24 = vpop.f32.mrf.mxu1 }
 0x33d   : > { %3063 = vmatmul.f32.gmra.mxu2 %v6073_v55 }
 0x33e   : > { %3100 = vmatmul.f32.gmra.mxu3 %v2958_v43  ;;  %v6165_v5 = vpop.f32.mrf.mxu0 }
 0x33f   : > { %3186 = vmatmul.f32.gmra.mxu1 %v6057_v44 }
 0x341   : > { %3150 = vmatmul.f32.gmra.mxu0 %v6057_v44  ;;  %v6163_v33 = vpop.f32.mrf.mxu1  ;;  %v3306_v44 = vsub.f32 %v6083_v1, %v3305_v20 }
 0x343   : > { %v3307_v7 = vand.u32 4294901760, %v3306_v44 }
 0x345   : > { %3068 = vmatmul.f32.gmra.mxu2 %v2973_v26  ;;  %3308 = vmatpush.msra.mxu3 %v3307_v7 }
 0x346   : > { %3106 = vmatmul.f32.gmra.mxu3 %v2966_v40  ;;  %v6169_v42 = vpop.f32.mrf.mxu0 }
 0x347   : > { %3190 = vmatmul.f32.gmra.mxu1 %v6087_v11  ;;  %3469 = vmatpush.msrb.mxu3 %v6026_v32 }
 0x349   : > { %3154 = vmatmul.f32.gmra.mxu0 %v6087_v11  ;;  %v6167_v15 = vpop.f32.mrf.mxu1  ;;  %3471 = vmatpush.msrb.mxu3 %v6050_v58 }
 0x34b   : > { %3473 = vmatpush.msrb.mxu3 %v6064_v3 }
 0x34e   : > { %3112 = vmatmul.f32.gmra.mxu3 %v2974_v4  ;;  %v6173_v41 = vpop.f32.mrf.mxu0 }
 0x351   : > { %v6171_v23 = vpop.f32.mrf.mxu1 }
 0x36b   : > { %v2815_v63 = vpop.f32.mrf.mxu1  ;;  %v2774_v19 = vpop.f32.mrf.mxu0 }
 0x36f   : > { %v2674_v46 = vpop.f32.mrf.mxu2 }
 0x373   : > { %v2821_v29 = vpop.f32.mrf.mxu1 }
 0x376   : > { %v2779_v30 = vpop.f32.mrf.mxu0 }
 0x377   : > { %v2682_v43 = vpop.f32.mrf.mxu2 }
 0x378   : > { %v2734_v51 = vpop.f32.mrf.mxu3 }
 0x379   : > { %v2735_v25 = vadd.f32 %v2734_v51, %v2674_v46  ;;  %v3585_v46 = vsub.f32 %v6127_v36, %v6131_v52 }
 0x37b   : > { %v2775_v32 = vadd.f32 %v2774_v19, %v2735_v25  ;;  %v3591_v19 = vsub.f32 %v6136_v27, %v6140_v62  ;;  %v3586_v51 = vand.u32 4294901760, %v3585_v46 }
 0x37c   : > { %v2827_v55 = vpop.f32.mrf.mxu1 }
 0x37d   : > { %v2816_v58 = vadd.f32 %v2815_v63, %v2775_v32  ;;  %v3592_v36 = vand.u32 4294901760, %v3591_v19 }
 0x37e   : > { %v2784_v38 = vpop.f32.mrf.mxu0 }
 0x37f   : > { %v2690_v16 = vpop.f32.mrf.mxu2 }
 0x381   : > { %v2738_v11 = vpop.f32.mrf.mxu3 }
 0x382   : > { %v2739_v4 = vadd.f32 %v2738_v11, %v2682_v43 }
 0x384   : > { %v6180_v57 = vpop.f32.mrf.mxu1  ;;  %v2780_v48 = vadd.f32 %v2779_v30, %v2739_v4 }
 0x386   : > { %v6182_v54 = vpop.f32.mrf.mxu0  ;;  %v2822_v43 = vadd.f32 %v2821_v29, %v2780_v48 }
 0x387   : > { %v2698_v1 = vpop.f32.mrf.mxu2 }
 0x389   : > { %v2742_v40 = vpop.f32.mrf.mxu3 }
 0x38a   : > { %v2743_v44 = vadd.f32 %v2742_v40, %v2690_v16  ;;  %v3587_v40 = vsub.f32 %v3585_v46, %v3586_v51 }
 0x38c   : > { %v6184_v61 = vpop.f32.mrf.mxu1  ;;  %v2785_v27 = vadd.f32 %v2784_v38, %v2743_v44 }
 0x38e   : > { %v6186_v26 = vpop.f32.mrf.mxu0 }
 0x38f   : > { %v2863_v13 = vpop.f32.mrf.mxu2 }
 0x390   : > { %v2864_v34 = vadd.f32 %v2863_v13, %v2816_v58 }
 0x391   : > { %v2746_v0 = vpop.f32.mrf.mxu3 }
 0x394   : > { %v6190_v3 = vpop.f32.mrf.mxu1 }
 0x396   : > { %v6188_v2 = vpop.f32.mrf.mxu0 }
 0x398   : > { %v2867_v59 = vpop.f32.mrf.mxu2 }
 0x399   : > { %v2899_v6 = vpop.f32.mrf.mxu3  ;;  %v2868_v30 = vadd.f32 %v2867_v59, %v2822_v43  ;;  %v3593_v59 = vsub.f32 %v3591_v19, %v3592_v36 }
 0x39a   : > { %v6192_v20 = vadd.f32 %v2899_v6, %v2864_v34  ;;  %v3588_v34 = vand.u32 4294901760, %v3587_v40  ;;  %v2747_v6 = vadd.f32 %v2746_v0, %v2698_v1 }
 0x39c   : > { %v3213_v21 = vsel %vm1910_vm1, %v6192_v20, 0  ;;  %v6212_v16 = vpop.f32.mrf.mxu1  ;;  %3589 = vmatpush.msrb.mxu1 %v3588_v34  ;;  %v3015_v34 = vadd.f32 %v6184_v61, %v6186_v26  ;;  %v2013_v26 = vadd.f32 %v6093_v53, %v6099_v18 }
 0x39d   : > { %v6200_v63 = vand.u32 4294901760, %v3213_v21 }
 0x39e   : > { %v6204_v7 = vpop.f32.mrf.mxu0 }
 0x39f   : > { %v3246_v47 = vsub.f32 %v3213_v21, %v6200_v63  ;;  %3310 = vmatmul.f32.vlgmr.msra.gmra.mxu3 %v6200_v63  ;;  %v3594_v21 = vand.u32 4294901760, %v3593_v59 }
 0x3a0   : > { %3670 = vmatpush.msra.mxu3 %v6097_v14  ;;  %v2871_v25 = vpop.f32.mrf.mxu2 }
 0x3a1   : > { %v3247_v11 = vand.u32 4294901760, %v3246_v47  ;;  %v2903_v13 = vpop.f32.mrf.mxu3  ;;  %3350 = vmatmul.f32.vlgmr.msra.gmra.mxu0 %v3246_v47  ;;  %3595 = vmatpush.msrb.mxu1 %v3594_v21 }
 0x3a2   : > { %v6207_v32 = vadd.f32 %v2903_v13, %v2868_v30  ;;  %3716 = vmatpush.msra.mxu0 %v3580_v60  ;;  %3672 = vmatpush.msra.mxu3 %v6131_v52  ;;  %v2828_v60 = vadd.f32 %v2827_v55, %v2785_v27  ;;  %v2790_v30 = vadd.f32 %v6182_v54, %v2747_v6  ;;  %v6249_v6 = vpop.permute.xlu2 %3823 }
 0x3a3   : > { %v3248_v29 = vsub.f32 %v3246_v47, %v3247_v11  ;;  %3391 = vmatmul.f32.vlgmr.msra.gmra.mxu1 %v3247_v11 }
 0x3a4   : > { %v3216_v4 = vsel %vm1910_vm1, %v6207_v32, 0  ;;  %3674 = vmatpush.msra.mxu3 %v6140_v62  ;;  %3720 = vmatpush.msra.mxu0 %v3586_v51  ;;  %v2872_v44 = vadd.f32 %v2871_v25, %v2828_v60  ;;  %v2834_v54 = vadd.f32 %v6180_v57, %v2790_v30 }
 0x3a5   : > { %v3249_v58 = vand.u32 4294901760, %v3248_v29  ;;  %v6217_v38 = vand.u32 4294901760, %v3216_v4  ;;  %3756 = vmatpush.msra.mxu1 %v6097_v14 }
 0x3a6   : > { %3724 = vmatpush.msra.mxu0 %v3592_v36  ;;  %v6225_v55 = vpop.f32.mrf.mxu0 }
 0x3a7   : > { %3250 = vmatmul.f32.vlgmr.msra.gmra.mxu2 %v3249_v58  ;;  %3314 = vmatmul.f32.gmra.mxu3 %v6217_v38  ;;  %v3254_v48 = vsub.f32 %v3216_v4, %v6217_v38 }
 0x3a8   : > { %3628 = vmatpush.msra.mxu2 %v6105_v8  ;;  %v2875_v43 = vpop.f32.mrf.mxu2  ;;  %v6230_v8 = vpop.f32.mrf.mxu1  ;;  %3758 = vmatpush.msra.mxu1 %v6131_v52 }
 0x3a9   : > { %v2907_v51 = vpop.f32.mrf.mxu3  ;;  %3355 = vmatmul.f32.gmra.mxu0 %v3254_v48  ;;  %v3255_v47 = vand.u32 4294901760, %v3254_v48  ;;  %v2876_v13 = vadd.f32 %v2875_v43, %v2834_v54 }
 0x3aa   : > { %v6223_v11 = vadd.f32 %v2907_v51, %v2872_v44  ;;  %3631 = vmatpush.msra.mxu2 %v3585_v46  ;;  %3760 = vmatpush.msra.mxu1 %v6140_v62  ;;  %v2017_v51 = vadd.f32 %v6108_v22, %v6113_v10 }
 0x3ab   : > { %3397 = vmatmul.f32.gmra.mxu1 %v3255_v47  ;;  %v3256_v1 = vsub.f32 %v3254_v48, %v3255_v47 }
 0x3ac   : > { %v3219_v0 = vsel %vm1910_vm1, %v6223_v11, 0  ;;  %3634 = vmatpush.msra.mxu2 %v3591_v19  ;;  %v2058_v30 = vadd.f32 %v5644_v12, %v2017_v51 }
 0x3ad   : > { %v6232_v36 = vand.u32 4294901760, %v3219_v0  ;;  %v3257_v25 = vand.u32 4294901760, %v3256_v1 }
 0x3ae   : > { %v3143_v52 = vpop.f32.mrf.mxu0  ;;  %v2100_v12 = vadd.f32 %v5642_v31, %v2058_v30 }
 0x3af   : > { %3258 = vmatmul.f32.gmra.mxu2 %v3257_v25  ;;  %3318 = vmatmul.f32.gmra.mxu3 %v6232_v36  ;;  %v3262_v46 = vsub.f32 %v3219_v0, %v6232_v36  ;;  %v2021_v0 = vadd.f32 %v6120_v28, %v6133_v35  ;;  %v3019_v25 = vadd.f32 %v6190_v3, %v6188_v2  ;;  %v3794_v35 = vpop.permute.xlu2 %3793 }
 0x3b0   : > { %v3054_v14 = vpop.f32.mrf.mxu2  ;;  %v3179_v59 = vpop.f32.mrf.mxu1 }
 0x3b1   : > { %v2911_v27 = vpop.f32.mrf.mxu3  ;;  %3360 = vmatmul.f32.gmra.mxu0 %v3262_v46  ;;  %v3263_v19 = vand.u32 4294901760, %v3262_v46  ;;  %v3055_v60 = vadd.f32 %v3054_v14, %v3015_v34  ;;  %v2063_v22 = vadd.f32 %v5648_v49, %v2021_v0 }
 0x3b2   : > { %v6239_v29 = vadd.f32 %v2911_v27, %v2876_v13 }
 0x3b3   : > { %3403 = vmatmul.f32.gmra.mxu1 %v3263_v19  ;;  %v3264_v40 = vsub.f32 %v3262_v46, %v3263_v19  ;;  %v2053_v46 = vadd.f32 %v5640_v9, %v2013_v26  ;;  %v2106_v49 = vadd.f32 %v5646_v50, %v2063_v22 }
 0x3b4   : > { %v3222_v57 = vsel %vm1910_vm1, %v6239_v29, 0 }
 0x3b5   : > { %v6243_v4 = vand.u32 4294901760, %v3222_v57  ;;  %v3265_v58 = vand.u32 4294901760, %v3264_v40  ;;  %v2094_v3 = vadd.f32 %v5638_v45, %v2053_v46  ;;  %v2146_v40 = vadd.f32 %v6165_v5, %v2100_v12  ;;  %v6285_v5 = vpop.permute.xlu0 %3803 }
 0x3b6   : > { %v3147_v13 = vpop.f32.mrf.mxu0  ;;  %v2150_v34 = vadd.f32 %v6169_v42, %v2106_v49  ;;  %v6658_v42 = vld [vmem:[#allocation26_spill] sm:$0xff]  ;;  %v4730_v49 = vmov 5  }
 0x3b7   : > { %3266 = vmatmul.f32.gmra.mxu2 %v3265_v58  ;;  %3322 = vmatmul.f32.gmra.mxu3 %v6243_v4  ;;  %v3270_v62 = vsub.f32 %v3222_v57, %v6243_v4  ;;  %v2025_v57 = vadd.f32 %v6147_v56, %v6150_v17  ;;  %v2142_v58 = vadd.f32 %v6159_v37, %v2094_v3  ;;  %v3789_v51 = vpop.permute.xlu2 %3788 }
 0x3b8   : > { %v3059_v48 = vpop.f32.mrf.mxu2  ;;  %v3183_v18 = vpop.f32.mrf.mxu1  ;;  %4681 = vset.pattern.permute.xlu1 %v4730_v49 }
 0x3b9   : > { %v3095_v21 = vpop.f32.mrf.mxu3  ;;  %3365 = vmatmul.f32.gmra.mxu0 %v3270_v62  ;;  %v3271_v44 = vand.u32 4294901760, %v3270_v62  ;;  %v3060_v10 = vadd.f32 %v3059_v48, %v3019_v25  ;;  %v2068_v56 = vadd.f32 %v5652_v39, %v2025_v57 }
 0x3ba   : > { %v3096_v43 = vadd.f32 %v3095_v21, %v3055_v60  ;;  %v3799_v60 = vpop.permute.xlu1 %3798  ;;  %v2178_v21 = vadd.f32 %v6157_v24, %v2142_v58 }
 0x3bb   : > { %3409 = vmatmul.f32.gmra.mxu1 %v3271_v44  ;;  %v3272_v47 = vsub.f32 %v3270_v62, %v3271_v44 }
 0x3bc   : > { %v3144_v61 = vadd.f32 %v3143_v52, %v3096_v43  ;;  %v3023_v52 = vadd.f32 %v6212_v16, %v6204_v7  ;;  %v2182_v16 = vadd.f32 %v6163_v33, %v2146_v40  ;;  %v2112_v33 = vadd.f32 %v6658_v42, %v2068_v56 }
 0x3bd   : > { %v3273_v1 = vand.u32 4294901760, %v3272_v47  ;;  %v2186_v47 = vadd.f32 %v6167_v15, %v2150_v34  ;;  %v3194_v26 = vadd.f32 %v6192_v20, %v2178_v21 }
 0x3be   : > { %v3180_v54 = vadd.f32 %v3179_v59, %v3144_v61  ;;  %v3151_v37 = vpop.f32.mrf.mxu0  ;;  %v3195_v44 = vadd.f32 %v6207_v32, %v2182_v16  ;;  %v3027_v32 = vadd.f32 %v6230_v8, %v6225_v55  ;;  %v2154_v20 = vadd.f32 %v6173_v41, %v2112_v33 }
 0x3bf   : > { %3274 = vmatmul.f32.gmra.mxu2 %v3273_v1  ;;  %3475 = vmatmul.f32.vlgmr.msrb.gmra.mxu3 %v6200_v63  ;;  %v3196_v0 = vadd.f32 %v6223_v11, %v2186_v47  ;;  %v4731_v47 = vmov 4  }
 0x3c0   : > { %v3500_v53 = vsel %vm1910_vm1, %v3180_v54, 0  ;;  %v3064_v14 = vpop.f32.mrf.mxu2  ;;  %v3187_v43 = vpop.f32.mrf.mxu1  ;;  %v3198_v46 = vadd.f32 %v3194_v26, %v3180_v54  ;;  %v2190_v3 = vadd.f32 %v6171_v23, %v2154_v20  ;;  %4680 = vset.pattern.permute.xlu0 %v4731_v47  ;;  %4679 = vset.pattern.permute.xlu2 %v4731_v47  ;;  %v6674_v47 = vld [vmem:[#allocation22_spill] sm:$0xff] }
 0x3c1   : > { %v6265_v27 = vand.u32 4294901760, %v3500_v53  ;;  %v3101_v28 = vpop.f32.mrf.mxu3  ;;  %v3065_v17 = vadd.f32 %v3064_v14, %v3023_v52  ;;  %v6325_v52 = vld [vmem:[%s6619_s8 + $0x18] sm:$0xff] }
 0x3c2   : > { %v3102_v2 = vadd.f32 %v3101_v28, %v3060_v10  ;;  %v3816_v41 = vpop.permute.xlu1 %3815  ;;  %3867 = vperm.xlu1 %4681, %v6325_v52   ;;  %v3197_v58 = vadd.f32 %v6239_v29, %v2190_v3  ;;  %3847 = vperm.xlu2 %4679, %v6325_v52  }
 0x3c3   : > { %v6269_v9 = vsub.f32 %v3500_v53, %v6265_v27  ;;  %3597 = vmatmul.f32.vlgmr.msrb.gmra.mxu1 %v6265_v27 }
 0x3c4   : > { %v3148_v19 = vadd.f32 %v3147_v13, %v3102_v2 }
 0x3c5   : > { %v3534_v31 = vand.u32 4294901760, %v6269_v9 }
 0x3c6   : > { %v3184_v45 = vadd.f32 %v3183_v18, %v3148_v19  ;;  %v3806_v18 = vmul.f32 %v3789_v51, %v3198_v46  ;;  %v3155_v28 = vpop.f32.mrf.mxu0 }
 0x3c7   : > { %3439 = vmatmul.f32.vlgmr.msrb.gmra.mxu2 %v6200_v63  ;;  %3479 = vmatmul.f32.gmra.mxu3 %v6217_v38  ;;  %v3535_v50 = vsub.f32 %v6269_v9, %v3534_v31 }
 0x3c8   : > { %v3503_v7 = vsel %vm1910_vm1, %v3184_v45, 0  ;;  %v3199_v30 = vadd.f32 %v3195_v44, %v3184_v45  ;;  %v3069_v1 = vpop.f32.mrf.mxu2  ;;  %v3191_v19 = vpop.f32.mrf.mxu1 }
 0x3c9   : > { %v3107_v59 = vpop.f32.mrf.mxu3  ;;  %v3536_v63 = vand.u32 4294901760, %v3535_v50  ;;  %v6291_v62 = vand.u32 4294901760, %v3503_v7  ;;  %v3070_v13 = vadd.f32 %v3069_v1, %v3027_v32  ;;  %v3812_v45 = vpop.permute.xlu2 %3811 }
 0x3ca   : > { %v3108_v48 = vadd.f32 %v3107_v59, %v3065_v17  ;;  %v3807_v53 = vmul.f32 %v3794_v35, %v3199_v30  ;;  %v3826_v56 = vadd.f32 %v3812_v45, %v3806_v18  ;;  %v6667_v45 = vld [vmem:[#allocation18_spill] sm:$0xff] }
 0x3cb   : > { %3537 = vmatmul.f32.vlgmr.msrb.gmra.mxu0 %v3536_v63  ;;  %3601 = vmatmul.f32.gmra.mxu1 %v6291_v62  ;;  %v6297_v39 = vsub.f32 %v3503_v7, %v6291_v62 }
 0x3cc   : > { %v3152_v61 = vadd.f32 %v3151_v37, %v3108_v48  ;;  %v3827_v57 = vadd.f32 %v3816_v41, %v3807_v53  ;;  %v6663_v41 = vld [vmem:[#allocation6_spill] sm:$0xff] }
 0x3cd   : > { %v3542_v24 = vand.u32 4294901760, %v6297_v39 }
 0x3ce   : > { %v3188_v25 = vadd.f32 %v3187_v43, %v3152_v61  ;;  %v3831_v59 = vmax.f32 %v3827_v57, 0.0  ;;  %v6351_v43 = vld [vmem:[%s6619_s8 + $0x10] sm:$0xff] }
 0x3cf   : > { %3443 = vmatmul.f32.gmra.mxu2 %v6217_v38  ;;  %3483 = vmatmul.f32.gmra.mxu3 %v6232_v36  ;;  %v3543_v15 = vsub.f32 %v6297_v39, %v3542_v24  ;;  %v3820_v38 = vpop.permute.xlu0 %3819 }
 0x3d0   : > { %v3200_v22 = vadd.f32 %v3196_v0, %v3188_v25  ;;  %v3506_v10 = vsel %vm1910_vm1, %v3188_v25, 0  ;;  %v6346_v44 = vand.u32 4294901760, %v3831_v59  ;;  %3863 = vperm.xlu1 %4681, %v6351_v43   ;;  %3843 = vperm.xlu0 %4680, %v6351_v43   ;;  %v6373_v0 = vld [vmem:[%s6619_s8] sm:$0xff] }
 0x3d1   : > { %v3113_v55 = vpop.f32.mrf.mxu3  ;;  %v3544_v8 = vand.u32 4294901760, %v3543_v15  ;;  %v6313_v11 = vand.u32 4294901760, %v3506_v10 }
 0x3d2   : > { %v3808_v54 = vmul.f32 %v3799_v60, %v3200_v22  ;;  %v3114_v12 = vadd.f32 %v3113_v55, %v3070_v13  ;;  %v3830_v60 = vmax.f32 %v3826_v56, 0.0  ;;  %v3992_v26 = vsub.f32 %v3831_v59, %v6346_v44 }
 0x3d3   : > { %3545 = vmatmul.f32.gmra.mxu0 %v3544_v8  ;;  %3605 = vmatmul.f32.gmra.mxu1 %v6313_v11  ;;  %v6317_v2 = vsub.f32 %v3506_v10, %v6313_v11  ;;  %v6660_v8 = vld [vmem:[#allocation4_spill] sm:$0xff] }
 0x3d4   : > { %v3156_v14 = vadd.f32 %v3155_v28, %v3114_v12  ;;  %v3828_v35 = vadd.f32 %v3820_v38, %v3808_v54  ;;  %v6361_v33 = vand.u32 4294901760, %v3830_v60  ;;  %v3993_v32 = vand.u32 4294901760, %v3992_v26  ;;  %v457_v12 = vpop.permute.xlu2 %456  ;;  %v6661_v38 = vld [vmem:[#allocation5_spill] sm:$0xff]  ;;  %v6662_v28 = vld [vmem:[#allocation3_spill] sm:$0xff] }
 0x3d5   : > { %v3550_v40 = vand.u32 4294901760, %v6317_v2 }
 0x3d6   : > { %v3192_v23 = vadd.f32 %v3191_v19, %v3156_v14  ;;  %v3832_v34 = vmax.f32 %v3828_v35, 0.0  ;;  %v3994_v13 = vsub.f32 %v3992_v26, %v3993_v32  ;;  %v6664_v14 = vld [vmem:[#allocation8_spill] sm:$0xff] }
 0x3d7   : > { %3447 = vmatmul.f32.gmra.mxu2 %v6232_v36  ;;  %3487 = vmatmul.f32.gmra.mxu3 %v6243_v4  ;;  %v3551_v50 = vsub.f32 %v6317_v2, %v3550_v40 }
 0x3d8   : > { %v3201_v17 = vadd.f32 %v3197_v58, %v3192_v23  ;;  %v3509_v7 = vsel %vm1910_vm1, %v3192_v23, 0  ;;  %v6342_v63 = vand.u32 4294901760, %v3832_v34  ;;  %3855 = vperm.xlu1 %4681, %v6373_v0   ;;  %4682 = vset.pattern.permute.xlu0 %v4730_v49  ;;  %v6665_v49 = vld [vmem:[#allocation7_spill] sm:$0xff] }
 0x3d9   : > { %v3552_v16 = vand.u32 4294901760, %v3551_v50  ;;  %v6335_v37 = vand.u32 4294901760, %v3509_v7 }
 0x3da   : > { %v3809_v29 = vmul.f32 %v6285_v5, %v3201_v17  ;;  %v3986_v42 = vsub.f32 %v3832_v34, %v6342_v63  ;;  %v6668_v34 = vld [vmem:[#allocation12_spill] sm:$0xff]  ;;  %v6669_v17 = vld [vmem:[#allocation10_spill] sm:$0xff] }
 0x3db   : > { %3553 = vmatmul.f32.gmra.mxu0 %v3552_v16  ;;  %3609 = vmatmul.f32.gmra.mxu1 %v6335_v37  ;;  %v6340_v36 = vsub.f32 %v3509_v7, %v6335_v37  ;;  %v6670_v16 = vld [vmem:[#allocation20_spill] sm:$0xff] }
 0x3dc   : > { %v3829_v48 = vadd.f32 %v6249_v6, %v3809_v29  ;;  %v3987_v30 = vand.u32 4294901760, %v3986_v42  ;;  %v6671_v29 = vld [vmem:[#allocation13_spill] sm:$0xff] }
 0x3dd   : > { %v3558_v21 = vand.u32 4294901760, %v6340_v36 }
 0x3de   : > { %v3833_v5 = vmax.f32 %v3829_v48, 0.0  ;;  %v3988_v46 = vsub.f32 %v3986_v42, %v3987_v30 }
 0x3df   : > { %3451 = vmatmul.f32.gmra.mxu2 %v6243_v4  ;;  %3678 = vmatmul.f32.vlgmr.msra.gmra.mxu3 %v3534_v31  ;;  %v3559_v6 = vsub.f32 %v6340_v36, %v3558_v21  ;;  %v3998_v31 = vsub.f32 %v3830_v60, %v6361_v33  ;;  %v6672_v60 = vld [vmem:[#allocation19_spill] sm:$0xff] }
 0x3e0   : > { %v3926_v51 = vand.u32 4294901760, %v3833_v5  ;;  %v3989_v22 = vand.u32 4294901760, %v3988_v46 }
 0x3e1   : > { %v3560_v61 = vand.u32 4294901760, %v3559_v6  ;;  %v3999_v15 = vand.u32 4294901760, %v3998_v31 }
 0x3e2   : > { %3927 = vmatpush.msrb.mxu2 %v3926_v51  ;;  %4078 = vmatpush.msrb.mxu1 %v3926_v51  ;;  %v3980_v4 = vsub.f32 %v3833_v5, %v3926_v51 }
 0x3e3   : > { %3561 = vmatmul.f32.gmra.mxu0 %v3560_v61  ;;  %3762 = vmatmul.f32.vlgmr.msra.gmra.mxu1 %v6265_v27  ;;  %v4000_v10 = vsub.f32 %v3998_v31, %v3999_v15 }
 0x3e4   : > { %3929 = vmatpush.msrb.mxu2 %v6342_v63  ;;  %4034 = vmatpush.msrb.mxu0 %v3980_v4  ;;  %v3981_v1 = vand.u32 4294901760, %v3980_v4 }
 0x3e5   : > { %4080 = vmatpush.msrb.mxu1 %v6342_v63  ;;  %v4001_v53 = vand.u32 4294901760, %v4000_v10 }
 0x3e6   : > { %3931 = vmatpush.msrb.mxu2 %v6346_v44  ;;  %4037 = vmatpush.msrb.mxu0 %v3986_v42  ;;  %v3982_v25 = vsub.f32 %v3980_v4, %v3981_v1  ;;  %v6673_v42 = vld [vmem:[#allocation14_spill] sm:$0xff] }
 0x3e7   : > { %4082 = vmatpush.msrb.mxu1 %v6346_v44  ;;  %3637 = vmatmul.f32.vlgmr.msra.gmra.mxu2 %v6269_v9  ;;  %v3995_v9 = vand.u32 4294901760, %v3994_v13  ;;  %v6676_v13 = vld [vmem:[#allocation24_spill] sm:$0xff] }
 0x3e8   : > { %3684 = vmatmul.f32.gmra.mxu3 %v3542_v24  ;;  %3933 = vmatpush.msrb.mxu2 %v6361_v33  ;;  %v3983_v20 = vand.u32 4294901760, %v3982_v25  ;;  %v6389_v24 = vld [vmem:[%s6619_s8 + $0x8] sm:$0xff] }
 0x3e9   : > { %4040 = vmatpush.msrb.mxu0 %v3992_v26  ;;  %4084 = vmatpush.msrb.mxu1 %v6361_v33 }
 0x3ea   : > { %4125 = vmatpush.msra.mxu2 %v3981_v1  ;;  %3984 = vmatpush.msrb.mxu3 %v3983_v20 }
 0x3eb   : > { %4043 = vmatpush.msrb.mxu0 %v3998_v31  ;;  %3766 = vmatmul.f32.gmra.mxu1 %v6291_v62 }
 0x3ec   : > { %3726 = vmatmul.f32.vlgmr.msra.gmra.mxu0 %v6265_v27  ;;  %4129 = vmatpush.msra.mxu2 %v3987_v30  ;;  %v462_v27 = vpop.permute.xlu1 %461  ;;  %v6675_v30 = vld [vmem:[#allocation21_spill] sm:$0xff] }
 0x3ed   : > { %3990 = vmatpush.msrb.mxu3 %v3989_v22  ;;  %3859 = vperm.xlu0 %4682, %v6389_v24   ;;  %v601_v19 = vadd.f32 %v6665_v49, %v462_v27 }
 0x3ee   : > { %4133 = vmatpush.msra.mxu2 %v3993_v32  ;;  %3839 = vperm.xlu2 %4679, %v6389_v24  }
 0x3ef   : > { %3996 = vmatpush.msrb.mxu3 %v3995_v9  ;;  %3642 = vmatmul.f32.gmra.mxu2 %v6297_v39  ;;  %v6659_v39 = vld [vmem:[#allocation2_spill] sm:$0xff]  ;;  %v706_v56 = vadd.f32 %v6668_v34, %v601_v19 }
 0x3f0   : > { %3690 = vmatmul.f32.gmra.mxu3 %v3550_v40  ;;  %4137 = vmatpush.msra.mxu2 %v3999_v15  ;;  %v6666_v40 = vld [vmem:[#allocation9_spill] sm:$0xff] }
 0x3f1   : > { %4002 = vmatpush.msrb.mxu3 %v4001_v53 }
 0x3f3   : > { %4168 = vmatpush.msra.mxu3 %v3926_v51  ;;  %3770 = vmatmul.f32.gmra.mxu1 %v6313_v11 }
 0x3f4   : > { %3730 = vmatmul.f32.gmra.mxu0 %v6291_v62  ;;  %v452_v62 = vpop.permute.xlu1 %451 }
 0x3f5   : > { %4170 = vmatpush.msra.mxu3 %v6342_v63  ;;  %v585_v55 = vadd.f32 %v6659_v39, %v452_v62 }
 0x3f6   : > { %3835 = vperm.xlu2 %4679, %v6373_v0  }
 0x3f7   : > { %4172 = vmatpush.msra.mxu3 %v6346_v44  ;;  %3647 = vmatmul.f32.gmra.mxu2 %v6317_v2  ;;  %v698_v54 = vadd.f32 %v6660_v8, %v585_v55  ;;  %v593_v2 = vadd.f32 %v6662_v28, %v457_v12 }
 0x3f8   : > { %3696 = vmatmul.f32.gmra.mxu3 %v3558_v21 }
 0x3f9   : > { %4174 = vmatpush.msra.mxu3 %v6361_v33  ;;  %v776_v18 = vadd.f32 %v6661_v38, %v698_v54  ;;  %v702_v35 = vadd.f32 %v6664_v14, %v593_v2  ;;  %v3878_v54 = vld [vmem:[%s6614_s3] sm:$0xff] }
 0x3fa   : > { %v3903_v12 = vsel %vm489_vm0, %v3878_v54, 0  ;;  %v6679_v54 = vld [vmem:[#allocation16_spill] sm:$0xff] }
 0x3fb   : > { %3774 = vmatmul.f32.gmra.mxu1 %v6335_v37  ;;  %v862_v3 = vadd.f32 %v6663_v41, %v776_v18  ;;  %v781_v57 = vadd.f32 %v6666_v40, %v702_v35  ;;  %v6437_v18 = vand.u32 4294901760, %v3903_v12  ;;  %v3879_v40 = vld [vmem:[%s6614_s3 + $0x8] sm:$0xff] }
 0x3fc   : > { %3734 = vmatmul.f32.gmra.mxu0 %v6313_v11 }
 0x3fd   : > { %v953_v58 = vadd.f32 %v6667_v45, %v862_v3  ;;  %v868_v7 = vadd.f32 %v6669_v17, %v781_v57  ;;  %v3935_v2 = vsub.f32 %v3903_v12, %v6437_v18  ;;  %v3906_v57 = vsel %vm489_vm0, %v3879_v40, 0  ;;  %v6681_v40 = vld [vmem:[#allocation23_spill] sm:$0xff] }
 0x3ff   : > { %3652 = vmatmul.f32.gmra.mxu2 %v6340_v36  ;;  %v786_v36 = vadd.f32 %v6671_v29, %v706_v56  ;;  %v957_v48 = vadd.f32 %v6672_v60, %v868_v7  ;;  %v3936_v35 = vand.u32 4294901760, %v3935_v2 }
 0x400   : > { %4004 = vmatmul.f32.vlgmr.msrb.gmra.mxu3 %v6437_v18 }
 0x401   : > { %v874_v33 = vadd.f32 %v6673_v42, %v786_v36  ;;  %v1026_v61 = vadd.f32 %v6674_v47, %v957_v48  ;;  %v3937_v19 = vsub.f32 %v3935_v2, %v3936_v35 }
 0x403   : > { %v1057_v31 = vmax.f32 %v1026_v61, 0.0  ;;  %v961_v1 = vadd.f32 %v6675_v30, %v874_v33  ;;  %4088 = vmatmul.f32.vlgmr.msrb.gmra.mxu1 %v3936_v35  ;;  %v3938_v45 = vand.u32 4294901760, %v3937_v19  ;;  %v3881_v33 = vld [vmem:[%s6614_s3 + $0x18] sm:$0xff] }
 0x404   : > { %3738 = vmatmul.f32.gmra.mxu0 %v6335_v37  ;;  %v1022_v37 = vadd.f32 %v6670_v16, %v953_v58  ;;  %v6453_v58 = vand.u32 4294901760, %v3906_v57  ;;  %v6680_v35 = vld [vmem:[#allocation17_spill] sm:$0xff] }
 0x405   : > { %v1030_v22 = vadd.f32 %v6676_v13, %v961_v1 }
 0x406   : > { %v1056_v63 = vmax.f32 %v1022_v37, 0.0  ;;  %v3880_v37 = vld [vmem:[%s6614_s3 + $0x10] sm:$0xff] }
 0x407   : > { %v1058_v27 = vmax.f32 %v1030_v22, 0.0  ;;  %3939 = vmatmul.f32.vlgmr.msrb.gmra.mxu2 %v3938_v45  ;;  %v3909_v29 = vsel %vm489_vm0, %v3880_v37, 0  ;;  %v6677_v22 = vld [vmem:[#allocation11_spill] sm:$0xff] }
 0x408   : > { %4008 = vmatmul.f32.gmra.mxu3 %v6453_v58  ;;  %v6465_v60 = vand.u32 4294901760, %v3909_v29 }
 0x40a   : > { %v3951_v48 = vsub.f32 %v3909_v29, %v6465_v60 }
 0x40c   : > { %4046 = vmatmul.f32.vlgmr.msrb.gmra.mxu0 %v3935_v2 }
 0x410   : > { %4012 = vmatmul.f32.gmra.mxu3 %v6465_v60 }
 0x41c   : > { %v6492_v19 = vpop.permute.xlu2 %3847 }
 0x41e   : > { %v3351_v23 = vpop.f32.mrf.mxu0 }
 0x420   : > { %v3392_v11 = vpop.f32.mrf.mxu1 }
 0x422   : > { %v3311_v50 = vpop.f32.mrf.mxu3 }
 0x426   : > { %v3356_v6 = vpop.f32.mrf.mxu0 }
 0x428   : > { %v3398_v59 = vpop.f32.mrf.mxu1 }
 0x42a   : > { %v3251_v21 = vpop.f32.mrf.mxu2  ;;  %v3315_v44 = vpop.f32.mrf.mxu3 }
 0x42b   : > { %v3252_v5 = vadd.f32 %v3251_v21, %v1056_v63 }
 0x42d   : > { %v3312_v51 = vadd.f32 %v3311_v50, %v3252_v5 }
 0x42e   : > { %v3361_v10 = vpop.f32.mrf.mxu0 }
 0x42f   : > { %v3352_v26 = vadd.f32 %v3351_v23, %v3312_v51  ;;  %v3943_v23 = vsub.f32 %v3906_v57, %v6453_v58  ;;  %v3912_v51 = vsel %vm489_vm0, %v3881_v33, 0 }
 0x430   : > { %v3404_v4 = vpop.f32.mrf.mxu1  ;;  %v6475_v61 = vand.u32 4294901760, %v3912_v51 }
 0x431   : > { %v3393_v32 = vadd.f32 %v3392_v11, %v3352_v26  ;;  %v3944_v34 = vand.u32 4294901760, %v3943_v23  ;;  %4051 = vmatmul.f32.gmra.mxu0 %v3943_v23 }
 0x432   : > { %v3259_v25 = vpop.f32.mrf.mxu2  ;;  %v3319_v46 = vpop.f32.mrf.mxu3  ;;  %4016 = vmatmul.f32.gmra.mxu3 %v6475_v61 }
 0x433   : > { %v3260_v15 = vadd.f32 %v3259_v25, %v1057_v31  ;;  %v3945_v16 = vsub.f32 %v3943_v23, %v3944_v34  ;;  %4094 = vmatmul.f32.gmra.mxu1 %v3944_v34  ;;  %v6682_v23 = vld [vmem:[#allocation25_spill] sm:$0xff] }
 0x435   : > { %v3316_v20 = vadd.f32 %v3315_v44, %v3260_v15  ;;  %v3946_v63 = vand.u32 4294901760, %v3945_v16  ;;  %v3952_v44 = vand.u32 4294901760, %v3951_v48  ;;  %v467_v15 = vpop.permute.xlu0 %466 }
 0x436   : > { %v6441_v41 = vpop.f32.mrf.mxu0 }
 0x437   : > { %v3357_v9 = vadd.f32 %v3356_v6, %v3316_v20  ;;  %3947 = vmatmul.f32.gmra.mxu2 %v3946_v63  ;;  %v3953_v42 = vsub.f32 %v3951_v48, %v3952_v44 }
 0x438   : > { %v6427_v53 = vpop.f32.mrf.mxu1 }
 0x439   : > { %v6429_v62 = vadd.f32 %v3398_v59, %v3357_v9  ;;  %4056 = vmatmul.f32.gmra.mxu0 %v3951_v48  ;;  %v3954_v47 = vand.u32 4294901760, %v3953_v42 }
 0x43a   : > { %v3267_v39 = vpop.f32.mrf.mxu2  ;;  %v6431_v55 = vpop.f32.mrf.mxu3  ;;  %4176 = vmatmul.f32.vlgmr.msra.gmra.mxu3 %v6437_v18 }
 0x43b   : > { %v3268_v8 = vadd.f32 %v3267_v39, %v1058_v27  ;;  %4100 = vmatmul.f32.gmra.mxu1 %v3952_v44  ;;  %v6678_v27 = vld [vmem:[#allocation15_spill] sm:$0xff] }
 0x43d   : > { %v3320_v38 = vadd.f32 %v3319_v46, %v3268_v8 }
 0x43f   : > { %v3362_v28 = vadd.f32 %v3361_v10, %v3320_v38  ;;  %3955 = vmatmul.f32.gmra.mxu2 %v3954_v47  ;;  %v609_v10 = vadd.f32 %v6677_v22, %v467_v15 }
 0x440   : > { %v6443_v3 = vpop.f32.mrf.mxu1 }
 0x441   : > { %v6445_v14 = vadd.f32 %v3404_v4, %v3362_v28  ;;  %v3959_v4 = vsub.f32 %v3912_v51, %v6475_v61  ;;  %v710_v39 = vadd.f32 %v6678_v27, %v609_v10 }
 0x442   : > { %v6447_v11 = vpop.f32.mrf.mxu2  ;;  %v3476_v49 = vpop.f32.mrf.mxu3  ;;  %4180 = vmatmul.f32.gmra.mxu3 %v6453_v58 }
 0x443   : > { %v3960_v30 = vand.u32 4294901760, %v3959_v4  ;;  %4061 = vmatmul.f32.gmra.mxu0 %v3959_v4  ;;  %v791_v12 = vadd.f32 %v6679_v54, %v710_v39 }
 0x445   : > { %4106 = vmatmul.f32.gmra.mxu1 %v3960_v30 }
 0x448   : > { %v3538_v50 = vpop.f32.mrf.mxu0  ;;  %v3602_v59 = vpop.f32.mrf.mxu1 }
 0x449   : > { %v3599_v45 = vadd.f32 %v6443_v3, %v3538_v50  ;;  %v3840_v51 = vpop.permute.xlu2 %3839 }
 0x44a   : > { %v3440_v56 = vpop.f32.mrf.mxu2  ;;  %v6457_v17 = vpop.f32.mrf.mxu3  ;;  %4184 = vmatmul.f32.gmra.mxu3 %v6465_v60 }
 0x44b   : > { %v3441_v7 = vadd.f32 %v3440_v56, %v3393_v32  ;;  %v3961_v32 = vsub.f32 %v3959_v4, %v3960_v30  ;;  %v3844_v4 = vpop.permute.xlu0 %3843 }
 0x44d   : > { %v6463_v36 = vadd.f32 %v3476_v49, %v3441_v7  ;;  %v3962_v46 = vand.u32 4294901760, %v3961_v32  ;;  %v880_v49 = vadd.f32 %v6680_v35, %v791_v12  ;;  %v6499_v7 = vpop.permute.xlu1 %3867 }
 0x44f   : > { %3963 = vmatmul.f32.gmra.mxu2 %v3962_v46  ;;  %v965_v57 = vadd.f32 %v6681_v40, %v880_v49 }
 0x450   : > { %v3546_v21 = vpop.f32.mrf.mxu0  ;;  %v3606_v26 = vpop.f32.mrf.mxu1 }
 0x451   : > { %v1034_v34 = vadd.f32 %v6682_v23, %v965_v57  ;;  %v3603_v56 = vadd.f32 %v3602_v59, %v3546_v21 }
 0x452   : > { %v3444_v5 = vpop.f32.mrf.mxu2  ;;  %v6469_v6 = vpop.f32.mrf.mxu3  ;;  %4188 = vmatmul.f32.gmra.mxu3 %v6475_v61 }
 0x453   : > { %v1059_v44 = vmax.f32 %v1034_v34, 0.0  ;;  %v3445_v59 = vadd.f32 %v3444_v5, %v6429_v62 }
 0x455   : > { %v3276_v3 = vadd.f32 %v6447_v11, %v1059_v44  ;;  %v3864_v15 = vpop.permute.xlu1 %3863  ;;  %v3481_v10 = vadd.f32 %v6457_v17, %v3445_v59 }
 0x457   : > { %4139 = vmatmul.f32.vlgmr.msra.gmra.mxu2 %v6437_v18  ;;  %v3324_v11 = vadd.f32 %v6431_v55, %v3276_v3  ;;  %v3883_v3 = vld [vmem:[%s6614_s3 + $0x28] sm:$0xff] }
 0x458   : > { %v3554_v31 = vpop.f32.mrf.mxu0  ;;  %v6482_v20 = vpop.f32.mrf.mxu1 }
 0x459   : > { %v3607_v21 = vadd.f32 %v3606_v26, %v3554_v31  ;;  %v3367_v27 = vadd.f32 %v6441_v41, %v3324_v11  ;;  %v4733_v11 = vmov 7  }
 0x45a   : > { %v3448_v1 = vpop.f32.mrf.mxu2  ;;  %v6479_v25 = vpop.f32.mrf.mxu3 }
 0x45b   : > { %v3449_v62 = vadd.f32 %v3448_v1, %v6445_v14  ;;  %v3411_v14 = vadd.f32 %v6427_v53, %v3367_v27 }
 0x45d   : > { %v3485_v54 = vadd.f32 %v6469_v6, %v3449_v62  ;;  %v3882_v6 = vld [vmem:[%s6614_s3 + $0x20] sm:$0xff]  ;;  %v3856_v40 = vpop.permute.xlu1 %3855 }
 0x45e   : > { %v4209_v53 = vsel %vm489_vm0, %v3882_v6, 0 }
 0x45f   : > { %4143 = vmatmul.f32.gmra.mxu2 %v6453_v58  ;;  %v4732_v58 = vmov 6   ;;  %v3860_v49 = vpop.permute.xlu0 %3859 }
 0x460   : > { %v3562_v13 = vpop.f32.mrf.mxu0  ;;  %v3763_v28 = vpop.f32.mrf.mxu1  ;;  %4684 = vset.pattern.permute.xlu1 %v4732_v58  ;;  %4685 = vset.pattern.permute.xlu0 %v4732_v58 }
 0x461   : > { %3891 = vperm.xlu1 %4684, %v6389_v24   ;;  %4683 = vset.pattern.permute.xlu2 %v4732_v58  ;;  %v3611_v55 = vadd.f32 %v6482_v20, %v3562_v13 }
 0x462   : > { %v6485_v9 = vpop.f32.mrf.mxu2  ;;  %v3679_v8 = vpop.f32.mrf.mxu3  ;;  %3899 = vperm.xlu0 %4685, %v6325_v52   ;;  %3887 = vperm.xlu2 %4683, %v6373_v0  }
 0x467   : > { %4147 = vmatmul.f32.gmra.mxu2 %v6465_v60 }
 0x468   : > { %v3767_v48 = vpop.f32.mrf.mxu1 }
 0x469   : > { %v3727_v38 = vpop.f32.mrf.mxu0  ;;  %4686 = vset.pattern.permute.xlu1 %v4733_v11 }
 0x46a   : > { %v3638_v2 = vpop.f32.mrf.mxu2  ;;  %3895 = vperm.xlu2 %4683, %v6351_v43   ;;  %4193 = vperm.xlu1 %4686, %v6373_v0  }
 0x46b   : > { %v3685_v18 = vpop.f32.mrf.mxu3  ;;  %v3639_v16 = vadd.f32 %v3638_v2, %v3599_v45  ;;  %v3836_v2 = vpop.permute.xlu2 %3835  ;;  %4688 = vset.pattern.permute.xlu0 %v4733_v11 }
 0x46d   : > { %v3680_v42 = vadd.f32 %v3679_v8, %v3639_v16 }
 0x46f   : > { %v3728_v47 = vadd.f32 %v3727_v38, %v3680_v42  ;;  %4151 = vmatmul.f32.gmra.mxu2 %v6475_v61  ;;  %v3453_v61 = vadd.f32 %v6485_v9, %v3411_v14 }
 0x470   : > { %v3771_v31 = vpop.f32.mrf.mxu1 }
 0x471   : > { %v3731_v37 = vpop.f32.mrf.mxu0  ;;  %v3764_v5 = vadd.f32 %v3763_v28, %v3728_v47 }
 0x472   : > { %v3643_v29 = vpop.f32.mrf.mxu2  ;;  %4687 = vset.pattern.permute.xlu2 %v4733_v11  ;;  %4201 = vperm.xlu1 %4686, %v6351_v43  }
 0x473   : > { %v3644_v63 = vadd.f32 %v3643_v29, %v3603_v56  ;;  %v3691_v30 = vpop.f32.mrf.mxu3  ;;  %v3778_v12 = vadd.f32 %v3764_v5, %v6463_v36  ;;  %v3489_v56 = vadd.f32 %v6479_v25, %v3453_v61  ;;  %4197 = vperm.xlu2 %4687, %v6389_v24  }
 0x475   : > { %v3686_v33 = vadd.f32 %v3685_v18, %v3644_v63  ;;  %v3850_v20 = vmul.f32 %v3836_v2, %v3778_v12  ;;  %v6524_v63 = vand.u32 4294901760, %v4209_v53  ;;  %v3885_v2 = vld [vmem:[%s6614_s3 + $0x38] sm:$0xff] }
 0x477   : > { %v3732_v50 = vadd.f32 %v3731_v37, %v3686_v33  ;;  %v3870_v16 = vadd.f32 %v3856_v40, %v3850_v20 }
 0x478   : > { %v3775_v34 = vpop.f32.mrf.mxu1 }
 0x479   : > { %v3768_v46 = vadd.f32 %v3767_v48, %v3732_v50  ;;  %v3735_v22 = vpop.f32.mrf.mxu0  ;;  %v3874_v44 = vmax.f32 %v3870_v16, 0.0  ;;  %v4241_v50 = vsub.f32 %v4209_v53, %v6524_v63 }
 0x47a   : > { %v3648_v32 = vpop.f32.mrf.mxu2 }
 0x47b   : > { %v3649_v60 = vadd.f32 %v3648_v32, %v3607_v21  ;;  %v3779_v8 = vadd.f32 %v3768_v46, %v3481_v10  ;;  %v3697_v35 = vpop.f32.mrf.mxu3  ;;  %v6537_v59 = vand.u32 4294901760, %v3874_v44  ;;  %4205 = vperm.xlu2 %4687, %v6325_v52  }
 0x47d   : > { %v3692_v26 = vadd.f32 %v3691_v30, %v3649_v60  ;;  %v3851_v28 = vmul.f32 %v3840_v51, %v3779_v8  ;;  %v4212_v51 = vsel %vm489_vm0, %v3883_v3, 0 }
 0x47e   : > { %v6541_v32 = vand.u32 4294901760, %v4212_v51 }
 0x47f   : > { %v3736_v39 = vadd.f32 %v3735_v22, %v3692_v26  ;;  %v3871_v45 = vadd.f32 %v3860_v49, %v3851_v28  ;;  %v4218_v28 = vsel %vm489_vm0, %v3885_v2, 0 }
 0x480   : > { %v4249_v0 = vsub.f32 %v4212_v51, %v6541_v32  ;;  %v4264_v6 = vand.u32 4294901760, %v4218_v28 }
 0x481   : > { %v3772_v38 = vadd.f32 %v3771_v31, %v3736_v39  ;;  %v3739_v57 = vpop.f32.mrf.mxu0  ;;  %v3875_v48 = vmax.f32 %v3871_v45, 0.0 }
 0x482   : > { %v3653_v17 = vpop.f32.mrf.mxu2  ;;  %v4265_v20 = vsub.f32 %v4218_v28, %v4264_v6 }
 0x483   : > { %v3780_v1 = vadd.f32 %v3772_v38, %v3485_v54  ;;  %v3654_v41 = vadd.f32 %v3653_v17, %v3611_v55  ;;  %v6533_v58 = vand.u32 4294901760, %v3875_v48  ;;  %v4250_v54 = vand.u32 4294901760, %v4249_v0  ;;  %v4005_v40 = vpop.f32.mrf.mxu3 }
 0x484   : > { %v4266_v52 = vand.u32 4294901760, %v4265_v20 }
 0x485   : > { %v3852_v36 = vmul.f32 %v3844_v4, %v3780_v1  ;;  %v3698_v13 = vadd.f32 %v3697_v35, %v3654_v41  ;;  %v4298_v4 = vsub.f32 %v3875_v48, %v6533_v58  ;;  %v4251_v14 = vsub.f32 %v4249_v0, %v4250_v54 }
 0x487   : > { %v3740_v18 = vadd.f32 %v3739_v57, %v3698_v13  ;;  %v3872_v23 = vadd.f32 %v3864_v15, %v3852_v36  ;;  %v3884_v15 = vld [vmem:[%s6614_s3 + $0x30] sm:$0xff]  ;;  %v4299_v62 = vand.u32 4294901760, %v4298_v4  ;;  %v4252_v35 = vand.u32 4294901760, %v4251_v14 }
 0x488   : > { %v4215_v24 = vsel %vm489_vm0, %v3884_v15, 0  ;;  %v4267_v36 = vsub.f32 %v4265_v20, %v4266_v52 }
 0x489   : > { %v3776_v37 = vadd.f32 %v3775_v34, %v3740_v18  ;;  %v3876_v29 = vmax.f32 %v3872_v23, 0.0  ;;  %v4300_v8 = vsub.f32 %v4298_v4, %v4299_v62  ;;  %v4256_v55 = vand.u32 4294901760, %v4215_v24  ;;  %v4047_v16 = vpop.f32.mrf.mxu0 }
 0x48a   : > { %v4268_v13 = vand.u32 4294901760, %v4267_v36  ;;  %v3940_v57 = vpop.f32.mrf.mxu2 }
 0x48b   : > { %v3781_v9 = vadd.f32 %v3776_v37, %v3489_v56  ;;  %v6527_v33 = vand.u32 4294901760, %v3876_v29  ;;  %v4301_v17 = vand.u32 4294901760, %v4300_v8  ;;  %v4257_v1 = vsub.f32 %v4215_v24, %v4256_v55  ;;  %v4009_v45 = vpop.f32.mrf.mxu3  ;;  %v4089_v37 = vpop.f32.mrf.mxu1  ;;  %v4707_v24 = vld [vmem:[%s4930_s15 + $0x8] sm:$0xff] }
 0x48d   : > { %v3853_v42 = vmul.f32 %v6492_v19, %v3781_v9  ;;  %v4292_v47 = vsub.f32 %v3876_v29, %v6527_v33  ;;  %v4242_v19 = vand.u32 4294901760, %v4241_v50  ;;  %v4258_v49 = vand.u32 4294901760, %v4257_v1 }
 0x48f   : > { %v3873_v25 = vadd.f32 %v6499_v7, %v3853_v42  ;;  %v4304_v7 = vsub.f32 %v3874_v44, %v6537_v59  ;;  %v4293_v46 = vand.u32 4294901760, %v4292_v47  ;;  %v4243_v22 = vsub.f32 %v4241_v50, %v4242_v19 }
 0x490   : > { %v4259_v61 = vsub.f32 %v4257_v1, %v4258_v49 }
 0x491   : > { %v3877_v21 = vmax.f32 %v3873_v25, 0.0  ;;  %v4294_v26 = vsub.f32 %v4292_v47, %v4293_v46  ;;  %v4305_v31 = vand.u32 4294901760, %v4304_v7  ;;  %v4244_v27 = vand.u32 4294901760, %v4243_v22 }
 0x492   : > { %v4260_v43 = vand.u32 4294901760, %v4259_v61 }
 0x493   : > { %v4232_v30 = vand.u32 4294901760, %v3877_v21  ;;  %v4295_v12 = vand.u32 4294901760, %v4294_v26  ;;  %v4306_v38 = vsub.f32 %v4304_v7, %v4305_v31  ;;  %v4013_v23 = vpop.f32.mrf.mxu3 }
 0x495   : > { %4233 = vmatpush.msra.mxu0 %v4232_v30  ;;  %4384 = vmatpush.msrb.mxu3 %v4232_v30  ;;  %v4286_v60 = vsub.f32 %v3877_v21, %v4232_v30  ;;  %v4307_v41 = vand.u32 4294901760, %v4306_v38 }
 0x497   : > { %4235 = vmatpush.msra.mxu0 %v6527_v33  ;;  %4340 = vmatpush.msrb.mxu2 %v4286_v60  ;;  %v4287_v10 = vand.u32 4294901760, %v4286_v60 }
 0x498   : > { %4386 = vmatpush.msrb.mxu3 %v6527_v33 }
 0x499   : > { %4237 = vmatpush.msra.mxu0 %v6533_v58  ;;  %4343 = vmatpush.msrb.mxu2 %v4292_v47  ;;  %v4288_v5 = vsub.f32 %v4286_v60, %v4287_v10  ;;  %v4706_v47 = vld [vmem:[%s4930_s15] sm:$0xff] }
 0x49a   : > { %4388 = vmatpush.msrb.mxu3 %v6533_v58 }
 0x49b   : > { %4239 = vmatpush.msra.mxu0 %v6537_v59  ;;  %4346 = vmatpush.msrb.mxu2 %v4298_v4  ;;  %v4289_v39 = vand.u32 4294901760, %v4288_v5 }
 0x49c   : > { %4390 = vmatpush.msrb.mxu3 %v6537_v59  ;;  %4245 = vmatmul.f32.vlgmr.msra.gmra.mxu0 %v4244_v27 }
 0x49d   : > { %4431 = vmatpush.msrb.mxu0 %v4287_v10  ;;  %4290 = vmatpush.msra.mxu1 %v4289_v39 }
 0x49e   : > { %4349 = vmatpush.msrb.mxu2 %v4304_v7  ;;  %4394 = vmatmul.f32.vlgmr.msrb.gmra.mxu3 %v4242_v19 }
 0x49f   : > { %4435 = vmatpush.msrb.mxu0 %v4293_v46  ;;  %4352 = vmatmul.f32.vlgmr.msrb.gmra.mxu2 %v4241_v50 }
 0x4a0   : > { %4296 = vmatpush.msra.mxu1 %v4295_v12 }
 0x4a1   : > { %4439 = vmatpush.msrb.mxu0 %v4299_v62 }
 0x4a2   : > { %4302 = vmatpush.msra.mxu1 %v4301_v17 }
 0x4a3   : > { %4443 = vmatpush.msrb.mxu0 %v4305_v31 }
 0x4a4   : > { %4308 = vmatpush.msra.mxu1 %v4307_v41  ;;  %4253 = vmatmul.f32.gmra.mxu0 %v4252_v35 }
 0x4a5   : > { %4310 = vmatmul.f32.vlgmr.msra.gmra.mxu1 %v6524_v63 }
 0x4a6   : > { %4474 = vmatpush.msrb.mxu1 %v4232_v30  ;;  %4400 = vmatmul.f32.gmra.mxu3 %v4250_v54 }
 0x4a7   : > { %4357 = vmatmul.f32.gmra.mxu2 %v4249_v0 }
 0x4a8   : > { %4476 = vmatpush.msrb.mxu1 %v6527_v33 }
 0x4aa   : > { %4478 = vmatpush.msrb.mxu1 %v6533_v58 }
 0x4ac   : > { %4480 = vmatpush.msrb.mxu1 %v6537_v59  ;;  %4261 = vmatmul.f32.gmra.mxu0 %v4260_v43 }
 0x4ad   : > { %4314 = vmatmul.f32.gmra.mxu1 %v6541_v32 }
 0x4ae   : > { %4406 = vmatmul.f32.gmra.mxu3 %v4258_v49  ;;  %v4052_v42 = vpop.f32.mrf.mxu0 }
 0x4af   : > { %4362 = vmatmul.f32.gmra.mxu2 %v4257_v1  ;;  %v4708_v1 = vld [vmem:[%s4930_s15 + $0x10] sm:$0xff] }
 0x4b0   : > { %v4095_v33 = vpop.f32.mrf.mxu1 }
 0x4b4   : > { %4269 = vmatmul.f32.gmra.mxu0 %v4268_v13 }
 0x4b5   : > { %4318 = vmatmul.f32.gmra.mxu1 %v4256_v55 }
 0x4b6   : > { %4412 = vmatmul.f32.gmra.mxu3 %v4266_v52  ;;  %v4057_v60 = vpop.f32.mrf.mxu0  ;;  %v4709_v52 = vld [vmem:[%s4930_s15 + $0x18] sm:$0xff] }
 0x4b7   : > { %4367 = vmatmul.f32.gmra.mxu2 %v4265_v20 }
 0x4b8   : > { %v4101_v22 = vpop.f32.mrf.mxu1 }
 0x4ba   : > { %v3948_v18 = vpop.f32.mrf.mxu2 }
 0x4bc   : > { %4445 = vmatmul.f32.vlgmr.msrb.gmra.mxu0 %v6524_v63  ;;  %v3888_v53 = vpop.permute.xlu2 %3887 }
 0x4bd   : > { %4322 = vmatmul.f32.gmra.mxu1 %v4264_v6  ;;  %v3941_v56 = vadd.f32 %v3940_v57, %v3888_v53 }
 0x4bf   : > { %v4006_v29 = vadd.f32 %v4005_v40, %v3941_v56 }
 0x4c0   : > { %v4062_v17 = vpop.f32.mrf.mxu0 }
 0x4c1   : > { %v4048_v9 = vadd.f32 %v4047_v16, %v4006_v29 }
 0x4c2   : > { %v3956_v34 = vpop.f32.mrf.mxu2  ;;  %v4107_v14 = vpop.f32.mrf.mxu1 }
 0x4c3   : > { %v4090_v44 = vadd.f32 %v4089_v37, %v4048_v9 }
 0x4c4   : > { %4449 = vmatmul.f32.gmra.mxu0 %v6541_v32  ;;  %v3896_v11 = vpop.permute.xlu2 %3895 }
 0x4c5   : > { %4482 = vmatmul.f32.vlgmr.msrb.gmra.mxu1 %v6524_v63  ;;  %v4017_v63 = vpop.f32.mrf.mxu3  ;;  %v3957_v46 = vadd.f32 %v3956_v34, %v3896_v11 }
 0x4c7   : > { %v4014_v62 = vadd.f32 %v4013_v23, %v3957_v46 }
 0x4c9   : > { %v4058_v26 = vadd.f32 %v4057_v60, %v4014_v62 }
 0x4cb   : > { %v4102_v27 = vadd.f32 %v4101_v22, %v4058_v26 }
 0x4cc   : > { %4453 = vmatmul.f32.gmra.mxu0 %v4256_v55 }
 0x4cd   : > { %4486 = vmatmul.f32.gmra.mxu1 %v6541_v32  ;;  %v4177_v3 = vpop.f32.mrf.mxu3 }
 0x4d2   : > { %v3964_v48 = vpop.f32.mrf.mxu2 }
 0x4d3   : > { %v3892_v50 = vpop.permute.xlu1 %3891 }
 0x4d4   : > { %4457 = vmatmul.f32.gmra.mxu0 %v4264_v6  ;;  %v3949_v25 = vadd.f32 %v3948_v18, %v3892_v50  ;;  %v3900_v39 = vpop.permute.xlu0 %3899 }
 0x4d5   : > { %4490 = vmatmul.f32.gmra.mxu1 %v4256_v55  ;;  %v4181_v10 = vpop.f32.mrf.mxu3  ;;  %v3965_v54 = vadd.f32 %v3964_v48, %v3900_v39  ;;  %v4198_v48 = vpop.permute.xlu2 %4197 }
 0x4d6   : > { %v4010_v59 = vadd.f32 %v4009_v45, %v3949_v25 }
 0x4d7   : > { %v4018_v38 = vadd.f32 %v4017_v63, %v3965_v54 }
 0x4d8   : > { %v4053_v4 = vadd.f32 %v4052_v42, %v4010_v59 }
 0x4d9   : > { %v4063_v41 = vadd.f32 %v4062_v17, %v4018_v38 }
 0x4da   : > { %v4140_v58 = vpop.f32.mrf.mxu2  ;;  %v4096_v32 = vadd.f32 %v4095_v33, %v4053_v4 }
 0x4db   : > { %v4141_v51 = vadd.f32 %v4140_v58, %v4090_v44  ;;  %v4108_v49 = vadd.f32 %v4107_v14, %v4063_v41 }
 0x4dc   : > { %v4194_v53 = vpop.permute.xlu1 %4193 }
 0x4dd   : > { %4494 = vmatmul.f32.gmra.mxu1 %v4264_v6  ;;  %v4178_v21 = vadd.f32 %v4177_v3, %v4141_v51  ;;  %v4185_v12 = vpop.f32.mrf.mxu3  ;;  %v4206_v22 = vpop.permute.xlu2 %4205 }
 0x4df   : > { %v4498_v19 = vadd.f32 %v4706_v47, %v4178_v21 }
 0x4e1   : > { %v4502_v30 = vmax.f32 %v4498_v19, 0.0 }
 0x4e2   : > { %v4144_v7 = vpop.f32.mrf.mxu2 }
 0x4e3   : > { %4506 = vst.msk [vmem:[%s6577_s30] sm:$0xff] %vm1910_vm1, %v4502_v30  ;;  %v4145_v15 = vadd.f32 %v4144_v7, %v4096_v32  ;;  %v4710_v32 = vld [vmem:[%s4831_s28] sm:$0xff] }
 0x4e4   : > { %v4202_v51 = vpop.permute.xlu1 %4201 }
 0x4e5   : > { %v4182_v0 = vadd.f32 %v4181_v10, %v4145_v15  ;;  %v4189_v20 = vpop.f32.mrf.mxu3 }
 0x4e7   : > { %v4499_v5 = vadd.f32 %v4707_v24, %v4182_v0 }
 0x4e9   : > { %v4503_v31 = vmax.f32 %v4499_v5, 0.0 }
 0x4ea   : > { %v4148_v8 = vpop.f32.mrf.mxu2 }
 0x4eb   : > { %4507 = vst.msk [vmem:[%s6577_s30 + $0x8] sm:$0xff] %vm1910_vm1, %v4503_v31  ;;  %v4149_v55 = vadd.f32 %v4148_v8, %v4102_v27  ;;  %v4711_v27 = vld [vmem:[%s4831_s28 + $0x8] sm:$0xff] }
 0x4ed   : > { %v4186_v2 = vadd.f32 %v4185_v12, %v4149_v55 }
 0x4ef   : > { %v4500_v28 = vadd.f32 %v4708_v1, %v4186_v2 }
 0x4f1   : > { %v4504_v35 = vmax.f32 %v4500_v28, 0.0  ;;  %v4712_v28 = vld [vmem:[%s4831_s28 + $0x10] sm:$0xff] }
 0x4f2   : > { %v4152_v6 = vpop.f32.mrf.mxu2 }
 0x4f3   : > { %4508 = vst.msk [vmem:[%s6577_s30 + $0x10] sm:$0xff] %vm1910_vm1, %v4504_v35  ;;  %v4153_v61 = vadd.f32 %v4152_v6, %v4108_v49 }
 0x4f5   : > { %v4190_v43 = vadd.f32 %v4189_v20, %v4153_v61 }
 0x4f7   : > { %v4501_v36 = vadd.f32 %v4709_v52, %v4190_v43  ;;  %v4713_v52 = vld [vmem:[%s4831_s28 + $0x18] sm:$0xff] }
 0x4f9   : > { %v4505_v13 = vmax.f32 %v4501_v36, 0.0 }
 0x4fb   : > { %4509 = vst.msk [vmem:[%s6577_s30 + $0x18] sm:$0xff] %vm1910_vm1, %v4505_v13 }
 0x519   : > { %v4246_v40 = vpop.f32.mrf.mxu0 }
 0x51a   : > { %v4247_v16 = vadd.f32 %v4246_v40, %v4194_v53 }
 0x521   : > { %v4254_v45 = vpop.f32.mrf.mxu0  ;;  %v4395_v29 = vpop.f32.mrf.mxu3 }
 0x522   : > { %v4311_v57 = vpop.f32.mrf.mxu1  ;;  %v4353_v56 = vpop.f32.mrf.mxu2  ;;  %v4255_v42 = vadd.f32 %v4254_v45, %v4198_v48 }
 0x523   : > { %v4312_v63 = vadd.f32 %v4311_v57, %v4247_v16 }
 0x525   : > { %v4354_v44 = vadd.f32 %v4353_v56, %v4312_v63 }
 0x527   : > { %v4396_v50 = vadd.f32 %v4395_v29, %v4354_v44 }
 0x529   : > { %v4262_v23 = vpop.f32.mrf.mxu0  ;;  %v4401_v25 = vpop.f32.mrf.mxu3 }
 0x52a   : > { %v4315_v18 = vpop.f32.mrf.mxu1  ;;  %v4358_v3 = vpop.f32.mrf.mxu2  ;;  %v4263_v4 = vadd.f32 %v4262_v23, %v4202_v51 }
 0x52b   : > { %v4316_v58 = vadd.f32 %v4315_v18, %v4255_v42 }
 0x52d   : > { %v4359_v19 = vadd.f32 %v4358_v3, %v4316_v58 }
 0x52f   : > { %v4402_v46 = vadd.f32 %v4401_v25, %v4359_v19 }
 0x531   : > { %v4270_v37 = vpop.f32.mrf.mxu0  ;;  %v4407_v0 = vpop.f32.mrf.mxu3 }
 0x532   : > { %v4319_v34 = vpop.f32.mrf.mxu1  ;;  %v4363_v7 = vpop.f32.mrf.mxu2  ;;  %v4271_v26 = vadd.f32 %v4270_v37, %v4206_v22 }
 0x533   : > { %v4320_v15 = vadd.f32 %v4319_v34, %v4263_v4 }
 0x535   : > { %v4364_v5 = vadd.f32 %v4363_v7, %v4320_v15 }
 0x537   : > { %v4408_v54 = vadd.f32 %v4407_v0, %v4364_v5 }
 0x539   : > { %v4446_v33 = vpop.f32.mrf.mxu0  ;;  %v4413_v1 = vpop.f32.mrf.mxu3 }
 0x53a   : > { %v4323_v9 = vpop.f32.mrf.mxu1  ;;  %v4447_v59 = vadd.f32 %v4446_v33, %v4396_v50  ;;  %v4368_v12 = vpop.f32.mrf.mxu2 }
 0x53b   : > { %v4324_v55 = vadd.f32 %v4323_v9, %v4271_v26 }
 0x53d   : > { %v4369_v14 = vadd.f32 %v4368_v12, %v4324_v55 }
 0x53f   : > { %v4414_v6 = vadd.f32 %v4413_v1, %v4369_v14 }
 0x541   : > { %v4450_v30 = vpop.f32.mrf.mxu0 }
 0x542   : > { %v4483_v21 = vpop.f32.mrf.mxu1  ;;  %v4451_v10 = vadd.f32 %v4450_v30, %v4402_v46 }
 0x543   : > { %v4484_v47 = vadd.f32 %v4483_v21, %v4447_v59 }
 0x545   : > { %v4510_v11 = vadd.f32 %v4710_v32, %v4484_v47 }
 0x547   : > { %v4514_v60 = vmax.f32 %v4510_v11, 0.0 }
 0x549   : > { %4518 = vst.msk [vmem:[%s6595_s26] sm:$0xff] %vm1381_vm7, %v4514_v60  ;;  %v4454_v31 = vpop.f32.mrf.mxu0 }
 0x54a   : > { %v4487_v62 = vpop.f32.mrf.mxu1  ;;  %v4455_v38 = vadd.f32 %v4454_v31, %v4408_v54 }
 0x54b   : > { %v4488_v24 = vadd.f32 %v4487_v62, %v4451_v10 }
 0x54d   : > { %v4511_v39 = vadd.f32 %v4711_v27, %v4488_v24 }
 0x54f   : > { %v4515_v8 = vmax.f32 %v4511_v39, 0.0 }
 0x551   : > { %4519 = vst.msk [vmem:[%s6595_s26 + $0x8] sm:$0xff] %vm1381_vm7, %v4515_v8  ;;  %v4458_v35 = vpop.f32.mrf.mxu0 }
 0x552   : > { %v4491_v2 = vpop.f32.mrf.mxu1  ;;  %v4459_v61 = vadd.f32 %v4458_v35, %v4414_v6 }
 0x553   : > { %v4492_v17 = vadd.f32 %v4491_v2, %v4455_v38 }
 0x555   : > { %v4512_v41 = vadd.f32 %v4712_v28, %v4492_v17 }
 0x557   : > { %v4516_v49 = vmax.f32 %v4512_v41, 0.0 }
 0x559   : > { %4520 = vst.msk [vmem:[%s6595_s26 + $0x10] sm:$0xff] %vm1381_vm7, %v4516_v49 }
 0x55a   : > { %v4495_v20 = vpop.f32.mrf.mxu1 }
 0x55b   : > { %v4496_v43 = vadd.f32 %v4495_v20, %v4459_v61 }
 0x55d   : > { %v4513_v36 = vadd.f32 %v4713_v52, %v4496_v43 }
 0x55f   : > { %v4517_v13 = vmax.f32 %v4513_v36, 0.0 }
 0x561   : > { %4521 = vst.msk [vmem:[%s6595_s26 + $0x18] sm:$0xff] %vm1381_vm7, %v4517_v13 }
 0x562 PF: > { %s21_s13 = sadd.s32 1, %s4720_s13  }
 0x563   : > { %p18_p4 = scmp.ge.s32.totalorder %s21_s13, 6  }
 0x565   :  { %20 = sbr.rel (!%p18_p4) target bundleno = 1 (0x1), region = 101 }

</bundles_post_ra>
